<compile_context>
chip_gen: v5e
topology: v5e:2x2
jax: 0.10.0
libtpu: 0.0.40
codegen_flags: <defaults>
</compile_context>

<pallas_src>
import jax
import jax.numpy as jnp
import numpy as np
from jax import lax
from jax.experimental import pallas as pl
from jax.experimental.pallas import tpu as pltpu


def _cc_attn_kernel(x_ref, wq_ref, bq_ref, wk_ref, bk_ref, wv_ref, bv_ref,
                    gamma_ref, out_ref):
    H, W, C = x_ref.shape
    C8 = wq_ref.shape[1]

    x = x_ref[...]                                    # (H, W, C) f32
    gamma = gamma_ref[0, 0]                           # scalar from SMEM

    # 1x1 convolutions == per-pixel channel matmuls (bf16 operands, f32 acc).
    xf = x.reshape(H * W, C).astype(jnp.bfloat16)

    def proj(w_ref, b_ref, n_out):
        y = jnp.dot(xf, w_ref[...].astype(jnp.bfloat16),
                    preferred_element_type=jnp.float32)
        return (y + b_ref[...]).reshape(H, W, n_out)

    q = proj(wq_ref, bq_ref, C8)                      # (H, W, C8) f32
    k = proj(wk_ref, bk_ref, C8)
    v = proj(wv_ref, bv_ref, C)                       # (H, W, C)  f32

    q_b = q.astype(jnp.bfloat16)
    k_b = k.astype(jnp.bfloat16)
    v_b = v.astype(jnp.bfloat16)

    # Column-pass operands via in-VMEM (H,W) swaps (no second HBM read).
    q_wh = jnp.transpose(q_b, (1, 0, 2))              # (W, H, C8)
    k_wh = jnp.transpose(k_b, (1, 0, 2))              # (W, H, C8)
    v_wh = jnp.transpose(v_b, (1, 0, 2))              # (W, H, C)

    # Column (H-direction) energies: eH[w,h,g] = <Q(h,w), K(g,w)>, -inf on g==h
    eH = jnp.einsum('whc,wgc->whg', q_wh, k_wh,
                    preferred_element_type=jnp.float32)           # (W, H, H)
    ih = lax.broadcasted_iota(jnp.int32, (H, H), 0)
    ig = lax.broadcasted_iota(jnp.int32, (H, H), 1)
    diag = jnp.where(ih == ig, -jnp.inf, 0.0).astype(jnp.float32)  # (H, H)
    eH = eH + diag[None, :, :]

    # Row (W-direction) energies: eW[h,w,v] = <Q(h,w), K(h,v)>
    eW = jnp.einsum('hwc,hvc->hwv', q_b, k_b,
                    preferred_element_type=jnp.float32)           # (H, W, W)

    # Joint softmax over the concatenated (H + W) axis: shared max / shared
    # denominator (mathematically identical to softmax over the concat).
    mH = jnp.max(eH, axis=-1)                         # (W, H)
    mW = jnp.max(eW, axis=-1)                         # (H, W)
    m = jnp.maximum(mH.T, mW)                         # (H, W) joint max

    pH = jnp.exp(eH - m.T[:, :, None])                # (W, H, H) unnormalized
    pW = jnp.exp(eW - m[:, :, None])                  # (H, W, W) unnormalized
    den = jnp.sum(pH, axis=-1).T + jnp.sum(pW, axis=-1)   # (H, W), >= 1

    # Single reciprocal on the (H,W) map; gamma folded into the output scale.
    scale = gamma * pl.reciprocal(den, approx=True)   # (H, W)

    # Value aggregation with UNNORMALIZED probabilities (scaled afterwards).
    outH_wh = jnp.einsum('whg,wgc->whc', pH.astype(jnp.bfloat16), v_wh,
                         preferred_element_type=jnp.float32)      # (W, H, C)
    outW = jnp.einsum('hwv,hvc->hwc', pW.astype(jnp.bfloat16), v_b,
                      preferred_element_type=jnp.float32)         # (H, W, C)
    outH = jnp.transpose(outH_wh, (1, 0, 2))                      # (H, W, C)

    out = (outH + outW) * scale[:, :, None] + x
    out_ref[...] = out.astype(out_ref.dtype)


def criss_cross_attention(x_nchw, params):
    """x_nchw: (B, C, H, W) float32. Returns (B, C, H, W)."""
    B, C, H, W = x_nchw.shape
    wq, bq = params["wq"], params["bq"]
    wk, bk = params["wk"], params["bk"]
    wv, bv = params["wv"], params["bv"]
    gamma = params["gamma"].reshape(1, 1).astype(jnp.float32)
    C8 = wq.shape[1]

    x_hwc = jnp.transpose(x_nchw, (0, 2, 3, 1))       # (B, H, W, C)

    grid_spec = pltpu.PrefetchScalarGridSpec(
        num_scalar_prefetch=0,
        grid=(B,),
        in_specs=[
            pl.BlockSpec((None, H, W, C), lambda b: (b, 0, 0, 0)),
            pl.BlockSpec((C, C8), lambda b: (0, 0)),
            pl.BlockSpec((1, C8), lambda b: (0, 0)),
            pl.BlockSpec((C, C8), lambda b: (0, 0)),
            pl.BlockSpec((1, C8), lambda b: (0, 0)),
            pl.BlockSpec((C, C), lambda b: (0, 0)),
            pl.BlockSpec((1, C), lambda b: (0, 0)),
            pl.BlockSpec(memory_space=pltpu.MemorySpace.SMEM),   # gamma scalar
        ],
        out_specs=pl.BlockSpec((None, H, W, C), lambda b: (b, 0, 0, 0)),
    )

    out_hwc = pl.pallas_call(
        _cc_attn_kernel,
        out_shape=jax.ShapeDtypeStruct((B, H, W, C), jnp.float32),
        grid_spec=grid_spec,
        compiler_params=pltpu.CompilerParams(
            dimension_semantics=("parallel",),
            vmem_limit_bytes=32 * 1024 * 1024),
    )(x_hwc, wq, bq, wk, bk, wv, bv, gamma)

    return jnp.transpose(out_hwc, (0, 3, 1, 2))       # back to NCHW
    # TODO(synk): for production CCNet sizes (C=512, S~97-128) add a spatial
    # W-tiling grid axis so the S^3 energy/prob buffers fit v7x's 64 MiB VMEM.


def criss_cross_attention_reference(x_nchw, params):
    """Pure-JAX reference implementing the PyTorch forward verbatim semantics."""
    B, C, H, W = x_nchw.shape
    wq, bq = params["wq"], params["bq"]
    wk, bk = params["wk"], params["bk"]
    wv, bv = params["wv"], params["bv"]
    gamma = params["gamma"].reshape(())

    x_hwc = jnp.transpose(x_nchw, (0, 2, 3, 1))       # (B, H, W, C)
    q = x_hwc @ wq + bq                               # (B, H, W, C8)
    k = x_hwc @ wk + bk
    v = x_hwc @ wv + bv                               # (B, H, W, C)

    eH = jnp.einsum('bhwc,bgwc->bhwg', q, k)          # (B, H, W, H)
    diag = (jnp.arange(H)[:, None, None] == jnp.arange(H)[None, None, :])
    eH = jnp.where(diag[None], -jnp.inf, eH)
    eW = jnp.einsum('bhwc,bhvc->bhwv', q, k)          # (B, H, W, W)

    att = jax.nn.softmax(jnp.concatenate([eH, eW], axis=-1), axis=-1)
    aH, aW = att[..., :H], att[..., H:]
    oH = jnp.einsum('bhwg,bgwc->bhwc', aH, v)
    oW = jnp.einsum('bhwv,bhvc->bhwc', aW, v)
    out_hwc = gamma * (oH + oW) + x_hwc
    return jnp.transpose(out_hwc, (0, 3, 1, 2))


def init_params(key, in_dim):
    """Deterministic init. Conv2d 1x1 weights stored transposed as (C_in, C_out)."""
    c8 = in_dim // 8
    kq, kbq, kk, kbk, kv, kbv = jax.random.split(key, 6)
    bound = 1.0 / np.sqrt(in_dim)  # fan_in = in_dim * 1 * 1
    u = lambda k, shape: jax.random.uniform(k, shape, jnp.float32, -bound, bound)
    return {
        "wq": u(kq, (in_dim, c8)), "bq": u(kbq, (1, c8)),
        "wk": u(kk, (in_dim, c8)), "bk": u(kbk, (1, c8)),
        "wv": u(kv, (in_dim, in_dim)), "bv": u(kbv, (1, in_dim)),
        # PyTorch initializes gamma to 0 (output == x). Use a nonzero value so
        # the attention path is actually exercised in this synthetic test.
        "gamma": jnp.array([0.5], dtype=jnp.float32),
    }


if __name__ == "__main__":
    B, C, H, W = 2, 128, 16, 16           # in_dim=128 -> query/key channels = 16
    key = jax.random.PRNGKey(0)
    kx, kp = jax.random.split(key)
    x = jax.random.normal(kx, (B, C, H, W), dtype=jnp.float32)
    params = init_params(kp, C)

    out = criss_cross_attention(x, params)
    out = jax.block_until_ready(out)

    ref = jax.block_until_ready(criss_cross_attention_reference(x, params))
    np.testing.assert_allclose(np.asarray(out), np.asarray(ref),
                               rtol=2e-2, atol=2e-2)
    assert out.shape == (B, C, H, W)
    print("KERNEL_OK")
</pallas_src>

<mosaic_0001>
module attributes {stable_mosaic.version = 11 : i64} {
  func.func @_cc_attn_kernel(%arg0: i32, %arg1: memref<1x16x16x128xf32, #tpu.memory_space<vmem>>, %arg2: memref<128x16xf32, #tpu.memory_space<vmem>>, %arg3: memref<1x16xf32, #tpu.memory_space<vmem>>, %arg4: memref<128x16xf32, #tpu.memory_space<vmem>>, %arg5: memref<1x16xf32, #tpu.memory_space<vmem>>, %arg6: memref<128x128xf32, #tpu.memory_space<vmem>>, %arg7: memref<1x128xf32, #tpu.memory_space<vmem>>, %arg8: memref<1x1xf32, #tpu.memory_space<smem>>, %arg9: memref<1x16x16x128xf32, #tpu.memory_space<vmem>>) attributes {dimension_semantics = [#tpu.dimension_semantics<parallel>], iteration_bounds = array<i64: 2>, scalar_prefetch = 0 : i64, scratch_operands = 0 : i64, tpu.core_type = #tpu.core_type<tc>, window_params = [{transform_indices = @transform_0, window_bounds = array<i64: 1, 16, 16, 128>}, {pipeline_mode = #tpu.pipeline_mode<synchronous>, transform_indices = @transform_1, window_bounds = array<i64: 128, 16>}, {pipeline_mode = #tpu.pipeline_mode<synchronous>, transform_indices = @transform_2, window_bounds = array<i64: 1, 16>}, {pipeline_mode = #tpu.pipeline_mode<synchronous>, transform_indices = @transform_3, window_bounds = array<i64: 128, 16>}, {pipeline_mode = #tpu.pipeline_mode<synchronous>, transform_indices = @transform_4, window_bounds = array<i64: 1, 16>}, {pipeline_mode = #tpu.pipeline_mode<synchronous>, transform_indices = @transform_5, window_bounds = array<i64: 128, 128>}, {pipeline_mode = #tpu.pipeline_mode<synchronous>, transform_indices = @transform_6, window_bounds = array<i64: 1, 128>}, {transform_indices = @transform_7, window_bounds = array<i64: 1, 1>}, {transform_indices = @transform_8, window_bounds = array<i64: 1, 16, 16, 128>}]} {
    %c0 = arith.constant 0 : index
    %c0_0 = arith.constant 0 : index
    %c0_1 = arith.constant 0 : index
    %c0_2 = arith.constant 0 : index
    %0 = vector.load %arg1[%c0, %c0_0, %c0_1, %c0_2] : memref<1x16x16x128xf32, #tpu.memory_space<vmem>>, vector<1x16x16x128xf32>
    %1 = vector.shape_cast %0 : vector<1x16x16x128xf32> to vector<16x16x128xf32>
    %c0_3 = arith.constant 0 : index
    %c0_4 = arith.constant 0 : index
    %2 = memref.load %arg8[%c0_3, %c0_4] : memref<1x1xf32, #tpu.memory_space<smem>>
    %3 = vector.shape_cast %1 : vector<16x16x128xf32> to vector<256x128xf32>
    %4 = arith.truncf %3 : vector<256x128xf32> to vector<256x128xbf16>
    %c0_5 = arith.constant 0 : index
    %c0_6 = arith.constant 0 : index
    %5 = vector.load %arg2[%c0_5, %c0_6] : memref<128x16xf32, #tpu.memory_space<vmem>>, vector<128x16xf32>
    %6 = arith.truncf %5 : vector<128x16xf32> to vector<128x16xbf16>
    %cst = arith.constant dense<0.000000e+00> : vector<256x16xf32>
    %7 = tpu.matmul %4, %6, %cst {dimension_numbers = #tpu.dot_dimension_numbers<[1], [0], [0], [1], [0, 0, 1, 1], [], []>} : vector<256x128xbf16>, vector<128x16xbf16>, vector<256x16xf32> -> vector<256x16xf32>
    %c0_7 = arith.constant 0 : index
    %c0_8 = arith.constant 0 : index
    %8 = vector.load %arg3[%c0_7, %c0_8] : memref<1x16xf32, #tpu.memory_space<vmem>>, vector<1x16xf32>
    %9 = vector.broadcast %8 : vector<1x16xf32> to vector<256x16xf32>
    %10 = arith.addf %7, %9 : vector<256x16xf32>
    %11 = vector.shape_cast %10 : vector<256x16xf32> to vector<16x16x16xf32>
    %c0_9 = arith.constant 0 : index
    %c0_10 = arith.constant 0 : index
    %12 = vector.load %arg4[%c0_9, %c0_10] : memref<128x16xf32, #tpu.memory_space<vmem>>, vector<128x16xf32>
    %13 = arith.truncf %12 : vector<128x16xf32> to vector<128x16xbf16>
    %cst_11 = arith.constant dense<0.000000e+00> : vector<256x16xf32>
    %14 = tpu.matmul %4, %13, %cst_11 {dimension_numbers = #tpu.dot_dimension_numbers<[1], [0], [0], [1], [0, 0, 1, 1], [], []>} : vector<256x128xbf16>, vector<128x16xbf16>, vector<256x16xf32> -> vector<256x16xf32>
    %c0_12 = arith.constant 0 : index
    %c0_13 = arith.constant 0 : index
    %15 = vector.load %arg5[%c0_12, %c0_13] : memref<1x16xf32, #tpu.memory_space<vmem>>, vector<1x16xf32>
    %16 = vector.broadcast %15 : vector<1x16xf32> to vector<256x16xf32>
    %17 = arith.addf %14, %16 : vector<256x16xf32>
    %18 = vector.shape_cast %17 : vector<256x16xf32> to vector<16x16x16xf32>
    %c0_14 = arith.constant 0 : index
    %c0_15 = arith.constant 0 : index
    %19 = vector.load %arg6[%c0_14, %c0_15] : memref<128x128xf32, #tpu.memory_space<vmem>>, vector<128x128xf32>
    %20 = arith.truncf %19 : vector<128x128xf32> to vector<128x128xbf16>
    %cst_16 = arith.constant dense<0.000000e+00> : vector<256x128xf32>
    %21 = tpu.matmul %4, %20, %cst_16 {dimension_numbers = #tpu.dot_dimension_numbers<[1], [0], [0], [1], [0, 0, 1, 1], [], []>} : vector<256x128xbf16>, vector<128x128xbf16>, vector<256x128xf32> -> vector<256x128xf32>
    %c0_17 = arith.constant 0 : index
    %c0_18 = arith.constant 0 : index
    %22 = vector.load %arg7[%c0_17, %c0_18] : memref<1x128xf32, #tpu.memory_space<vmem>>, vector<1x128xf32>
    %23 = vector.broadcast %22 : vector<1x128xf32> to vector<256x128xf32>
    %24 = arith.addf %21, %23 : vector<256x128xf32>
    %25 = vector.shape_cast %24 : vector<256x128xf32> to vector<16x16x128xf32>
    %26 = arith.truncf %11 : vector<16x16x16xf32> to vector<16x16x16xbf16>
    %27 = arith.truncf %18 : vector<16x16x16xf32> to vector<16x16x16xbf16>
    %28 = arith.truncf %25 : vector<16x16x128xf32> to vector<16x16x128xbf16>
    %29 = tpu.transpose %26, [1, 0, 2] : vector<16x16x16xbf16> -> vector<16x16x16xbf16>
    %30 = tpu.transpose %27, [1, 0, 2] : vector<16x16x16xbf16> -> vector<16x16x16xbf16>
    %31 = tpu.transpose %28, [1, 0, 2] : vector<16x16x128xbf16> -> vector<16x16x128xbf16>
    "tpu.trace_start"() <{level = 10 : i32, message = "whc,wgc->whg"}> : () -> ()
    %cst_19 = arith.constant dense<0.000000e+00> : vector<16x16x16xf32>
    %32 = tpu.matmul %29, %30, %cst_19 {dimension_numbers = #tpu.dot_dimension_numbers<[2], [2], [1], [1], [0, 0, 0, 1, 1, 1], [0], [0]>} : vector<16x16x16xbf16>, vector<16x16x16xbf16>, vector<16x16x16xf32> -> vector<16x16x16xf32>
    "tpu.trace_stop"() : () -> ()
    %33 = tpu.iota {dimensions = array<i32: 0>} : vector<16x16xi32>
    %34 = tpu.iota {dimensions = array<i32: 1>} : vector<16x16xi32>
    %35 = arith.cmpi eq, %33, %34 : vector<16x16xi32>
    %cst_20 = arith.constant 0xFF800000 : f32
    %cst_21 = arith.constant 0.000000e+00 : f32
    %36 = vector.broadcast %cst_20 : f32 to vector<16x16xf32>
    %37 = vector.broadcast %cst_21 : f32 to vector<16x16xf32>
    %38 = arith.select %35, %36, %37 : vector<16x16xi1>, vector<16x16xf32>
    %39 = vector.shape_cast %38 : vector<16x16xf32> to vector<1x16x16xf32>
    %40 = vector.broadcast %39 : vector<1x16x16xf32> to vector<16x16x16xf32>
    %41 = arith.addf %32, %40 : vector<16x16x16xf32>
    "tpu.trace_start"() <{level = 10 : i32, message = "hwc,hvc->hwv"}> : () -> ()
    %cst_22 = arith.constant dense<0.000000e+00> : vector<16x16x16xf32>
    %42 = tpu.matmul %26, %27, %cst_22 {dimension_numbers = #tpu.dot_dimension_numbers<[2], [2], [1], [1], [0, 0, 0, 1, 1, 1], [0], [0]>} : vector<16x16x16xbf16>, vector<16x16x16xbf16>, vector<16x16x16xf32> -> vector<16x16x16xf32>
    "tpu.trace_stop"() : () -> ()
    %cst_23 = arith.constant dense<0xFF800000> : vector<16x16xf32>
    %43 = vector.multi_reduction <maximumf>, %41, %cst_23 [2] : vector<16x16x16xf32> to vector<16x16xf32>
    %cst_24 = arith.constant dense<0xFF800000> : vector<16x16xf32>
    %44 = vector.multi_reduction <maximumf>, %42, %cst_24 [2] : vector<16x16x16xf32> to vector<16x16xf32>
    %45 = tpu.transpose %43, [1, 0] : vector<16x16xf32> -> vector<16x16xf32>
    %46 = arith.maximumf %45, %44 : vector<16x16xf32>
    %47 = tpu.transpose %46, [1, 0] : vector<16x16xf32> -> vector<16x16xf32>
    %48 = vector.shape_cast %47 : vector<16x16xf32> to vector<16x16x1xf32>
    %49 = vector.broadcast %48 : vector<16x16x1xf32> to vector<16x16x16xf32>
    %50 = arith.subf %41, %49 : vector<16x16x16xf32>
    %51 = math.exp %50 : vector<16x16x16xf32>
    %52 = vector.shape_cast %46 : vector<16x16xf32> to vector<16x16x1xf32>
    %53 = vector.broadcast %52 : vector<16x16x1xf32> to vector<16x16x16xf32>
    %54 = arith.subf %42, %53 : vector<16x16x16xf32>
    %55 = math.exp %54 : vector<16x16x16xf32>
    %cst_25 = arith.constant dense<0.000000e+00> : vector<16x16xf32>
    %56 = vector.multi_reduction <add>, %51, %cst_25 [2] : vector<16x16x16xf32> to vector<16x16xf32>
    %57 = tpu.transpose %56, [1, 0] : vector<16x16xf32> -> vector<16x16xf32>
    %cst_26 = arith.constant dense<0.000000e+00> : vector<16x16xf32>
    %58 = vector.multi_reduction <add>, %55, %cst_26 [2] : vector<16x16x16xf32> to vector<16x16xf32>
    %59 = arith.addf %57, %58 : vector<16x16xf32>
    %60 = tpu.reciprocal %59 {approx = true} : vector<16x16xf32> -> vector<16x16xf32>
    %61 = vector.broadcast %2 : f32 to vector<16x16xf32>
    %62 = arith.mulf %61, %60 : vector<16x16xf32>
    %63 = arith.truncf %51 : vector<16x16x16xf32> to vector<16x16x16xbf16>
    "tpu.trace_start"() <{level = 10 : i32, message = "whg,wgc->whc"}> : () -> ()
    %cst_27 = arith.constant dense<0.000000e+00> : vector<16x16x128xf32>
    %64 = tpu.matmul %63, %31, %cst_27 {dimension_numbers = #tpu.dot_dimension_numbers<[2], [1], [1], [2], [0, 0, 0, 1, 1, 2], [0], [0]>} : vector<16x16x16xbf16>, vector<16x16x128xbf16>, vector<16x16x128xf32> -> vector<16x16x128xf32>
    "tpu.trace_stop"() : () -> ()
    %65 = arith.truncf %55 : vector<16x16x16xf32> to vector<16x16x16xbf16>
    "tpu.trace_start"() <{level = 10 : i32, message = "hwv,hvc->hwc"}> : () -> ()
    %cst_28 = arith.constant dense<0.000000e+00> : vector<16x16x128xf32>
    %66 = tpu.matmul %65, %28, %cst_28 {dimension_numbers = #tpu.dot_dimension_numbers<[2], [1], [1], [2], [0, 0, 0, 1, 1, 2], [0], [0]>} : vector<16x16x16xbf16>, vector<16x16x128xbf16>, vector<16x16x128xf32> -> vector<16x16x128xf32>
    "tpu.trace_stop"() : () -> ()
    %67 = tpu.transpose %64, [1, 0, 2] : vector<16x16x128xf32> -> vector<16x16x128xf32>
    %68 = arith.addf %67, %66 : vector<16x16x128xf32>
    %69 = vector.shape_cast %62 : vector<16x16xf32> to vector<16x16x1xf32>
    %70 = vector.broadcast %69 : vector<16x16x1xf32> to vector<16x16x128xf32>
    %71 = arith.mulf %68, %70 : vector<16x16x128xf32>
    %72 = arith.addf %71, %1 : vector<16x16x128xf32>
    %c0_29 = arith.constant 0 : index
    %c0_30 = arith.constant 0 : index
    %c0_31 = arith.constant 0 : index
    %c0_32 = arith.constant 0 : index
    %73 = vector.load %arg9[%c0_29, %c0_30, %c0_31, %c0_32] : memref<1x16x16x128xf32, #tpu.memory_space<vmem>>, vector<1x16x16x128xf32>
    %74 = vector.shape_cast %73 : vector<1x16x16x128xf32> to vector<16x16x128xf32>
    %75 = vector.shape_cast %72 : vector<16x16x128xf32> to vector<1x16x16x128xf32>
    tpu.vector_store %arg9[%c0_29, %c0_30, %c0_31, %c0_32], %75 {strides = array<i32>} : memref<1x16x16x128xf32, #tpu.memory_space<vmem>>, vector<1x16x16x128xf32>,
    return
  }
  func.func @transform_0(%arg0: i32) -> (i32, i32, i32, i32) {
    %c0_i32 = arith.constant 0 : i32
    %c0_i32_0 = arith.constant 0 : i32
    %c0_i32_1 = arith.constant 0 : i32
    %c0_i32_2 = arith.constant 0 : i32
    return %arg0, %c0_i32, %c0_i32_0, %c0_i32_1 : i32, i32, i32, i32
  }
  func.func @transform_1(%arg0: i32) -> (i32, i32) {
    %c0_i32 = arith.constant 0 : i32
    %c0_i32_0 = arith.constant 0 : i32
    %c0_i32_1 = arith.constant 0 : i32
    return %c0_i32, %c0_i32_0 : i32, i32
  }
  func.func @transform_2(%arg0: i32) -> (i32, i32) {
    %c0_i32 = arith.constant 0 : i32
    %c0_i32_0 = arith.constant 0 : i32
    %c0_i32_1 = arith.constant 0 : i32
    return %c0_i32, %c0_i32_0 : i32, i32
  }
  func.func @transform_3(%arg0: i32) -> (i32, i32) {
    %c0_i32 = arith.constant 0 : i32
    %c0_i32_0 = arith.constant 0 : i32
    %c0_i32_1 = arith.constant 0 : i32
    return %c0_i32, %c0_i32_0 : i32, i32
  }
  func.func @transform_4(%arg0: i32) -> (i32, i32) {
    %c0_i32 = arith.constant 0 : i32
    %c0_i32_0 = arith.constant 0 : i32
    %c0_i32_1 = arith.constant 0 : i32
    return %c0_i32, %c0_i32_0 : i32, i32
  }
  func.func @transform_5(%arg0: i32) -> (i32, i32) {
    %c0_i32 = arith.constant 0 : i32
    %c0_i32_0 = arith.constant 0 : i32
    %c0_i32_1 = arith.constant 0 : i32
    return %c0_i32, %c0_i32_0 : i32, i32
  }
  func.func @transform_6(%arg0: i32) -> (i32, i32) {
    %c0_i32 = arith.constant 0 : i32
    %c0_i32_0 = arith.constant 0 : i32
    %c0_i32_1 = arith.constant 0 : i32
    return %c0_i32, %c0_i32_0 : i32, i32
  }
  func.func @transform_7(%arg0: i32) -> (i32, i32) {
    %c0_i32 = arith.constant 0 : i32
    %c0_i32_0 = arith.constant 0 : i32
    %c0_i32_1 = arith.constant 0 : i32
    return %c0_i32, %c0_i32_0 : i32, i32
  }
  func.func @transform_8(%arg0: i32) -> (i32, i32, i32, i32) {
    %c0_i32 = arith.constant 0 : i32
    %c0_i32_0 = arith.constant 0 : i32
    %c0_i32_1 = arith.constant 0 : i32
    %c0_i32_2 = arith.constant 0 : i32
    return %arg0, %c0_i32, %c0_i32_0, %c0_i32_1 : i32, i32, i32, i32
  }
}

</mosaic_0001>

<bundles_post_ra>
// kernel: tpu_custom_call.1
= control target key start
LH: loop header
LB: loop body
LE: loop exit
PB: predicated region body
PF: predicated region fallthrough
CT: control target
= control target key end

     0   :  { %s10581_s0 = inlined_call_operand.hbm [shape: f32[2,16,16,128], index: 0, kind: input, shape index: {}]   ;;  %s10582_s1 = inlined_call_operand.vmem [shape: f32[128,16], index: 1, kind: input, shape index: {}]   ;;  %s10583_s2 = inlined_call_operand.vmem [shape: f32[1,16], index: 2, kind: input, shape index: {}]   ;;  %s10584_s3 = inlined_call_operand.vmem [shape: f32[128,16], index: 3, kind: input, shape index: {}]   ;;  %s10585_s4 = inlined_call_operand.vmem [shape: f32[1,16], index: 4, kind: input, shape index: {}]   ;;  %s10586_s5 = inlined_call_operand.vmem [shape: f32[128,128], index: 5, kind: input, shape index: {}]   ;;  %s10587_s6 = inlined_call_operand.vmem [shape: f32[1,128], index: 6, kind: input, shape index: {}]   ;;  %s10588_s7 = inlined_call_operand.<no memory space> [shape: f32[1,1], index: 7, kind: input, shape index: {}]   ;;  %s10589_s8 = inlined_call_operand.hbm [shape: f32[2,16,16,128], index: 8, kind: output, shape index: {}]  }
   0x1   :  { %13 = sst [smem:[#allocation2]] %s10588_s7 }
   0x2   :  { %14 = vsyncpa [#allocation4], 0 }
   0x3   :  { %16 = vsyncpa [#allocation4 + $0x1], 0 }
   0x4   :  { %17 = vsyncpa [#allocation5], 0 }
   0x5   :  { %19 = vsyncpa [#allocation5 + $0x1], 0  ;;  %s6500_s29 = smov 0   ;;  %s6502_s30 = smov 0  }
   0x6   :  { %s6504_s9 = smov 0   ;;  %s6506_s10 = smov 0  }
   0x7 LB: > { %s6521_s7 = sadd.s32 4294967295, %s6443_s10   ;;  %s5983_s11 = sadd.s32 4294967294, %s6443_s10   ;;  %s6443_s10 = sphi %s6506_s10, %s11323_s10   ;;  %s6439_s9 = sphi %s6504_s9, %s11322_s9   ;;  %s6435_s30 = sphi %s6502_s30, %s11321_s30   ;;  %s6431_s29 = sphi %s6500_s29, %s11320_s29  }
   0x8   : > { %s6525_s12 = sadd.s32 1, %s6443_s10   ;;  %s32_s13 = sadd.s32 1, %s6439_s9 }
   0x9   : > { %s29_s14 = ssub.s32 %s6443_s10, %s6525_s12  ;;  %p39_p0 = scmp.ne.s32.totalorder %s6439_s9, %s6435_s30 }
   0xa   : > { %p30_p1 = scmp.eq.s32.totalorder %s29_s14, 0  ;;  %p40_p2 = scmp.eq.s32.totalorder %s6443_s10, 0 }
   0xb   : > { %p45_p3 = scmp.ne.s32.totalorder %s6435_s30, %s6431_s29  ;;  %p46_p4 = scmp.eq.s32.totalorder %s6521_s7, 0 }
   0xc   : > { %s6537_s15 = scalar_select %p30_p1, %s6439_s9, %s32_s13  }
   0xd   : > { %p6539_p5 = por %p40_p2, %p39_p0  ;;  %p6543_p6 = por %p46_p4, %p45_p3 }
   0xe   : > { %10783 = sst [smem:[#allocation9_spill]] %s6537_s15  ;;  %p216_p7 = scmp.eq.s32.totalorder %s6521_s7, 1 }
   0xf   : > { %p222_p8 = scmp.eq.s32.totalorder %s5983_s11, 1  ;;  %p6075_p10 = scmp.lt.s32.totalorder %s6443_s10, 2 }
  0x10   : > { %p6550_p11 = por %p216_p7, %p39_p0  ;;  %s263_s20 = sand.u32 1, %s6439_s9  }
  0x11   : > { %p6554_p12 = por %p222_p8, %p45_p3  ;;  %s6061_s21 = sshll.u32 %s6443_s10, 8 }
  0x12   : > { %s5986_s22 = sshll.u32 %s263_s20, 8  ;;  %s272_s25 = scalar_lea.hbm %s10581_s0, %s6061_s21 }
  0x13   : > { %s273_s26 = sshll.u32 %s272_s25, 4  ;;  %s267_s27 = scalar_lea.vmem [#allocation3], %s5986_s22  ;;  %s274_s26 = int_to_ptr.hbm [resolvable:$true] %s273_s26 }
  0x14   : > { %s275_s28 = sshll.u32 %s267_s27, 4  ;;  %p6565_p13 = pnand %p6075_p10, %p6539_p5  ;;  %s276_s28 = int_to_ptr.vmem [resolvable:$true] %s275_s28 }
  0x15   : > { %p5989_p0 = scmp.ge.s32.totalorder %s6443_s10, 1  ;;  %p283_p1 = scmp.lt.s32.totalorder %s6443_s10, 3 }
  0x16   : > { %s264_s13 = scalar_lea.sflag [#allocation4], %s263_s20  ;;  %s6347_s14 = sshra.s32 %s274_s26, 4  ;;  %s6348_s14 = int_to_ptr.hbm [resolvable:$true] %s6347_s14 }
  0x17   : > { %s6349_s15 = scalar_lea.hbm %s6348_s14, 256  ;;  %p6351_p3 = pneg %p6565_p13 }
  0x18   : > { %p6350_p2 = scmp.ne.s32.totalorder %s6348_s14, %s6349_s15  ;;  %s6354_s16 = scalar_lea.hbm %s10581_s0, 512 }
  0x19   : > { %p6355_p5 = scmp.lt.s32.totalorder %s6348_s14, %s10581_s0  ;;  %p6356_p8 = scmp.lt.s32.totalorder %s6354_s16, %s6349_s15 }
  0x1a   : > { %p6352_p4 = pnand %p6351_p3, %p6350_p2 }
  0x1b   : > { %p6357_p10 = por %p6356_p8, %p6355_p5 }
  0x1c   : > { %p6353_p7 = pneg %p6352_p4 }
  0x1e   : > { %p6358_p9 = pnand %p6357_p10, %p6353_p7 }
  0x20   : > { %6361 = shalt.err (!%p6358_p9)
}
  0x21   : > { %s6445_s20 = smov 128   ;;  %s6446_s25 = smov 8  }
  0x22   : > { %6070 = dma.hbm_to_vmem [thread:$0]  (!%p6565_p13), %s274_s26, 4096, %s276_s28, %s264_s13, %s6445_s20, %s6445_s20, %s6446_s25  }
  0x23   : > { %p284_p2 = pnand %p5989_p0, %p283_p1 }
  0x25   : > { %287 = sbr.rel (%p284_p2) target bundleno = 2386 (0x952), region = 52 }
  0x2a   : > { %s6586_s27 = sand.u32 1, %s6435_s30  }
  0x2b   : > { %s5990_s15 = sshll.u32 %s6586_s27, 8  ;;  %s290_s14 = scalar_lea.sflag [#allocation4], %s6586_s27 }
  0x2c   : > { %s6592_s21 = scalar_lea.vmem [#allocation3], %s5990_s15 }
  0x2d   : > { %6422 = dma.done.wait (%p6543_p6), %s290_s14, 4096  }
  0x2e   : > { %6424 = vsyncadd (%p6543_p6), %s290_s14, 4294963200  ;;  %v391_v0 = vld [vmem:[%s10582_s1 + $0x70] sm:$0xff]  ;;  %v392_v1 = vld [vmem:[%s10582_s1 + $0x78] sm:$0xff]  ;;  %vm1800_vm0 = vcmask 130048   ;;  %vm825_vm1 = vcmask 1047556   ;;  %vm2918_vm4 = vcmask 130112  }
  0x2f   : > { %v508_v2 = vld [vmem:[%s10584_s3 + $0x70] sm:$0xff]  ;;  %v400_v3 = vpack.c.bf16 %v392_v1, %v391_v0  ;;  %v509_v4 = vld [vmem:[%s10584_s3 + $0x78] sm:$0xff]  ;;  %v389_v9 = vld [vmem:[%s10582_s1 + $0x60] sm:$0xff]  ;;  %vm2965_vm5 = vcmask 1041409   ;;  %vm2967_vm6 = vcmask 1042434   ;;  %vm2969_vm7 = vcmask 1043459  }
  0x30   : > { %v625_v5 = vld [vmem:[%s10586_s5 + $0x70] sm:$0xff]  ;;  %v626_v6 = vld [vmem:[%s10586_s5 + $0x78] sm:$0xff]  ;;  %v517_v7 = vpack.c.bf16 %v509_v4, %v508_v2  ;;  %v390_v10 = vld [vmem:[%s10582_s1 + $0x68] sm:$0xff]  ;;  %vm2971_vm8 = vcmask 1044484   ;;  %vm2973_vm9 = vcmask 1045509   ;;  %vm2975_vm10 = vcmask 1046534  }
  0x31   : > { %v634_v8 = vpack.c.bf16 %v626_v6, %v625_v5  ;;  %v506_v11 = vld [vmem:[%s10584_s3 + $0x60] sm:$0xff]  ;;  %405 = vmatpush.bf16.msra.mxu0 %v400_v3  ;;  %v399_v12 = vpack.c.bf16 %v390_v10, %v389_v9  ;;  %v507_v13 = vld [vmem:[%s10584_s3 + $0x68] sm:$0xff]  ;;  %v387_v18 = vld [vmem:[%s10582_s1 + $0x50] sm:$0xff]  ;;  %vm2977_vm11 = vcmask 1047559   ;;  %s10302_s11 = sld [smem:[#allocation2]]  ;;  %s10399_s13 = scalar_lea.vmem [#allocation6], %s5990_s15 }
  0x32   : > { %v623_v14 = vld [vmem:[%s10586_s5 + $0x60] sm:$0xff]  ;;  %v624_v15 = vld [vmem:[%s10586_s5 + $0x68] sm:$0xff]  ;;  %522 = vmatpush.bf16.msra.mxu1 %v517_v7  ;;  %v516_v16 = vpack.c.bf16 %v507_v13, %v506_v11  ;;  %v388_v19 = vld [vmem:[%s10582_s1 + $0x58] sm:$0xff]  ;;  %s6062_s15 = sshll.u32 %s6521_s7, 8  ;;  %s5907_s24 = sshll.u32 %s10399_s13, 4  ;;  %s5908_s24 = int_to_ptr.vmem [resolvable:$true] %s5907_s24 }
  0x33   : > { %639 = vmatpush.bf16.msra.mxu2 %v634_v8  ;;  %v633_v17 = vpack.c.bf16 %v624_v15, %v623_v14  ;;  %v504_v20 = vld [vmem:[%s10584_s3 + $0x50] sm:$0xff]  ;;  %v505_v21 = vld [vmem:[%s10584_s3 + $0x58] sm:$0xff]  ;;  %v398_v24 = vpack.c.bf16 %v388_v19, %v387_v18  ;;  %v385_v27 = vld [vmem:[%s10582_s1 + $0x40] sm:$0xff]  ;;  %s5906_s23 = scalar_lea.hbm %s10589_s8, %s6062_s15  ;;  %s5895_s17 = scalar_lea.sflag [#allocation5], %s6586_s27 }
  0x34   : > { %v621_v22 = vld [vmem:[%s10586_s5 + $0x50] sm:$0xff]  ;;  %v622_v23 = vld [vmem:[%s10586_s5 + $0x58] sm:$0xff]  ;;  %v515_v25 = vpack.c.bf16 %v505_v21, %v504_v20  ;;  %v386_v28 = vld [vmem:[%s10582_s1 + $0x48] sm:$0xff]  ;;  %s5909_s20 = sshll.u32 %s5906_s23, 4  ;;  %s6397_s28 = scalar_lea.hbm %s10589_s8, 512  ;;  %s5910_s20 = int_to_ptr.hbm [resolvable:$true] %s5909_s20 }
  0x35   : > { %406 = vmatpush.bf16.msra.mxu0 %v399_v12  ;;  %v632_v26 = vpack.c.bf16 %v622_v23, %v621_v22  ;;  %v502_v29 = vld [vmem:[%s10584_s3 + $0x40] sm:$0xff]  ;;  %v503_v30 = vld [vmem:[%s10584_s3 + $0x48] sm:$0xff]  ;;  %v397_v33 = vpack.c.bf16 %v386_v28, %v385_v27  ;;  %v383_v36 = vld [vmem:[%s10582_s1 + $0x30] sm:$0xff]  ;;  %s6391_s25 = sshra.s32 %s5910_s20, 4  ;;  %s6392_s25 = int_to_ptr.hbm [resolvable:$true] %s6391_s25 }
  0x36   : > { %523 = vmatpush.bf16.msra.mxu1 %v516_v16  ;;  %v619_v31 = vld [vmem:[%s10586_s5 + $0x40] sm:$0xff]  ;;  %v620_v32 = vld [vmem:[%s10586_s5 + $0x48] sm:$0xff]  ;;  %v514_v34 = vpack.c.bf16 %v503_v30, %v502_v29  ;;  %v384_v37 = vld [vmem:[%s10582_s1 + $0x38] sm:$0xff]  ;;  %s6393_s14 = scalar_lea.hbm %s6392_s25, 256  ;;  %p6398_p0 = scmp.lt.s32.totalorder %s6392_s25, %s10589_s8 }
  0x37   : > { %640 = vmatpush.bf16.msra.mxu2 %v633_v17  ;;  %v631_v35 = vpack.c.bf16 %v620_v32, %v619_v31  ;;  %v500_v38 = vld [vmem:[%s10584_s3 + $0x30] sm:$0xff]  ;;  %v501_v39 = vld [vmem:[%s10584_s3 + $0x38] sm:$0xff]  ;;  %v396_v42 = vpack.c.bf16 %v384_v37, %v383_v36  ;;  %v381_v43 = vld [vmem:[%s10582_s1 + $0x20] sm:$0xff]  ;;  %p6394_p6 = scmp.ne.s32.totalorder %s6392_s25, %s6393_s14  ;;  %p6399_p1 = scmp.lt.s32.totalorder %s6397_s28, %s6393_s14 }
  0x38   : > { %v617_v40 = vld [vmem:[%s10586_s5 + $0x30] sm:$0xff]  ;;  %v618_v41 = vld [vmem:[%s10586_s5 + $0x38] sm:$0xff]  ;;  %v382_v44 = vld [vmem:[%s10582_s1 + $0x28] sm:$0xff]  ;;  %v513_v45 = vpack.c.bf16 %v501_v39, %v500_v38 }
  0x39   : > { %407 = vmatpush.bf16.msra.mxu0 %v398_v24  ;;  %v630_v46 = vpack.c.bf16 %v618_v41, %v617_v40  ;;  %v498_v47 = vld [vmem:[%s10584_s3 + $0x20] sm:$0xff]  ;;  %v499_v48 = vld [vmem:[%s10584_s3 + $0x28] sm:$0xff]  ;;  %v395_v51 = vpack.c.bf16 %v382_v44, %v381_v43  ;;  %v379_v54 = vld [vmem:[%s10582_s1 + $0x10] sm:$0xff]  ;;  %p6395_p9 = pnand %p6394_p6, %p6550_p11  ;;  %p6400_p3 = por %p6399_p1, %p6398_p0 }
  0x3a   : > { %524 = vmatpush.bf16.msra.mxu1 %v515_v25  ;;  %v615_v49 = vld [vmem:[%s10586_s5 + $0x20] sm:$0xff]  ;;  %v616_v50 = vld [vmem:[%s10586_s5 + $0x28] sm:$0xff]  ;;  %v512_v52 = vpack.c.bf16 %v499_v48, %v498_v47  ;;  %v380_v55 = vld [vmem:[%s10582_s1 + $0x18] sm:$0xff] }
  0x3b   : > { %641 = vmatpush.bf16.msra.mxu2 %v632_v26  ;;  %v629_v53 = vpack.c.bf16 %v616_v50, %v615_v49  ;;  %v496_v56 = vld [vmem:[%s10584_s3 + $0x10] sm:$0xff]  ;;  %v497_v57 = vld [vmem:[%s10584_s3 + $0x18] sm:$0xff]  ;;  %v394_v60 = vpack.c.bf16 %v380_v55, %v379_v54  ;;  %v377_v63 = vld [vmem:[%s10582_s1] sm:$0xff]  ;;  %p6396_p13 = pneg %p6395_p9 }
  0x3c   : > { %v613_v58 = vld [vmem:[%s10586_s5 + $0x10] sm:$0xff]  ;;  %v614_v59 = vld [vmem:[%s10586_s5 + $0x18] sm:$0xff]  ;;  %v511_v61 = vpack.c.bf16 %v497_v57, %v496_v56  ;;  %v378_v0 = vld [vmem:[%s10582_s1 + $0x8] sm:$0xff] }
  0x3d   : > { %408 = vmatpush.bf16.msra.mxu0 %v397_v33  ;;  %v628_v62 = vpack.c.bf16 %v614_v59, %v613_v58  ;;  %v494_v1 = vld [vmem:[%s10584_s3] sm:$0xff]  ;;  %v495_v2 = vld [vmem:[%s10584_s3 + $0x8] sm:$0xff]  ;;  %v393_v5 = vpack.c.bf16 %v378_v0, %v377_v63  ;;  %v330_v11 = vld [vmem:[%s6592_s21 + $0x10] sm:$0xff]  ;;  %p6401_p4 = pnand %p6400_p3, %p6396_p13 }
  0x3e   : > { %525 = vmatpush.bf16.msra.mxu1 %v514_v34  ;;  %v611_v3 = vld [vmem:[%s10586_s5] sm:$0xff]  ;;  %v612_v4 = vld [vmem:[%s10586_s5 + $0x8] sm:$0xff]  ;;  %v510_v8 = vpack.c.bf16 %v495_v2, %v494_v1  ;;  %v331_v12 = vld [vmem:[%s6592_s21 + $0x18] sm:$0xff] }
  0x3f   : > { %642 = vmatpush.bf16.msra.mxu2 %v631_v35  ;;  %v328_v6 = vld [vmem:[%s6592_s21] sm:$0xff]  ;;  %v329_v7 = vld [vmem:[%s6592_s21 + $0x8] sm:$0xff]  ;;  %v627_v9 = vpack.c.bf16 %v612_v4, %v611_v3  ;;  %v362_v13 = vpack.c.bf16 %v331_v12, %v330_v11  ;;  %v334_v17 = vld [vmem:[%s6592_s21 + $0x30] sm:$0xff] }
  0x40   : > { %v361_v10 = vpack.c.bf16 %v329_v7, %v328_v6  ;;  %v332_v14 = vld [vmem:[%s6592_s21 + $0x20] sm:$0xff]  ;;  %v333_v15 = vld [vmem:[%s6592_s21 + $0x28] sm:$0xff]  ;;  %v335_v18 = vld [vmem:[%s6592_s21 + $0x38] sm:$0xff] }
  0x41   : > { %409 = vmatpush.bf16.msra.mxu0 %v396_v42  ;;  %v363_v16 = vpack.c.bf16 %v333_v15, %v332_v14  ;;  %v364_v19 = vpack.c.bf16 %v335_v18, %v334_v17  ;;  %v336_v20 = vld [vmem:[%s6592_s21 + $0x40] sm:$0xff]  ;;  %v337_v21 = vld [vmem:[%s6592_s21 + $0x48] sm:$0xff]  ;;  %v338_v23 = vld [vmem:[%s6592_s21 + $0x50] sm:$0xff] }
  0x42   : > { %526 = vmatpush.bf16.msra.mxu1 %v513_v45  ;;  %v365_v22 = vpack.c.bf16 %v337_v21, %v336_v20  ;;  %v339_v24 = vld [vmem:[%s6592_s21 + $0x58] sm:$0xff]  ;;  %v340_v26 = vld [vmem:[%s6592_s21 + $0x60] sm:$0xff]  ;;  %v341_v27 = vld [vmem:[%s6592_s21 + $0x68] sm:$0xff] }
  0x43   : > { %643 = vmatpush.bf16.msra.mxu2 %v630_v46  ;;  %v366_v25 = vpack.c.bf16 %v339_v24, %v338_v23  ;;  %v367_v28 = vpack.c.bf16 %v341_v27, %v340_v26  ;;  %v342_v29 = vld [vmem:[%s6592_s21 + $0x70] sm:$0xff]  ;;  %v343_v30 = vld [vmem:[%s6592_s21 + $0x78] sm:$0xff]  ;;  %v344_v32 = vld [vmem:[%s6592_s21 + $0x80] sm:$0xff] }
  0x44   : > { %v368_v31 = vpack.c.bf16 %v343_v30, %v342_v29  ;;  %v345_v33 = vld [vmem:[%s6592_s21 + $0x88] sm:$0xff]  ;;  %v346_v40 = vld [vmem:[%s6592_s21 + $0x90] sm:$0xff]  ;;  %v347_v41 = vld [vmem:[%s6592_s21 + $0x98] sm:$0xff] }
  0x45   : > { %410 = vmatpush.bf16.msra.mxu0 %v395_v51  ;;  %v369_v34 = vpack.c.bf16 %v345_v33, %v344_v32  ;;  %v370_v43 = vpack.c.bf16 %v347_v41, %v346_v40  ;;  %v348_v49 = vld [vmem:[%s6592_s21 + $0xa0] sm:$0xff]  ;;  %v349_v50 = vld [vmem:[%s6592_s21 + $0xa8] sm:$0xff]  ;;  %v350_v63 = vld [vmem:[%s6592_s21 + $0xb0] sm:$0xff] }
  0x46   : > { %527 = vmatpush.bf16.msra.mxu1 %v512_v52  ;;  %v371_v52 = vpack.c.bf16 %v349_v50, %v348_v49  ;;  %v6793_v55 = vld [vmem:[%s10585_s4] ss:$0 sm:$0xff]  ;;  %v351_v0 = vld [vmem:[%s6592_s21 + $0xb8] sm:$0xff]  ;;  %v353_v17 = vld [vmem:[%s6592_s21 + $0xc8] sm:$0xff] }
  0x47   : > { %644 = vmatpush.bf16.msra.mxu2 %v629_v53  ;;  %v372_v6 = vpack.c.bf16 %v351_v0, %v350_v63  ;;  %v6835_v30 = vld [vmem:[%s10587_s6] ss:$0 sm:$0xff]  ;;  %v354_v40 = vld [vmem:[%s6592_s21 + $0xd0] sm:$0xff]  ;;  %v355_v41 = vld [vmem:[%s6592_s21 + $0xd8] sm:$0xff] }
  0x48   : > { %v6855_v0 = vld [vmem:[%s10583_s2] ss:$0 sm:$0xff] }
  0x49   : > { %411 = vmatpush.bf16.msra.mxu0 %v394_v60 }
  0x4a   : > { %528 = vmatpush.bf16.msra.mxu1 %v511_v61 }
  0x4b   : > { %645 = vmatpush.bf16.msra.mxu2 %v628_v62 }
  0x4d   : > { %412 = vmatpush.bf16.msra.mxu0 %v393_v5 }
  0x4e   : > { %529 = vmatpush.bf16.msra.mxu1 %v510_v8 }
  0x4f   : > { %646 = vmatpush.bf16.msra.mxu2 %v627_v9 }
  0x50   : > { %413 = vmatmul.bf16.vlgmr.msra.gmra.mxu0 %v361_v10 }
  0x51   : > { %530 = vmatmul.bf16.vlgmr.msra.gmra.mxu1 %v361_v10 }
  0x52   : > { %647 = vmatmul.bf16.vlgmr.msra.gmra.mxu2 %v361_v10 }
  0x60   : > { %418 = vmatmul.bf16.gmra.mxu0 %v362_v13 }
  0x61   : > { %535 = vmatmul.bf16.gmra.mxu1 %v362_v13 }
  0x62   : > { %652 = vmatmul.bf16.gmra.mxu2 %v362_v13 }
  0x70   : > { %423 = vmatmul.bf16.gmra.mxu0 %v363_v16 }
  0x71   : > { %540 = vmatmul.bf16.gmra.mxu1 %v363_v16 }
  0x72   : > { %657 = vmatmul.bf16.gmra.mxu2 %v363_v16  ;;  %v352_v16 = vld [vmem:[%s6592_s21 + $0xc0] sm:$0xff] }
  0x73   : > { %v373_v23 = vpack.c.bf16 %v353_v17, %v352_v16 }
  0x80   : > { %428 = vmatmul.bf16.gmra.mxu0 %v364_v19 }
  0x81   : > { %545 = vmatmul.bf16.gmra.mxu1 %v364_v19 }
  0x82   : > { %662 = vmatmul.bf16.gmra.mxu2 %v364_v19 }
  0x90   : > { %433 = vmatmul.bf16.gmra.mxu0 %v365_v22 }
  0x91   : > { %550 = vmatmul.bf16.gmra.mxu1 %v365_v22 }
  0x92   : > { %667 = vmatmul.bf16.gmra.mxu2 %v365_v22 }
  0xa0   : > { %438 = vmatmul.bf16.gmra.mxu0 %v366_v25 }
  0xa1   : > { %555 = vmatmul.bf16.gmra.mxu1 %v366_v25 }
  0xa2   : > { %672 = vmatmul.bf16.gmra.mxu2 %v366_v25 }
  0xb0   : > { %443 = vmatmul.bf16.gmra.mxu0 %v367_v28 }
  0xb1   : > { %560 = vmatmul.bf16.gmra.mxu1 %v367_v28 }
  0xb2   : > { %677 = vmatmul.bf16.gmra.mxu2 %v367_v28 }
  0xc0   : > { %448 = vmatmul.bf16.gmra.mxu0 %v368_v31 }
  0xc1   : > { %565 = vmatmul.bf16.gmra.mxu1 %v368_v31 }
  0xc2   : > { %682 = vmatmul.bf16.gmra.mxu2 %v368_v31 }
  0xcd   : > { %v6760_v35 = vpop.f32.mrf.mxu0 }
  0xce   : > { %v6762_v36 = vpop.f32.mrf.mxu1 }
  0xd0   : > { %453 = vmatmul.bf16.gmra.mxu0 %v369_v34 }
  0xd1   : > { %570 = vmatmul.bf16.gmra.mxu1 %v369_v34 }
  0xd2   : > { %687 = vmatmul.bf16.gmra.mxu2 %v369_v34 }
  0xd5   : > { %v6764_v37 = vpop.f32.mrf.mxu2  ;;  %v6766_v38 = vpop.f32.mrf.mxu0 }
  0xd6   : > { %v6768_v39 = vpop.f32.mrf.mxu1  ;;  %v649_v17 = vadd.f32 %v6835_v30, %v6764_v37 }
  0xdd   : > { %v6772_v42 = vpop.f32.mrf.mxu2  ;;  %v6774_v44 = vpop.f32.mrf.mxu0 }
  0xde   : > { %v6776_v45 = vpop.f32.mrf.mxu1 }
  0xe0   : > { %458 = vmatmul.bf16.gmra.mxu0 %v370_v43 }
  0xe1   : > { %575 = vmatmul.bf16.gmra.mxu1 %v370_v43 }
  0xe2   : > { %692 = vmatmul.bf16.gmra.mxu2 %v370_v43 }
  0xe5   : > { %v6778_v46 = vpop.f32.mrf.mxu2  ;;  %v6780_v47 = vpop.f32.mrf.mxu0 }
  0xe6   : > { %v6782_v48 = vpop.f32.mrf.mxu1 }
  0xed   : > { %v6786_v51 = vpop.f32.mrf.mxu2  ;;  %v6788_v53 = vpop.f32.mrf.mxu0 }
  0xee   : > { %v541_v54 = vpop.f32.mrf.mxu1 }
  0xef   : > { %v542_v56 = vadd.f32 %v6793_v55, %v541_v54 }
  0xf0   : > { %463 = vmatmul.bf16.gmra.mxu0 %v371_v52 }
  0xf1   : > { %580 = vmatmul.bf16.gmra.mxu1 %v371_v52  ;;  %v6800_v60 = vpack.c.bf16 %v542_v56, %v542_v56 }
  0xf2   : > { %697 = vmatmul.bf16.gmra.mxu2 %v371_v52 }
  0xf3   : > { %v2278_v1 = vunpack.c.l.b16 %v6800_v60 }
  0xf5   : > { %v6796_v57 = vpop.f32.mrf.mxu2  ;;  %v6798_v58 = vpop.f32.mrf.mxu0 }
  0xf6   : > { %v543_v59 = vpop.f32.mrf.mxu1 }
  0xf7   : > { %v544_v61 = vadd.f32 %v6793_v55, %v543_v59 }
  0xf9   : > { %v6803_v62 = vpack.c.bf16 %v544_v61, %v544_v61  ;;  %v374_v61 = vpack.c.bf16 %v355_v41, %v354_v40 }
  0xfb   : > { %v2279_v2 = vunpack.c.l.b16 %v6803_v62 }
  0xfd   : > { %v6809_v3 = vpop.f32.mrf.mxu2  ;;  %v6811_v4 = vpop.f32.mrf.mxu0  ;;  %v2280_v5 = vpack.c.b16 %v2279_v2, %v2278_v1 }
  0xfe   : > { %v546_v7 = vpop.f32.mrf.mxu1 }
  0xff   : > { %v2285_v8 = vsel %vm1800_vm0, %v2280_v5, 0  ;;  %v547_v9 = vadd.f32 %v6793_v55, %v546_v7 }
 0x100   : > { %2294 = vmatpush.bf16.xpose.msrb.mxu0 %v2285_v8 }
 0x101   : > { %468 = vmatmul.bf16.gmra.mxu0 %v372_v6  ;;  %585 = vmatmul.bf16.gmra.mxu1 %v372_v6  ;;  %v6819_v13 = vpack.c.bf16 %v547_v9, %v547_v9  ;;  %v415_v9 = vadd.f32 %v6855_v0, %v6760_v35 }
 0x102   : > { %702 = vmatmul.bf16.gmra.mxu2 %v372_v6 }
 0x103   : > { %v2308_v18 = vunpack.c.l.b16 %v6819_v13 }
 0x105   : > { %v6815_v10 = vpop.f32.mrf.mxu2  ;;  %v6817_v11 = vpop.f32.mrf.mxu0 }
 0x106   : > { %v548_v12 = vpop.f32.mrf.mxu1 }
 0x107   : > { %v549_v14 = vadd.f32 %v6793_v55, %v548_v12  ;;  %v532_v12 = vadd.f32 %v6793_v55, %v6762_v36 }
 0x109   : > { %v6822_v15 = vpack.c.bf16 %v549_v14, %v549_v14  ;;  %v6885_v37 = vpack.c.bf16 %v532_v12, %v532_v12 }
 0x10b   : > { %v2309_v19 = vunpack.c.l.b16 %v6822_v15  ;;  %10792 = vst [vmem:[#allocation13_spill] sm:$0xff] %v6885_v37 }
 0x10d   : > { %v6828_v20 = vpop.f32.mrf.mxu2  ;;  %v434_v21 = vpop.f32.mrf.mxu0  ;;  %v2310_v22 = vpack.c.b16 %v2309_v19, %v2308_v18 }
 0x10e   : > { %v551_v24 = vpop.f32.mrf.mxu1  ;;  %v435_v6 = vadd.f32 %v6855_v0, %v434_v21  ;;  %v417_v21 = vadd.f32 %v6855_v0, %v6766_v38 }
 0x10f   : > { %v2315_v25 = vsel %vm1800_vm0, %v2310_v22, 0  ;;  %v552_v26 = vadd.f32 %v6793_v55, %v551_v24  ;;  %v420_v22 = vadd.f32 %v6855_v0, %v6774_v44  ;;  %v6883_v24 = vpack.c.bf16 %v415_v9, %v415_v9 }
 0x110   : > { %2324 = vmatpush.bf16.xpose.msrb.mxu1 %v2315_v25  ;;  %v6872_v18 = vpack.c.bf16 %v435_v6, %v435_v6  ;;  %v537_v25 = vadd.f32 %v6793_v55, %v6776_v45  ;;  %v425_v44 = vadd.f32 %v6855_v0, %v6788_v53  ;;  %v356_v45 = vld [vmem:[%s6592_s21 + $0xe0] sm:$0xff] }
 0x111   : > { %473 = vmatmul.bf16.gmra.mxu0 %v373_v23  ;;  %590 = vmatmul.bf16.gmra.mxu1 %v373_v23  ;;  %v6837_v31 = vpack.c.bf16 %v552_v26, %v552_v26  ;;  %10791 = vst [vmem:[#allocation12_spill] sm:$0xff] %v6883_v24  ;;  %v6447_v26 = vmov 1983009808  }
 0x112   : > { %707 = vmatmul.bf16.gmra.mxu2 %v373_v23  ;;  %v824_v40 = vrot.slane %v6872_v18, 4 }
 0x113   : > { %v2338_v43 = vunpack.c.l.b16 %v6837_v31  ;;  %v1145_v41 = vrot.slane %v6837_v31, 4 }
 0x115   : > { %v668_v27 = vpop.f32.mrf.mxu2  ;;  %v436_v28 = vpop.f32.mrf.mxu0  ;;  %v1146_v9 = vsel %vm825_vm1, %v1145_v41, %v6885_v37 }
 0x116   : > { %v553_v29 = vpop.f32.mrf.mxu1  ;;  %v669_v33 = vadd.f32 %v6835_v30, %v668_v27  ;;  %v437_v38 = vadd.f32 %v6855_v0, %v436_v28  ;;  %v828_v27 = vunpack.c.l.s4 %v6447_v26  ;;  %v6902_v28 = vpack.c.bf16 %v417_v21, %v417_v21 }
 0x117   : > { %v554_v32 = vadd.f32 %v6793_v55, %v553_v29 }
 0x118   : > { %v6847_v52 = vpack.c.bf16 %v669_v33, %v669_v33  ;;  %v6895_v33 = vpack.c.bf16 %v649_v17, %v649_v17  ;;  %10794 = vst [vmem:[#allocation15_spill] sm:$0xff] %v6902_v28  ;;  %v6913_v31 = vpack.c.bf16 %v437_v38, %v437_v38  ;;  %v427_v17 = vadd.f32 %v6855_v0, %v6798_v58 }
 0x119   : > { %v6841_v34 = vpack.c.bf16 %v554_v32, %v554_v32 }
 0x11a   : > { %v4780_v1 = vunpack.c.l.b16 %v6847_v52  ;;  %10793 = vst [vmem:[#allocation14_spill] sm:$0xff] %v6895_v33 }
 0x11b   : > { %v2339_v49 = vunpack.c.l.b16 %v6841_v34 }
 0x11d   : > { %v670_v50 = vpop.f32.mrf.mxu2  ;;  %v439_v56 = vpop.f32.mrf.mxu0  ;;  %v2340_v59 = vpack.c.b16 %v2339_v49, %v2338_v43  ;;  %v357_v49 = vld [vmem:[%s6592_s21 + $0xe8] sm:$0xff] }
 0x11e   : > { %v671_v54 = vadd.f32 %v6835_v30, %v670_v50  ;;  %v6850_v63 = vpop.f32.mrf.mxu1  ;;  %v440_v8 = vadd.f32 %v6855_v0, %v439_v56  ;;  %v6904_v50 = vpack.c.bf16 %v420_v22, %v420_v22  ;;  %v654_v56 = vadd.f32 %v6835_v30, %v6778_v46 }
 0x11f   : > { %v2345_v5 = vsel %vm1800_vm0, %v2340_v59, 0  ;;  %v422_v59 = vadd.f32 %v6855_v0, %v6780_v47 }
 0x120   : > { %v6858_v2 = vpack.c.bf16 %v671_v54, %v671_v54  ;;  %2354 = vmatpush.bf16.xpose.msrb.mxu2 %v2345_v5  ;;  %v6878_v23 = vpack.c.bf16 %v440_v8, %v440_v8  ;;  %10795 = vst [vmem:[#allocation16_spill] sm:$0xff] %v6904_v50  ;;  %v6907_v54 = vpack.c.bf16 %v537_v25, %v537_v25 }
 0x121   : > { %478 = vmatmul.bf16.gmra.mxu0 %v374_v61  ;;  %595 = vmatmul.bf16.gmra.mxu1 %v374_v61  ;;  %v826_v8 = vsel %vm825_vm1, %v824_v40, %v6883_v24  ;;  %v6939_v26 = vpack.c.bf16 %v654_v56, %v654_v56  ;;  %v6958_v56 = vpack.c.bf16 %v427_v17, %v427_v17 }
 0x122   : > { %10789 = vst [vmem:[#allocation10_spill] sm:$0xff] %v6858_v2  ;;  %v4781_v7 = vunpack.c.l.b16 %v6858_v2  ;;  %712 = vmatmul.bf16.gmra.mxu2 %v374_v61  ;;  %v2363_v29 = vunpack.c.l.b16 %v6878_v23  ;;  %v6915_v61 = vpack.c.bf16 %v425_v44, %v425_v44 }
 0x123   : > { %10796 = vst [vmem:[#allocation17_spill] sm:$0xff] %v6907_v54 }
 0x124   : > { %v6868_v14 = vpack.c.b16 %v4781_v7, %v4780_v1  ;;  %v6917_v1 = vunpack.c.0.s8 %v828_v27  ;;  %v375_v7 = vpack.c.bf16 %v357_v49, %v356_v45  ;;  %10800 = vst [vmem:[#allocation21_spill] sm:$0xff] %v6939_v26  ;;  %v557_v49 = vadd.f32 %v6793_v55, %v6850_v63 }
 0x125   : > { %v673_v16 = vpop.f32.mrf.mxu2  ;;  %v441_v19 = vpop.f32.mrf.mxu0 }
 0x126   : > { %10790 = vst [vmem:[#allocation11_spill] sm:$0xff] %v6868_v14  ;;  %v442_v35 = vadd.f32 %v6855_v0, %v441_v19  ;;  %v6881_v36 = vpop.f32.mrf.mxu1  ;;  %v674_v43 = vadd.f32 %v6835_v30, %v673_v16  ;;  %v659_v16 = vadd.f32 %v6835_v30, %v6796_v57  ;;  %v1465_v19 = vrot.slane %v6847_v52, 4 }
 0x127   : > { %10797 = vst [vmem:[#allocation18_spill] sm:$0xff] %v6917_v1  ;;  %v830_v57 = vperm.slane %v826_v8, %v6917_v1  ;;  %v1150_v27 = vperm.slane %v1146_v9, %v6917_v1  ;;  %v6945_v52 = vpack.c.bf16 %v422_v59, %v422_v59  ;;  %v430_v9 = vadd.f32 %v6855_v0, %v6811_v4 }
 0x128   : > { %v6893_v32 = vpack.c.bf16 %v442_v35, %v442_v35  ;;  %v6925_v46 = vpack.c.bf16 %v674_v43, %v674_v43  ;;  %v937_v35 = vrot.slane %v6913_v31, 4  ;;  %v6951_v43 = vpack.c.bf16 %v659_v16, %v659_v16 }
 0x129   : > { %10801 = vst [vmem:[#allocation22_spill] sm:$0xff] %v6945_v52  ;;  %v1466_v45 = vsel %vm825_vm1, %v1465_v19, %v6895_v33 }
 0x12a   : > { %v2364_v53 = vunpack.c.l.b16 %v6893_v32  ;;  %v4808_v25 = vunpack.c.l.b16 %v6925_v46  ;;  %10802 = vst [vmem:[#allocation23_spill] sm:$0xff] %v6951_v43  ;;  %v938_v59 = vsel %vm825_vm1, %v937_v35, %v6902_v28  ;;  %v1493_v14 = vrot.slane %v6925_v46, 4 }
 0x12b   : > { %v942_v35 = vperm.slane %v938_v59, %v6917_v1 }
 0x12c   : > { %v6919_v5 = vpack.c.b16 %v2364_v53, %v2363_v29 }
 0x12d   : > { %v675_v6 = vpop.f32.mrf.mxu2  ;;  %v444_v12 = vpop.f32.mrf.mxu0 }
 0x12e   : > { %10798 = vst [vmem:[#allocation19_spill] sm:$0xff] %v6919_v5  ;;  %v676_v47 = vadd.f32 %v6835_v30, %v675_v6  ;;  %v445_v21 = vadd.f32 %v6855_v0, %v444_v12  ;;  %v561_v22 = vpop.f32.mrf.mxu1  ;;  %v1159_v12 = vrot.slane %v1150_v27, 4 }
 0x12f   : > { %v562_v44 = vadd.f32 %v6793_v55, %v561_v22 }
 0x130   : > { %v6936_v38 = vpack.c.bf16 %v676_v47, %v676_v47  ;;  %v6943_v58 = vpack.c.bf16 %v445_v21, %v445_v21  ;;  %v839_v47 = vrot.slane %v830_v57, 4 }
 0x131   : > { %v6949_v41 = vpack.c.bf16 %v562_v44, %v562_v44  ;;  %483 = vmatmul.bf16.gmra.mxu0 %v375_v7  ;;  %600 = vmatmul.bf16.gmra.mxu1 %v375_v7 }
 0x132   : > { %10799 = vst [vmem:[#allocation20_spill] sm:$0xff] %v6936_v38  ;;  %v4809_v40 = vunpack.c.l.b16 %v6936_v38  ;;  %v831_v53 = vrot.slane %v6943_v58, 4  ;;  %717 = vmatmul.bf16.gmra.mxu2 %v375_v7  ;;  %v1470_v7 = vperm.slane %v1466_v45, %v6917_v1 }
 0x133   : > { %v1151_v8 = vrot.slane %v6949_v41, 4 }
 0x134   : > { %v6962_v6 = vpack.c.b16 %v4809_v40, %v4808_v25  ;;  %v832_v63 = vsel %vm825_vm1, %v831_v53, %v6915_v61  ;;  %v6975_v25 = vpack.c.bf16 %v557_v49, %v557_v49 }
 0x135   : > { %v678_v16 = vpop.f32.mrf.mxu2  ;;  %v836_v17 = vperm.slane %v832_v63, %v6917_v1  ;;  %v1152_v19 = vsel %vm825_vm1, %v1151_v8, %v6800_v60  ;;  %v446_v22 = vpop.f32.mrf.mxu0  ;;  %v853_v8 = vrot.slane %v6878_v23, 4 }
 0x136   : > { %10803 = vst [vmem:[#allocation24_spill] sm:$0xff] %v6962_v6  ;;  %v679_v21 = vadd.f32 %v6835_v30, %v678_v16  ;;  %v1156_v4 = vperm.slane %v1152_v19, %v6917_v1  ;;  %v447_v44 = vadd.f32 %v6855_v0, %v446_v22  ;;  %v563_v40 = vpop.f32.mrf.mxu1  ;;  %v6989_v19 = vpack.c.bf16 %v430_v9, %v430_v9 }
 0x137   : > { %v837_v53 = vrot.slane %v836_v17, 4  ;;  %v6980_v45 = vsel %vm825_vm1, %v836_v17, %v839_v47  ;;  %v564_v60 = vadd.f32 %v6793_v55, %v563_v40  ;;  %v664_v47 = vadd.f32 %v6835_v30, %v6815_v10  ;;  %v359_v40 = vld [vmem:[%s6592_s21 + $0xf8] sm:$0xff] }
 0x138   : > { %v804_v63 = vpack.c.bf16 %v679_v21, %v679_v21  ;;  %v1157_v16 = vrot.slane %v1156_v4, 4  ;;  %v6985_v49 = vsel %vm825_vm1, %v1156_v4, %v1159_v12  ;;  %v6987_v59 = vpack.c.bf16 %v447_v44, %v447_v44  ;;  %v358_v21 = vld [vmem:[%s6592_s21 + $0xf0] sm:$0xff] }
 0x139   : > { %v6991_v29 = vpack.c.bf16 %v564_v60, %v564_v60  ;;  %v6994_v6 = vsel %vm825_vm1, %v837_v53, %v830_v57  ;;  %v1479_v17 = vrot.slane %v1470_v7, 4  ;;  %v432_v9 = vadd.f32 %v6855_v0, %v6817_v11 }
 0x13a   : > { %v1471_v22 = vrot.slane %v804_v63, 4  ;;  %v943_v23 = vrot.slane %v6987_v59, 4  ;;  %v7002_v12 = vsel %vm825_vm1, %v1157_v16, %v1150_v27  ;;  %v951_v4 = vrot.slane %v942_v35, 4 }
 0x13b   : > { %v1173_v44 = vrot.slane %v6975_v25, 4  ;;  %v854_v10 = vsel %vm825_vm1, %v853_v8, %v6904_v50  ;;  %v2399_v27 = vunpack.c.l.b16 %v6991_v29  ;;  %v376_v28 = vpack.c.bf16 %v359_v40, %v358_v21 }
 0x13c   : > { %v1472_v57 = vsel %vm825_vm1, %v1471_v22, %v6951_v43  ;;  %v944_v60 = vsel %vm825_vm1, %v943_v23, %v6958_v56  ;;  %v2398_v22 = vunpack.c.l.b16 %v6949_v41  ;;  %v4836_v50 = vunpack.c.l.b16 %v804_v63 }
 0x13d   : > { %v1476_v53 = vperm.slane %v1472_v57, %v6917_v1  ;;  %v680_v16 = vpop.f32.mrf.mxu2  ;;  %v948_v11 = vperm.slane %v944_v60, %v6917_v1  ;;  %v449_v5 = vpop.f32.mrf.mxu0  ;;  %v858_v60 = vperm.slane %v854_v10, %v6917_v1 }
 0x13e   : > { %v681_v33 = vadd.f32 %v6835_v30, %v680_v16  ;;  %v450_v57 = vadd.f32 %v6855_v0, %v449_v5  ;;  %v566_v23 = vpop.f32.mrf.mxu1  ;;  %v2400_v40 = vpack.c.b16 %v2399_v27, %v2398_v22  ;;  %v7051_v27 = vpack.c.bf16 %v664_v47, %v664_v47 }
 0x13f   : > { %v1477_v43 = vrot.slane %v1476_v53, 4  ;;  %v7020_v8 = vsel %vm825_vm1, %v1476_v53, %v1479_v17  ;;  %v949_v24 = vrot.slane %v948_v11, 4  ;;  %v7024_v37 = vsel %vm825_vm1, %v948_v11, %v951_v4 }
 0x140   : > { %v7026_v46 = vpack.c.bf16 %v681_v33, %v681_v33  ;;  %v7032_v41 = vpack.c.bf16 %v450_v57, %v450_v57  ;;  %v1174_v17 = vsel %vm825_vm1, %v1173_v44, %v6907_v54  ;;  %v567_v4 = vadd.f32 %v6793_v55, %v566_v23  ;;  %10807 = vst [vmem:[#allocation28_spill] sm:$0xff] %v7051_v27 }
 0x141   : > { %v7030_v21 = vsel %vm825_vm1, %v1477_v43, %v1470_v7  ;;  %v7037_v5 = vsel %vm825_vm1, %v949_v24, %v942_v35  ;;  %488 = vmatmul.bf16.gmra.mxu0 %v376_v28  ;;  %605 = vmatmul.bf16.gmra.mxu1 %v376_v28  ;;  %v2274_v33 = vunpack.c.l.b16 %v6958_v56  ;;  %v2303_v43 = vunpack.c.l.b16 %v6989_v19 }
 0x142   : > { %10804 = vst [vmem:[#allocation25_spill] sm:$0xff] %v7026_v46  ;;  %v4837_v63 = vunpack.c.l.b16 %v7026_v46  ;;  %v735_v7 = vpack.c.bf16 %v432_v9, %v432_v9  ;;  %v859_v10 = vrot.slane %v7032_v41, 4  ;;  %722 = vmatmul.bf16.gmra.mxu2 %v376_v28  ;;  %v1494_v44 = vsel %vm825_vm1, %v1493_v14, %v6939_v26 }
 0x143   : > { %10805 = vst [vmem:[#allocation26_spill] sm:$0xff] %v7030_v21  ;;  %v965_v24 = vrot.slane %v6893_v32, 4  ;;  %v7049_v53 = vpack.c.bf16 %v567_v4, %v567_v4  ;;  %v1178_v16 = vperm.slane %v1174_v17, %v6917_v1  ;;  %v2405_v9 = vsel %vm1800_vm0, %v2400_v40, 0 }
 0x144   : > { %v7047_v35 = vpack.c.b16 %v4837_v63, %v4836_v50  ;;  %v860_v56 = vsel %vm825_vm1, %v859_v10, %v6989_v19  ;;  %v867_v28 = vrot.slane %v858_v60, 4  ;;  %2414 = vmatpush.bf16.xpose.msra.mxu0 %v2405_v9  ;;  %v2304_v57 = vunpack.c.l.b16 %v735_v7 }
 0x145   : > { %v683_v11 = vpop.f32.mrf.mxu2  ;;  %v864_v22 = vperm.slane %v860_v56, %v6917_v1  ;;  %v1179_v14 = vrot.slane %v7049_v53, 4  ;;  %v451_v50 = vpop.f32.mrf.mxu0  ;;  %v1498_v47 = vperm.slane %v1494_v44, %v6917_v1  ;;  %v966_v19 = vsel %vm825_vm1, %v965_v24, %v6945_v52 }
 0x146   : > { %10806 = vst [vmem:[#allocation27_spill] sm:$0xff] %v7047_v35  ;;  %v684_v32 = vadd.f32 %v6835_v30, %v683_v11  ;;  %v452_v23 = vadd.f32 %v6855_v0, %v451_v50  ;;  %v568_v17 = vpop.f32.mrf.mxu1  ;;  %v1187_v10 = vrot.slane %v1178_v16, 4  ;;  %v2333_v44 = vunpack.c.l.b16 %v6872_v18 }
 0x147   : > { %v865_v40 = vrot.slane %v864_v22, 4  ;;  %v7065_v63 = vsel %vm825_vm1, %v864_v22, %v867_v28  ;;  %v1180_v4 = vsel %vm825_vm1, %v1179_v14, %v6819_v13  ;;  %v6448_v50 = vmov 1934713408  }
 0x148   : > { %v1184_v56 = vperm.slane %v1180_v4, %v6917_v1  ;;  %v7070_v9 = vpack.c.bf16 %v684_v32, %v684_v32  ;;  %v7072_v11 = vpack.c.bf16 %v452_v23, %v452_v23  ;;  %v842_v35 = vunpack.c.l.s4 %v6448_v50 }
 0x149   : > { %v569_v24 = vadd.f32 %v6793_v55, %v568_v17  ;;  %v866_v26 = vsel %vm825_vm1, %v865_v40, %v858_v60  ;;  %v970_v28 = vperm.slane %v966_v19, %v6917_v1  ;;  %v2334_v32 = vunpack.c.l.b16 %v6913_v31 }
 0x14a   : > { %v1185_v22 = vrot.slane %v1184_v56, 4  ;;  %v7079_v13 = vsel %vm825_vm1, %v1184_v56, %v1187_v10  ;;  %v1499_v14 = vrot.slane %v7070_v9, 4  ;;  %v1507_v23 = vrot.slane %v1498_v47, 4 }
 0x14b   : > { %v971_v4 = vrot.slane %v7072_v11, 4  ;;  %v7084_v18 = vpack.c.bf16 %v569_v24, %v569_v24  ;;  %v10808_v50 = vunpack.c.l.b16 %v6915_v61  ;;  %v2305_v10 = vpack.c.b16 %v2304_v57, %v2303_v43 }
 0x14c   : > { %v1500_v60 = vsel %vm825_vm1, %v1499_v14, %v7051_v27  ;;  %v1186_v40 = vsel %vm825_vm1, %v1185_v22, %v1178_v16  ;;  %v7091_v56 = vunpack.c.0.s8 %v842_v35  ;;  %v979_v38 = vrot.slane %v970_v28, 4 }
 0x14d   : > { %v2275_v17 = vpack.c.b16 %v2274_v33, %v10808_v50  ;;  %v685_v19 = vpop.f32.mrf.mxu2  ;;  %v1504_v52 = vperm.slane %v1500_v60, %v6917_v1  ;;  %v972_v31 = vsel %vm825_vm1, %v971_v4, %v735_v7  ;;  %v454_v54 = vpop.f32.mrf.mxu0  ;;  %v2429_v61 = vunpack.c.l.b16 %v7084_v18 }
 0x14e   : > { %10809 = vst [vmem:[#allocation29_spill] sm:$0xff] %v7091_v56  ;;  %v976_v24 = vperm.slane %v972_v31, %v6917_v1  ;;  %v686_v33 = vadd.f32 %v6835_v30, %v685_v19  ;;  %v571_v50 = vpop.f32.mrf.mxu1  ;;  %v2335_v14 = vpack.c.b16 %v2334_v32, %v2333_v44  ;;  %v7103_v43 = vperm.slane %v7002_v12, %v7091_v56 }
 0x14f   : > { %v1505_v27 = vrot.slane %v1504_v52, 4  ;;  %v7099_v16 = vsel %vm825_vm1, %v1504_v52, %v1507_v23  ;;  %v7107_v7 = vperm.slane %v7024_v37, %v7091_v56  ;;  %v2428_v35 = vunpack.c.l.b16 %v7049_v53 }
 0x150   : > { %v977_v57 = vrot.slane %v976_v24, 4  ;;  %v980_v22 = vsel %vm825_vm1, %v976_v24, %v979_v38  ;;  %v572_v52 = vadd.f32 %v6793_v55, %v571_v50  ;;  %v7120_v12 = vperm.slane %v866_v26, %v7091_v56 }
 0x151   : > { %v7112_v4 = vsel %vm825_vm1, %v1505_v27, %v1498_v47  ;;  %v7115_v44 = vperm.slane %v980_v22, %v7091_v56  ;;  %6010 = vmatmul.msk.bf16.vlgmr.msrb.gmra.mxu0 %vm1800_vm0, %v2275_v17  ;;  %v4864_v37 = vunpack.c.l.b16 %v7070_v9  ;;  %v7126_v32 = vpack.c.bf16 %v686_v33, %v686_v33  ;;  %6011 = vmatmul.msk.bf16.vlgmr.msrb.gmra.mxu1 %vm1800_vm0, %v2305_v10 }
 0x152   : > { %10810 = vst [vmem:[#allocation30_spill] sm:$0xff] %v7112_v4  ;;  %v7124_v53 = vsel %vm825_vm1, %v977_v57, %v970_v28  ;;  %v2430_v38 = vpack.c.b16 %v2429_v61, %v2428_v35  ;;  %6012 = vmatmul.msk.bf16.vlgmr.msrb.gmra.mxu2 %vm1800_vm0, %v2335_v14  ;;  %v7132_v27 = vadd.f32 %v6793_v55, %v6768_v39  ;;  %v1169_v9 = vrot.slane %v7103_v43, 4 }
 0x153   : > { %10811 = vst [vmem:[#allocation31_spill] sm:$0xff] %v7126_v32  ;;  %v559_v28 = vadd.f32 %v6793_v55, %v6881_v36  ;;  %v2393_v23 = vunpack.c.l.b16 %v6943_v58  ;;  %v4865_v17 = vunpack.c.l.b16 %v7126_v32  ;;  %v7146_v39 = vperm.slane %v6994_v6, %v7091_v56 }
 0x154   : > { %v2394_v19 = vunpack.c.l.b16 %v6987_v59  ;;  %v1263_v10 = vrot.slane %v6991_v29, 4  ;;  %v2435_v31 = vsel %vm1800_vm0, %v2430_v38, 0  ;;  %v7152_v61 = vperm.slane %v1186_v40, %v7091_v56 }
 0x155   : > { %v7142_v60 = vpop.f32.mrf.mxu2  ;;  %v456_v24 = vpop.f32.mrf.mxu0  ;;  %v7154_v36 = vpack.c.b16 %v4865_v17, %v4864_v37  ;;  %v7156_v58 = vpack.c.bf16 %v572_v52, %v572_v52  ;;  %2444 = vmatpush.bf16.xpose.msra.mxu1 %v2435_v31  ;;  %v1372_v50 = vshrl.u32 %v7103_v43, 16  ;;  %v877_v14 = vrot.slane %v7120_v12, 4 }
 0x156   : > { %v573_v33 = vpop.f32.mrf.mxu1  ;;  %v7166_v40 = vsel %vm825_vm1, 0, %v1169_v9  ;;  %v455_v35 = vadd.f32 %v6855_v0, %v454_v54  ;;  %v457_v57 = vadd.f32 %v6855_v0, %v456_v24  ;;  %v1373_v22 = vshrl.u32 %v7152_v61, 16 }
 0x157   : > { %10812 = vst [vmem:[#allocation32_spill] sm:$0xff] %v7154_v36  ;;  %v574_v59 = vadd.f32 %v6793_v55, %v573_v33  ;;  %v1197_v52 = vrot.slane %v7152_v61, 4  ;;  %v2423_v37 = vunpack.c.l.b16 %v7032_v41  ;;  %v849_v17 = vrot.slane %v7146_v39, 4 }
 0x158   : > { %10813 = vst [vmem:[#allocation33_spill] sm:$0xff] %v7156_v58  ;;  %v1052_v31 = vshrl.u32 %v7146_v39, 16  ;;  %v2424_v33 = vunpack.c.l.b16 %v7072_v11  ;;  %v2458_v9 = vunpack.c.l.b16 %v7156_v58  ;;  %v7179_v26 = vpack.i.b16 %v1373_v22, %v1372_v50 }
 0x159   : > { %v7173_v38 = vpack.c.bf16 %v574_v59, %v574_v59  ;;  %v1378_v54 = vshrl.u32 %v7166_v40, 16  ;;  %v7184_v29 = vsel %vm825_vm1, 0, %v1197_v52  ;;  %v1053_v41 = vshrl.u32 %v7120_v12, 16 }
 0x15a   : > { %v7188_v59 = vsel %vm825_vm1, 0, %v877_v14  ;;  %v7190_v6 = vpack.c.bf16 %v455_v35, %v455_v35  ;;  %v7192_v47 = vpack.c.bf16 %v457_v57, %v457_v57  ;;  %v1379_v22 = vshrl.u32 %v7184_v29, 16 }
 0x15b   : > { %10814 = vst [vmem:[#allocation34_spill] sm:$0xff] %v7173_v38  ;;  %v2459_v24 = vunpack.c.l.b16 %v7173_v38  ;;  %v7201_v52 = vperm.slane %v6980_v45, %v7091_v56  ;;  %v7205_v14 = vpack.i.b16 %v1053_v41, %v1052_v31  ;;  %v7208_v35 = vsel %vm825_vm1, 0, %v849_v17 }
 0x15c   : > { %10815 = vst [vmem:[#allocation35_spill] sm:$0xff] %v7190_v6  ;;  %v7212_v57 = vperm.slane %v7065_v63, %v7091_v56  ;;  %v7216_v50 = vpack.i.b16 %v1379_v22, %v1378_v54  ;;  %v7222_v4 = vperm.slane %v6985_v49, %v7091_v56  ;;  %v2395_v31 = vpack.c.b16 %v2394_v19, %v2393_v23 }
 0x15d   : > { %10816 = vst [vmem:[#allocation36_spill] sm:$0xff] %v7192_v47  ;;  %v7194_v11 = vpop.f32.mrf.mxu2  ;;  %v7203_v36 = vpop.f32.mrf.mxu0  ;;  %v2460_v2 = vpack.c.b16 %v2459_v24, %v2458_v9  ;;  %v1264_v17 = vsel %vm825_vm1, %v1263_v10, %v6803_v62  ;;  %v2425_v9 = vpack.c.b16 %v2424_v33, %v2423_v37  ;;  %v1291_v63 = vrot.slane %v7084_v18, 4 }
 0x15e   : > { %10817 = vst [vmem:[#allocation37_spill] sm:$0xff] %v7194_v11  ;;  %v7214_v11 = vpop.f32.mrf.mxu1  ;;  %v2453_v41 = vunpack.c.l.b16 %v7190_v6  ;;  %v2454_v54 = vunpack.c.l.b16 %v7192_v47  ;;  %v7232_v22 = vperm.slane %v7079_v13, %v7091_v56  ;;  %v7236_v49 = vpack.c.bf16 %v7132_v27, %v7132_v27 }
 0x15f   : > { %v2465_v24 = vsel %vm1800_vm0, %v2460_v2, 0  ;;  %v7238_v23 = vpack.c.bf16 %v559_v28, %v559_v28  ;;  %v1384_v2 = vshrl.u32 %v7222_v4, 16  ;;  %v539_v27 = vadd.f32 %v6793_v55, %v6782_v48 }
 0x160   : > { %2474 = vmatpush.bf16.xpose.msra.mxu2 %v2465_v24  ;;  %10818 = vst [vmem:[#allocation38_spill] sm:$0xff] %v7236_v49  ;;  %v1385_v18 = vshrl.u32 %v7232_v22, 16  ;;  %v1268_v28 = vperm.slane %v1264_v17, %v6917_v1  ;;  %v1171_v19 = vrot.slane %v7222_v4, 4  ;;  %v1199_v10 = vrot.slane %v7232_v22, 4 }
 0x161   : > { %6014 = vmatmul.msk.bf16.vlgmr.msra.gmra.mxu0 %vm1800_vm0, %v2395_v31  ;;  %6015 = vmatmul.msk.bf16.vlgmr.msra.gmra.mxu1 %vm1800_vm0, %v2425_v9  ;;  %v10819_v37 = vrot.slane %v6841_v34, 4  ;;  %v1292_v31 = vsel %vm825_vm1, %v1291_v63, %v6822_v15  ;;  %v2455_v9 = vpack.c.b16 %v2454_v54, %v2453_v41  ;;  %v1058_v17 = vshrl.u32 %v7208_v35, 16 }
 0x162   : > { %v7261_v13 = vpack.i.b16 %v1385_v18, %v1384_v2  ;;  %v1059_v62 = vshrl.u32 %v7188_v59, 16  ;;  %v7268_v45 = vsel %vm825_vm1, 0, %v1171_v19  ;;  %v7271_v34 = vsel %vm825_vm1, 0, %v1199_v10 }
 0x163   : > { %v1258_v33 = vsel %vm825_vm1, %v10819_v37, %v7236_v49  ;;  %10821 = vst [vmem:[#allocation40_spill] sm:$0xff] %v7268_v45  ;;  %v1285_v37 = vrot.slane %v7238_v23, 4  ;;  %v1064_v41 = vshrl.u32 %v7201_v52, 16  ;;  %v1065_v54 = vshrl.u32 %v7212_v57, 16 }
 0x164   : > { %10820 = vst [vmem:[#allocation39_spill] sm:$0xff] %v7261_v13  ;;  %v1269_v2 = vrot.slane %v1268_v28, 4  ;;  %v7281_v18 = vperm.slane %v1292_v31, %v6917_v1  ;;  %v7284_v19 = vpack.i.b16 %v1059_v62, %v1058_v17  ;;  %v7286_v10 = vpack.c.bf16 %v539_v27, %v539_v27 }
 0x165   : > { %v7259_v24 = vpop.f32.mrf.mxu2  ;;  %v7263_v48 = vpop.f32.mrf.mxu0  ;;  %10822 = vst [vmem:[#allocation41_spill] sm:$0xff] %v7271_v34  ;;  %v7288_v49 = vpack.i.b16 %v1065_v54, %v1064_v41  ;;  %v1390_v21 = vshrl.u32 %v7268_v45, 16  ;;  %v1391_v63 = vshrl.u32 %v7271_v34, 16  ;;  %v1262_v38 = vperm.slane %v1258_v33, %v6917_v1 }
 0x166   : > { %v7274_v15 = vpop.f32.mrf.mxu1  ;;  %10823 = vst [vmem:[#allocation42_spill] sm:$0xff] %v7284_v19  ;;  %v851_v47 = vrot.slane %v7201_v52, 4  ;;  %v1286_v31 = vsel %vm825_vm1, %v1285_v37, %v7286_v10  ;;  %v879_v62 = vrot.slane %v7212_v57, 4  ;;  %v1297_v27 = vrot.slane %v7281_v18, 4 }
 0x167   : > { %6016 = vmatmul.msk.bf16.vlgmr.msra.gmra.mxu2 %vm1800_vm0, %v2455_v9  ;;  %10824 = vst [vmem:[#allocation43_spill] sm:$0xff] %v7286_v10  ;;  %v7296_v58 = vpack.i.b16 %v1391_v63, %v1390_v21  ;;  %v1270_v17 = vsel %vm825_vm1, %v1269_v2, %v1262_v38  ;;  %v1290_v54 = vperm.slane %v1286_v31, %v6917_v1 }
 0x168   : > { %10825 = vst [vmem:[#allocation44_spill] sm:$0xff] %v7288_v49  ;;  %v7301_v9 = vsel %vm825_vm1, 0, %v851_v47  ;;  %v7307_v33 = vsel %vm825_vm1, 0, %v879_v62  ;;  %v7313_v37 = vperm.slane %v1270_v17, %v7091_v56  ;;  %v7319_v2 = vperm.slane %v7037_v5, %v7091_v56 }
 0x169   : > { %10826 = vst [vmem:[#allocation45_spill] sm:$0xff] %v7296_v58  ;;  %v1071_v63 = vshrl.u32 %v7307_v33, 16  ;;  %v1070_v10 = vshrl.u32 %v7301_v9, 16  ;;  %v7323_v62 = vperm.slane %v7124_v53, %v7091_v56  ;;  %v1298_v31 = vsel %vm825_vm1, %v1297_v27, %v1290_v54 }
 0x16a   : > { %10827 = vst [vmem:[#allocation46_spill] sm:$0xff] %v7301_v9  ;;  %v1271_v58 = vrot.slane %v1262_v38, 4  ;;  %v7327_v21 = vperm.slane %v1298_v31, %v7091_v56  ;;  %v1281_v34 = vrot.slane %v7313_v37, 4  ;;  %v1396_v5 = vshrl.u32 %v7313_v37, 16 }
 0x16b   : > { %10829 = vst [vmem:[#allocation48_spill] sm:$0xff] %v7307_v33  ;;  %v7329_v17 = vpack.i.b16 %v1071_v63, %v1070_v10  ;;  %v961_v27 = vrot.slane %v7319_v2, 4  ;;  %v1076_v31 = vshrl.u32 %v7319_v2, 16  ;;  %v1077_v1 = vshrl.u32 %v7323_v62, 16 }
 0x16c   : > { %10830 = vst [vmem:[#allocation49_spill] sm:$0xff] %v7313_v37  ;;  %v1272_v6 = vsel %vm825_vm1, %v1268_v28, %v1271_v58  ;;  %v1397_v9 = vshrl.u32 %v7327_v21, 16  ;;  %v1309_v63 = vrot.slane %v7327_v21, 4  ;;  %v989_v37 = vrot.slane %v7323_v62, 4 }
 0x16d   : > { %v7304_v41 = vpop.f32.mrf.mxu2  ;;  %v464_v45 = vpop.f32.mrf.mxu0  ;;  %10831 = vst [vmem:[#allocation50_spill] sm:$0xff] %v7319_v2  ;;  %v1299_v58 = vrot.slane %v1290_v54, 4 }
 0x16e   : > { %10828 = vst [vmem:[#allocation47_spill] sm:$0xff] %v7304_v41  ;;  %v581_v47 = vpop.f32.mrf.mxu1  ;;  %v465_v38 = vadd.f32 %v6855_v0, %v464_v45  ;;  %v7354_v49 = vsel %vm825_vm1, 0, %v1309_v63  ;;  %v7359_v2 = vsel %vm825_vm1, 0, %v989_v37  ;;  %v7374_v37 = vperm.slane %v1272_v6, %v7091_v56 }
 0x16f   : > { %10832 = vst [vmem:[#allocation51_spill] sm:$0xff] %v7327_v21  ;;  %v582_v53 = vadd.f32 %v6793_v55, %v581_v47  ;;  %v7347_v47 = vpack.i.b16 %v1397_v9, %v1396_v5  ;;  %v7356_v21 = vpack.i.b16 %v1077_v1, %v1076_v31  ;;  %v1403_v5 = vshrl.u32 %v7354_v49, 16 }
 0x170   : > { %10833 = vst [vmem:[#allocation52_spill] sm:$0xff] %v7329_v17  ;;  %v7350_v17 = vsel %vm825_vm1, 0, %v1281_v34  ;;  %v7367_v34 = vsel %vm825_vm1, 0, %v961_v27  ;;  %v1089_v27 = vshrl.u32 %v7115_v44, 16 }
 0x171   : > { %10834 = vst [vmem:[#allocation53_spill] sm:$0xff] %v7347_v47  ;;  %v7361_v41 = vpack.c.bf16 %v582_v53, %v582_v53  ;;  %v1402_v45 = vshrl.u32 %v7350_v17, 16  ;;  %v2369_v47 = vunpack.c.l.b16 %v7238_v23 }
 0x172   : > { %10835 = vst [vmem:[#allocation54_spill] sm:$0xff] %v7350_v17  ;;  %v7390_v17 = vpack.c.bf16 %v465_v38, %v465_v38  ;;  %v1082_v38 = vshrl.u32 %v7367_v34, 16 }
 0x173   : > { %10836 = vst [vmem:[#allocation55_spill] sm:$0xff] %v7354_v49  ;;  %v7382_v31 = vpack.i.b16 %v1403_v5, %v1402_v45  ;;  %v2518_v1 = vunpack.c.l.b16 %v7361_v41 }
 0x174   : > { %10837 = vst [vmem:[#allocation56_spill] sm:$0xff] %v7356_v21  ;;  %v1088_v21 = vshrl.u32 %v7107_v7, 16 }
 0x175   : > { %v7341_v10 = vpop.f32.mrf.mxu2  ;;  %v466_v28 = vpop.f32.mrf.mxu0  ;;  %10838 = vst [vmem:[#allocation57_spill] sm:$0xff] %v7359_v2 }
 0x176   : > { %v583_v33 = vpop.f32.mrf.mxu1  ;;  %10839 = vst [vmem:[#allocation58_spill] sm:$0xff] %v7361_v41  ;;  %v467_v53 = vadd.f32 %v6855_v0, %v466_v28  ;;  %v1283_v41 = vrot.slane %v7374_v37, 4 }
 0x177   : > { %v584_v54 = vadd.f32 %v6793_v55, %v583_v33  ;;  %10840 = vst [vmem:[#allocation59_spill] sm:$0xff] %v7374_v37  ;;  %v1300_v33 = vsel %vm825_vm1, %v7281_v18, %v1299_v58  ;;  %v1408_v58 = vshrl.u32 %v7374_v37, 16  ;;  %v7406_v18 = vpack.i.b16 %v1089_v27, %v1088_v21 }
 0x178   : > { %10842 = vst [vmem:[#allocation61_spill] sm:$0xff] %v7382_v31  ;;  %v7385_v9 = vperm.slane %v1300_v33, %v7091_v56  ;;  %v7398_v45 = vpack.c.bf16 %v467_v53, %v467_v53  ;;  %v1083_v33 = vshrl.u32 %v7359_v2, 16  ;;  %v963_v53 = vrot.slane %v7107_v7, 4 }
 0x179   : > { %v7377_v63 = vpack.c.bf16 %v584_v54, %v584_v54  ;;  %10843 = vst [vmem:[#allocation62_spill] sm:$0xff] %v7390_v17  ;;  %v7415_v2 = vsel %vm825_vm1, 0, %v1283_v41  ;;  %v2513_v21 = vunpack.c.l.b16 %v7390_v17 }
 0x17a   : > { %v1409_v54 = vshrl.u32 %v7385_v9, 16  ;;  %10845 = vst [vmem:[#allocation64_spill] sm:$0xff] %v7398_v45  ;;  %v7412_v37 = vpack.i.b16 %v1083_v33, %v1082_v38  ;;  %v2514_v27 = vunpack.c.l.b16 %v7398_v45 }
 0x17b   : > { %10841 = vst [vmem:[#allocation60_spill] sm:$0xff] %v7377_v63  ;;  %v2519_v6 = vunpack.c.l.b16 %v7377_v63 }
 0x17c   : > { %v7403_v49 = vpack.i.b16 %v1409_v54, %v1408_v58  ;;  %10847 = vst [vmem:[#allocation66_spill] sm:$0xff] %v7406_v18  ;;  %v2368_v54 = vunpack.c.l.b16 %v6975_v25  ;;  %v2515_v45 = vpack.c.b16 %v2514_v27, %v2513_v21  ;;  %v10896_v13 = vld [vmem:[#allocation57_spill] sm:$0xff] }
 0x17d   : > { %v7392_v28 = vpop.f32.mrf.mxu2  ;;  %v2520_v5 = vpack.c.b16 %v2519_v6, %v2518_v1  ;;  %v991_v6 = vrot.slane %v7115_v44, 4  ;;  %10848 = vst [vmem:[#allocation67_spill] sm:$0xff] %v7412_v37 }
 0x17e   : > { %10844 = vst [vmem:[#allocation63_spill] sm:$0xff] %v7392_v28  ;;  %v469_v31 = vpop.f32.mrf.mxu0  ;;  %v586_v63 = vpop.f32.mrf.mxu1  ;;  %v1311_v28 = vrot.slane %v7385_v9, 4  ;;  %v7436_v17 = vpack.c.b16 %v2369_v47, %v2368_v54 }
 0x17f   : > { %10846 = vst [vmem:[#allocation65_spill] sm:$0xff] %v7403_v49  ;;  %v2525_v1 = vsel %vm1800_vm0, %v2520_v5, 0  ;;  %v1414_v5 = vshrl.u32 %v7415_v2, 16  ;;  %v587_v38 = vadd.f32 %v6793_v55, %v586_v63  ;;  %v10903_v19 = vld [vmem:[#allocation61_spill] sm:$0xff] }
 0x180   : > { %2534 = vmatpush.bf16.xpose.msrb.mxu0 %v2525_v1  ;;  %v7418_v58 = vsel %vm825_vm1, 0, %v1311_v28  ;;  %v7431_v28 = vsel %vm825_vm1, 0, %v963_v53  ;;  %v7434_v1 = vsel %vm825_vm1, 0, %v991_v6  ;;  %10851 = vst [vmem:[#allocation70_spill] sm:$0xff] %v7436_v17  ;;  %v470_v6 = vadd.f32 %v6855_v0, %v469_v31 }
 0x181   : > { %v1415_v33 = vshrl.u32 %v7418_v58, 16  ;;  %10850 = vst [vmem:[#allocation69_spill] sm:$0xff] %v7431_v28  ;;  %v1094_v18 = vshrl.u32 %v7431_v28, 16  ;;  %v1095_v63 = vshrl.u32 %v7434_v1, 16 }
 0x182   : > { %v7456_v17 = vpack.c.bf16 %v470_v6, %v470_v6 }
 0x183   : > { %v7428_v41 = vpack.i.b16 %v1415_v33, %v1414_v5  ;;  %v7448_v47 = vpack.i.b16 %v1095_v63, %v1094_v18 }
 0x184   : > { %10855 = vst [vmem:[#allocation74_spill] sm:$0xff] %v7456_v17  ;;  %v2543_v31 = vunpack.c.l.b16 %v7456_v17 }
 0x185   : > { %10849 = vst [vmem:[#allocation68_spill] sm:$0xff] %v7428_v41  ;;  %v7438_v23 = vpop.f32.mrf.mxu2  ;;  %v7444_v41 = vpack.c.bf16 %v587_v38, %v587_v38 }
 0x186   : > { %v471_v5 = vpop.f32.mrf.mxu0  ;;  %v588_v33 = vpop.f32.mrf.mxu1  ;;  %10853 = vst [vmem:[#allocation72_spill] sm:$0xff] %v7448_v47 }
 0x187   : > { %10852 = vst [vmem:[#allocation71_spill] sm:$0xff] %v7444_v41  ;;  %v589_v53 = vadd.f32 %v6793_v55, %v588_v33  ;;  %6018 = vmatmul.msk.bf16.vlgmr.msrb.gmra.mxu0 %vm1800_vm0, %v2515_v45  ;;  %v472_v21 = vadd.f32 %v6855_v0, %v471_v5  ;;  %v2548_v54 = vunpack.c.l.b16 %v7444_v41  ;;  %v7468_v33 = vld [vmem:[%s10585_s4] ss:$0 sm:$0xff] }
 0x189   : > { %v7452_v27 = vpack.c.bf16 %v589_v53, %v589_v53  ;;  %v7458_v38 = vpack.c.bf16 %v472_v21, %v472_v21 }
 0x18b   : > { %10854 = vst [vmem:[#allocation73_spill] sm:$0xff] %v7452_v27  ;;  %v2549_v25 = vunpack.c.l.b16 %v7452_v27  ;;  %v2544_v5 = vunpack.c.l.b16 %v7458_v38 }
 0x18c   : > { %10856 = vst [vmem:[#allocation75_spill] sm:$0xff] %v7458_v38 }
 0x18d   : > { %v7460_v28 = vpop.f32.mrf.mxu2  ;;  %v2550_v55 = vpack.c.b16 %v2549_v25, %v2548_v54  ;;  %v2545_v6 = vpack.c.b16 %v2544_v5, %v2543_v31 }
 0x18e   : > { %10857 = vst [vmem:[#allocation76_spill] sm:$0xff] %v7460_v28  ;;  %v474_v45 = vpop.f32.mrf.mxu0  ;;  %v591_v18 = vpop.f32.mrf.mxu1 }
 0x18f   : > { %v2555_v63 = vsel %vm1800_vm0, %v2550_v55, 0  ;;  %v592_v53 = vadd.f32 %v7468_v33, %v591_v18  ;;  %v666_v18 = vadd.f32 %v6835_v30, %v6828_v20  ;;  %v475_v5 = vadd.f32 %v6855_v0, %v474_v45 }
 0x190   : > { %2564 = vmatpush.bf16.xpose.msrb.mxu1 %v2555_v63  ;;  %v661_v63 = vadd.f32 %v6835_v30, %v6809_v3  ;;  %v7492_v3 = vadd.f32 %v6835_v30, %v6786_v51  ;;  %v7507_v51 = vperm.slane %v7020_v8, %v7091_v56  ;;  %v460_v8 = vadd.f32 %v6855_v0, %v7203_v36 }
 0x191   : > { %v7473_v55 = vpack.c.bf16 %v592_v53, %v592_v53  ;;  %v7488_v53 = vadd.f32 %v6835_v30, %v6772_v42  ;;  %v10867_v36 = vpack.i.b16 %v7152_v61, %v7103_v43  ;;  %v462_v43 = vadd.f32 %v6855_v0, %v7263_v48 }
 0x192   : > { %10859 = vst [vmem:[#allocation78_spill] sm:$0xff] %v7492_v3  ;;  %v579_v61 = vadd.f32 %v7468_v33, %v7274_v15  ;;  %v10873_v15 = vpack.i.b16 %v7232_v22, %v7222_v4  ;;  %v10882_v4 = vld [vmem:[#allocation46_spill] sm:$0xff] }
 0x193   : > { %10858 = vst [vmem:[#allocation77_spill] sm:$0xff] %v7488_v53  ;;  %v7503_v53 = vpack.c.bf16 %v666_v18, %v666_v18 }
 0x194   : > { %10862 = vst [vmem:[#allocation81_spill] sm:$0xff] %v7507_v51 }
 0x195   : > { %v708_v21 = vpop.f32.mrf.mxu2  ;;  %10861 = vst [vmem:[#allocation80_spill] sm:$0xff] %v7503_v53 }
 0x196   : > { %v476_v47 = vpop.f32.mrf.mxu0  ;;  %v593_v25 = vpop.f32.mrf.mxu1  ;;  %v709_v38 = vadd.f32 %v6835_v30, %v708_v21  ;;  %v7494_v21 = vpack.c.bf16 %v661_v63, %v661_v63  ;;  %v7560_v63 = vpack.c.bf16 %v460_v8, %v460_v8 }
 0x197   : > { %v594_v54 = vadd.f32 %v7468_v33, %v593_v25  ;;  %6019 = vmatmul.msk.bf16.vlgmr.msrb.gmra.mxu1 %vm1800_vm0, %v2545_v6  ;;  %v477_v41 = vadd.f32 %v6855_v0, %v476_v47  ;;  %v2578_v6 = vunpack.c.l.b16 %v7473_v55  ;;  %v689_v47 = vadd.f32 %v6835_v30, %v7142_v60 }
 0x198   : > { %10860 = vst [vmem:[#allocation79_spill] sm:$0xff] %v7494_v21  ;;  %v7498_v25 = vpack.c.bf16 %v709_v38, %v709_v38  ;;  %v7512_v60 = vperm.slane %v7099_v16, %v7091_v56  ;;  %v7514_v38 = vpack.c.bf16 %v475_v5, %v475_v5  ;;  %v10866_v16 = vpack.i.b16 %v7120_v12, %v7146_v39  ;;  %v10891_v21 = vld [vmem:[#allocation53_spill] sm:$0xff] }
 0x199   : > { %v7477_v27 = vpack.c.bf16 %v594_v54, %v594_v54  ;;  %v7500_v54 = vpack.c.bf16 %v477_v41, %v477_v41  ;;  %v577_v5 = vadd.f32 %v7468_v33, %v7214_v11  ;;  %v10868_v39 = vpack.i.b16 %v7184_v29, %v7166_v40  ;;  %v7550_v11 = vld [vmem:[%s10587_s6] ss:$0 sm:$0xff]  ;;  %10870 = vst [vmem:[#allocation86_spill] sm:$0xff] %v7560_v63 }
 0x19a   : > { %10863 = vst [vmem:[#allocation82_spill] sm:$0xff] %v7512_v60  ;;  %v5004_v41 = vunpack.c.l.b16 %v7498_v25  ;;  %v10871_v12 = vpack.i.b16 %v7188_v59, %v7208_v35  ;;  %v699_v59 = vadd.f32 %v7550_v11, %v7341_v10  ;;  %v10878_v10 = vld [vmem:[#allocation47_spill] sm:$0xff] }
 0x19b   : > { %v2579_v31 = vunpack.c.l.b16 %v7477_v27 }
 0x19d   : > { %v710_v20 = vpop.f32.mrf.mxu2  ;;  %v2580_v42 = vpack.c.b16 %v2579_v31, %v2578_v6  ;;  %v7521_v6 = vpack.c.bf16 %v689_v47, %v689_v47 }
 0x19e   : > { %v711_v45 = vadd.f32 %v6835_v30, %v710_v20  ;;  %v479_v17 = vpop.f32.mrf.mxu0  ;;  %v596_v28 = vpop.f32.mrf.mxu1  ;;  %v7528_v20 = vunpack.c.l.b16 %v10866_v16  ;;  %v7545_v16 = vunpack.c.l.b16 %v10868_v39 }
 0x19f   : > { %v2585_v31 = vsel %vm1800_vm0, %v2580_v42, 0  ;;  %10865 = vst [vmem:[#allocation84_spill] sm:$0xff] %v7521_v6  ;;  %v2574_v42 = vunpack.c.l.b16 %v7500_v54  ;;  %v480_v47 = vadd.f32 %v6855_v0, %v479_v17  ;;  %v694_v17 = vadd.f32 %v7550_v11, %v7259_v24 }
 0x1a0   : > { %v7517_v30 = vpack.c.bf16 %v711_v45, %v711_v45  ;;  %2594 = vmatpush.bf16.xpose.msrb.mxu2 %v2585_v31  ;;  %v2573_v45 = vunpack.c.l.b16 %v7514_v38  ;;  %v7539_v31 = vunpack.c.l.b16 %v10867_v36  ;;  %v7569_v24 = vpack.c.bf16 %v577_v5, %v577_v5  ;;  %v7590_v5 = vld [vmem:[%s10583_s2] ss:$0 sm:$0xff] }
 0x1a1   : > { %v7585_v35 = vpack.c.bf16 %v480_v47, %v480_v47  ;;  %v7594_v22 = vpack.c.bf16 %v694_v17, %v694_v17  ;;  %v7604_v47 = vadd.f32 %v7550_v11, %v10878_v10  ;;  %v597_v17 = vadd.f32 %v7468_v33, %v596_v28  ;;  %v10889_v28 = vld [vmem:[#allocation50_spill] sm:$0xff] }
 0x1a2   : > { %10864 = vst [vmem:[#allocation83_spill] sm:$0xff] %v7517_v30  ;;  %v5005_v18 = vunpack.c.l.b16 %v7517_v30  ;;  %v7567_v30 = vunpack.c.l.b16 %v10871_v12  ;;  %v2575_v0 = vpack.c.b16 %v2574_v42, %v2573_v45  ;;  %v7596_v42 = vpack.c.bf16 %v462_v43, %v462_v43 }
 0x1a3   : > { %10872 = vst [vmem:[#allocation87_spill] sm:$0xff] %v7569_v24  ;;  %v2603_v12 = vunpack.c.l.b16 %v7585_v35 }
 0x1a4   : > { %v7558_v36 = vpack.c.b16 %v5005_v18, %v5004_v41  ;;  %v7576_v41 = vunpack.c.l.b16 %v10873_v15  ;;  %v10874_v18 = vpack.i.b16 %v7212_v57, %v7201_v52  ;;  %10875 = vst [vmem:[#allocation88_spill] sm:$0xff] %v7594_v22  ;;  %v7598_v52 = vpack.c.bf16 %v579_v61, %v579_v61  ;;  %v10881_v61 = vld [vmem:[#allocation48_spill] sm:$0xff] }
 0x1a5   : > { %v713_v29 = vpop.f32.mrf.mxu2  ;;  %10876 = vst [vmem:[#allocation89_spill] sm:$0xff] %v7596_v42  ;;  %v10883_v40 = vpack.i.b16 %v10881_v61, %v10882_v4  ;;  %v10893_v61 = vld [vmem:[#allocation54_spill] sm:$0xff]  ;;  %v10897_v57 = vpack.i.b16 %v10896_v13, %v7367_v34  ;;  %v10904_v4 = vld [vmem:[#allocation63_spill] sm:$0xff] }
 0x1a6   : > { %10869 = vst [vmem:[#allocation85_spill] sm:$0xff] %v7558_v36  ;;  %v481_v48 = vpop.f32.mrf.mxu0  ;;  %v7571_v32 = vpop.f32.mrf.mxu1  ;;  %v7581_v8 = vunpack.c.l.b16 %v10874_v18  ;;  %v714_v43 = vadd.f32 %v7550_v11, %v713_v29  ;;  %v7618_v36 = vpack.c.bf16 %v699_v59, %v699_v59  ;;  %v10890_v18 = vpack.i.b16 %v7323_v62, %v10889_v28  ;;  %v10895_v59 = vld [vmem:[#allocation56_spill] sm:$0xff] }
 0x1a7   : > { %v482_v45 = vadd.f32 %v7590_v5, %v481_v48  ;;  %10877 = vst [vmem:[#allocation90_spill] sm:$0xff] %v7598_v52  ;;  %6020 = vmatmul.msk.bf16.vlgmr.msrb.gmra.mxu2 %vm1800_vm0, %v2575_v0  ;;  %v10880_v48 = vld [vmem:[#allocation44_spill] sm:$0xff]  ;;  %v7615_v0 = vunpack.c.l.b16 %v10883_v40  ;;  %v10892_v40 = vld [vmem:[#allocation55_spill] sm:$0xff]  ;;  %v1201_v62 = vrot.slane %v7473_v55, 4  ;;  %v10900_v28 = vpack.i.b16 %v7115_v44, %v7107_v7 }
 0x1a8   : > { %10879 = vst [vmem:[#allocation47_spill] sm:$0xff] %v7604_v47  ;;  %v10886_v47 = vld [vmem:[#allocation51_spill] sm:$0xff]  ;;  %v7629_v29 = vunpack.c.l.b16 %v10890_v18  ;;  %v10894_v3 = vpack.i.b16 %v10892_v40, %v10893_v61  ;;  %v7654_v61 = vpack.c.bf16 %v714_v43, %v714_v43  ;;  %v7660_v55 = vadd.f32 %v7550_v11, %v10904_v4 }
 0x1a9   : > { %v7607_v15 = vpack.c.bf16 %v482_v45, %v482_v45  ;;  %10885 = vst [vmem:[#allocation44_spill] sm:$0xff] %v7618_v36  ;;  %v10887_v45 = vld [vmem:[#allocation49_spill] sm:$0xff]  ;;  %v7650_v40 = vunpack.c.l.b16 %v10900_v28  ;;  %v10906_v7 = vld [vmem:[#allocation59_spill] sm:$0xff]  ;;  %v993_v43 = vrot.slane %v7500_v54, 4 }
 0x1aa   : > { %v10888_v53 = vpack.i.b16 %v10886_v47, %v10887_v45  ;;  %v7635_v39 = vunpack.c.l.b16 %v10894_v3  ;;  %v7641_v47 = vunpack.c.l.b16 %v10897_v57  ;;  %v7652_v3 = vpack.c.bf16 %v597_v17, %v597_v17  ;;  %10905 = vst [vmem:[#allocation50_spill] sm:$0xff] %v7660_v55  ;;  %v10911_v55 = vld [vmem:[#allocation33_spill] sm:$0xff] }
 0x1ab   : > { %v2604_v10 = vunpack.c.l.b16 %v7607_v15  ;;  %10901 = vst [vmem:[#allocation51_spill] sm:$0xff] %v7650_v40  ;;  %v10907_v44 = vpack.i.b16 %v7385_v9, %v10906_v7  ;;  %v5032_v28 = vunpack.c.l.b16 %v7654_v61  ;;  %v909_v9 = vrot.slane %v7585_v35, 4  ;;  %v10915_v7 = vld [vmem:[#allocation18_spill] sm:$0xff] }
 0x1ac   : > { %v7624_v46 = vunpack.c.l.b16 %v10888_v53  ;;  %10898 = vst [vmem:[#allocation48_spill] sm:$0xff] %v7641_v47  ;;  %v881_v53 = vrot.slane %v7514_v38, 4 }
 0x1ad   : > { %v7645_v18 = vpack.c.b16 %v2604_v10, %v2603_v12  ;;  %v715_v45 = vpop.f32.mrf.mxu2  ;;  %10902 = vst [vmem:[#allocation49_spill] sm:$0xff] %v7652_v3  ;;  %v1521_v12 = vrot.slane %v7498_v25, 4  ;;  %v7666_v10 = vunpack.c.l.b16 %v10907_v44  ;;  %v1202_v25 = vsel %vm825_vm1, %v1201_v62, %v10911_v55 }
 0x1ae   : > { %v716_v13 = vadd.f32 %v7550_v11, %v715_v45  ;;  %v484_v34 = vpop.f32.mrf.mxu0  ;;  %v601_v57 = vpop.f32.mrf.mxu1  ;;  %v1313_v45 = vrot.slane %v7477_v27, 4  ;;  %v1229_v44 = vrot.slane %v7652_v3, 4  ;;  %v10912_v62 = vpack.i.b16 %v7418_v58, %v7415_v2 }
 0x1af   : > { %10899 = vst [vmem:[#allocation46_spill] sm:$0xff] %v7645_v18  ;;  %v10910_v18 = vld [vmem:[#allocation35_spill] sm:$0xff]  ;;  %v485_v27 = vadd.f32 %v7590_v5, %v484_v34  ;;  %v602_v17 = vadd.f32 %v7468_v33, %v601_v57  ;;  %v10917_v57 = vld [vmem:[#allocation34_spill] sm:$0xff]  ;;  %v910_v2 = vsel %vm825_vm1, %v909_v9, %v7560_v63  ;;  %v599_v58 = vadd.f32 %v7468_v33, %v7571_v32 }
 0x1b0   : > { %10908 = vst [vmem:[#allocation53_spill] sm:$0xff] %v7666_v10  ;;  %v7672_v38 = vpack.c.bf16 %v716_v13, %v716_v13  ;;  %v882_v4 = vsel %vm825_vm1, %v881_v53, %v10910_v18  ;;  %v704_v13 = vadd.f32 %v7550_v11, %v7438_v23  ;;  %v1522_v53 = vsel %vm825_vm1, %v1521_v12, %v7521_v6 }
 0x1b1   : > { %v7691_v35 = vunpack.c.l.b16 %v10912_v62  ;;  %v7695_v49 = vperm.slane %v882_v4, %v10915_v7  ;;  %v1314_v37 = vsel %vm825_vm1, %v1313_v45, %v10917_v57  ;;  %v7704_v12 = vperm.slane %v1202_v25, %v10915_v7  ;;  %v10919_v4 = vld [vmem:[#allocation69_spill] sm:$0xff] }
 0x1b2   : > { %10909 = vst [vmem:[#allocation55_spill] sm:$0xff] %v7672_v38  ;;  %v5033_v54 = vunpack.c.l.b16 %v7672_v38  ;;  %v10916_v38 = vld [vmem:[#allocation36_spill] sm:$0xff]  ;;  %v10920_v55 = vpack.i.b16 %v7434_v1, %v10919_v4  ;;  %v7720_v45 = vpack.c.bf16 %v485_v27, %v485_v27  ;;  %v7724_v32 = vperm.slane %v1314_v37, %v10915_v7 }
 0x1b3   : > { %10913 = vst [vmem:[#allocation54_spill] sm:$0xff] %v7691_v35  ;;  %v994_v34 = vsel %vm825_vm1, %v993_v43, %v10916_v38  ;;  %v7716_v38 = vperm.slane %v1522_v53, %v10915_v7  ;;  %v1230_v43 = vsel %vm825_vm1, %v1229_v44, %v7569_v24  ;;  %v7728_v57 = vpack.c.bf16 %v704_v13, %v704_v13  ;;  %v10923_v53 = vld [vmem:[#allocation76_spill] sm:$0xff]  ;;  %v10927_v35 = vld [vmem:[#allocation62_spill] sm:$0xff] }
 0x1b4   : > { %v7701_v23 = vpack.c.b16 %v5033_v54, %v5032_v28  ;;  %v7713_v6 = vunpack.c.l.b16 %v10920_v55  ;;  %v788_v28 = vpack.c.bf16 %v602_v17, %v602_v17  ;;  %v998_v54 = vperm.slane %v994_v34, %v10915_v7 }
 0x1b5   : > { %v718_v62 = vpop.f32.mrf.mxu2  ;;  %10922 = vst [vmem:[#allocation61_spill] sm:$0xff] %v7728_v57  ;;  %v7732_v4 = vadd.f32 %v7550_v11, %v10923_v53  ;;  %v7736_v17 = vperm.slane %v910_v2, %v10915_v7  ;;  %v7739_v27 = vperm.slane %v1230_v43, %v10915_v7  ;;  %v7741_v37 = vpack.c.bf16 %v599_v58, %v599_v58  ;;  %v10928_v58 = vld [vmem:[#allocation58_spill] sm:$0xff] }
 0x1b6   : > { %10918 = vst [vmem:[#allocation56_spill] sm:$0xff] %v7701_v23  ;;  %v486_v25 = vpop.f32.mrf.mxu0  ;;  %v603_v9 = vpop.f32.mrf.mxu1  ;;  %v887_v53 = vrot.slane %v7720_v45, 4  ;;  %v1207_v23 = vrot.slane %v788_v28, 4  ;;  %v1007_v44 = vrot.slane %v998_v54, 4  ;;  %v719_v63 = vadd.f32 %v7550_v11, %v718_v62 }
 0x1b7   : > { %10921 = vst [vmem:[#allocation57_spill] sm:$0xff] %v7713_v6  ;;  %v487_v1 = vadd.f32 %v7590_v5, %v486_v25  ;;  %v604_v55 = vadd.f32 %v7468_v33, %v603_v9  ;;  %v1021_v13 = vrot.slane %v7607_v15, 4  ;;  %v1341_v24 = vrot.slane %v7741_v37, 4  ;;  %v10926_v6 = vld [vmem:[#allocation64_spill] sm:$0xff] }
 0x1b8   : > { %10924 = vst [vmem:[#allocation63_spill] sm:$0xff] %v7732_v4  ;;  %v888_v18 = vsel %vm825_vm1, %v887_v53, %v10927_v35  ;;  %v2638_v10 = vunpack.c.l.b16 %v788_v28  ;;  %v820_v40 = vpack.c.bf16 %v719_v63, %v719_v63 }
 0x1b9   : > { %10925 = vst [vmem:[#allocation59_spill] sm:$0xff] %v7741_v37  ;;  %v7743_v34 = vpack.c.bf16 %v487_v1, %v487_v1  ;;  %v7745_v25 = vpack.c.bf16 %v604_v55, %v604_v55  ;;  %v1549_v55 = vrot.slane %v7654_v61, 4  ;;  %v1208_v1 = vsel %vm825_vm1, %v1207_v23, %v10928_v58 }
 0x1ba   : > { %v1022_v35 = vsel %vm825_vm1, %v1021_v13, %v7596_v42  ;;  %v1212_v58 = vperm.slane %v1208_v1, %v10915_v7  ;;  %v5060_v28 = vunpack.c.l.b16 %v820_v40  ;;  %v10932_v42 = vld [vmem:[#allocation71_spill] sm:$0xff] }
 0x1bb   : > { %v999_v43 = vrot.slane %v7743_v34, 4  ;;  %v2639_v2 = vunpack.c.l.b16 %v7745_v25 }
 0x1bd   : > { %v1000_v4 = vsel %vm825_vm1, %v999_v43, %v10926_v6  ;;  %v720_v62 = vpop.f32.mrf.mxu2  ;;  %v1550_v43 = vsel %vm825_vm1, %v1549_v55, %v7594_v22  ;;  %v2640_v63 = vpack.c.b16 %v2639_v2, %v2638_v10  ;;  %v2633_v10 = vunpack.c.l.b16 %v7720_v45 }
 0x1be   : > { %v1004_v61 = vperm.slane %v1000_v4, %v10915_v7  ;;  %v721_v15 = vadd.f32 %v7550_v11, %v720_v62  ;;  %v489_v3 = vpop.f32.mrf.mxu0  ;;  %v606_v9 = vpop.f32.mrf.mxu1  ;;  %v892_v4 = vperm.slane %v888_v18, %v10915_v7  ;;  %v7787_v13 = vperm.slane %v1550_v43, %v10915_v7 }
 0x1bf   : > { %v490_v47 = vadd.f32 %v7590_v5, %v489_v3  ;;  %v607_v6 = vadd.f32 %v7468_v33, %v606_v9  ;;  %v1342_v18 = vsel %vm825_vm1, %v1341_v24, %v7598_v52  ;;  %v2645_v43 = vsel %vm1800_vm0, %v2640_v63, 0  ;;  %v10931_v24 = vld [vmem:[#allocation74_spill] sm:$0xff] }
 0x1c0   : > { %v1005_v53 = vrot.slane %v1004_v61, 4  ;;  %v7775_v23 = vsel %vm825_vm1, %v1004_v61, %v1007_v44  ;;  %v7782_v9 = vpack.c.bf16 %v721_v15, %v721_v15  ;;  %v7790_v44 = vperm.slane %v1022_v35, %v10915_v7  ;;  %2654 = vmatpush.bf16.xpose.msra.mxu0 %v2645_v43 }
 0x1c1   : > { %v7784_v62 = vpack.c.bf16 %v490_v47, %v490_v47  ;;  %v790_v55 = vpack.c.bf16 %v607_v6, %v607_v6  ;;  %v893_v61 = vrot.slane %v892_v4, 4  ;;  %v1213_v15 = vrot.slane %v1212_v58, 4 }
 0x1c2   : > { %v7780_v3 = vsel %vm825_vm1, %v1005_v53, %v998_v54  ;;  %10929 = vst [vmem:[#allocation35_spill] sm:$0xff] %v7782_v9  ;;  %v5061_v54 = vunpack.c.l.b16 %v7782_v9  ;;  %v1527_v6 = vrot.slane %v820_v40, 4  ;;  %v2634_v35 = vunpack.c.l.b16 %v7743_v34 }
 0x1c3   : > { %v915_v2 = vrot.slane %v7784_v62, 4  ;;  %v1235_v47 = vrot.slane %v790_v55, 4  ;;  %v10934_v43 = vrot.slane %v7704_v12, 4 }
 0x1c4   : > { %v7800_v22 = vpack.c.b16 %v5061_v54, %v5060_v28  ;;  %v1035_v54 = vrot.slane %v7790_v44, 4 }
 0x1c5   : > { %v723_v53 = vpop.f32.mrf.mxu2  ;;  %v916_v1 = vsel %vm825_vm1, %v915_v2, %v10931_v24  ;;  %v1236_v45 = vsel %vm825_vm1, %v1235_v47, %v10932_v42  ;;  %v7815_v2 = vperm.slane %v1342_v18, %v10915_v7  ;;  %v10933_v47 = vrot.slane %v7695_v49, 4 }
 0x1c6   : > { %10930 = vst [vmem:[#allocation33_spill] sm:$0xff] %v7800_v22  ;;  %v491_v52 = vpop.f32.mrf.mxu0  ;;  %v608_v9 = vpop.f32.mrf.mxu1  ;;  %v920_v37 = vperm.slane %v916_v1, %v10915_v7  ;;  %v7808_v40 = vperm.slane %v1236_v45, %v10915_v7  ;;  %v724_v63 = vadd.f32 %v7550_v11, %v723_v53  ;;  %v7824_v24 = vsel %vm825_vm1, %v1212_v58, %v10934_v43 }
 0x1c7   : > { %v492_v34 = vadd.f32 %v7590_v5, %v491_v52  ;;  %v609_v42 = vadd.f32 %v7468_v33, %v608_v9  ;;  %v896_v1 = vsel %vm825_vm1, %v892_v4, %v10933_v47  ;;  %v1528_v5 = vsel %vm825_vm1, %v1527_v6, %v7618_v36 }
 0x1c8   : > { %v1214_v52 = vsel %vm825_vm1, %v1213_v15, %v7704_v12  ;;  %v1241_v18 = vrot.slane %v7808_v40, 4  ;;  %v822_v53 = vpack.c.bf16 %v724_v63, %v724_v63  ;;  %v894_v33 = vsel %vm825_vm1, %v893_v61, %v7695_v49 }
 0x1c9   : > { %v7831_v45 = vpack.c.bf16 %v492_v34, %v492_v34  ;;  %v2635_v4 = vpack.c.b16 %v2634_v35, %v2633_v10  ;;  %v1319_v9 = vrot.slane %v7745_v25, 4  ;;  %v921_v47 = vrot.slane %v920_v37, 4  ;;  %v10935_v35 = vld [vmem:[#allocation75_spill] sm:$0xff] }
 0x1ca   : > { %v7836_v58 = vpack.c.bf16 %v609_v42, %v609_v42  ;;  %v7839_v43 = vperm.slane %v896_v1, %v7091_v56  ;;  %v1532_v6 = vperm.slane %v1528_v5, %v10915_v7  ;;  %v1555_v12 = vrot.slane %v822_v53, 4 }
 0x1cb   : > { %v1027_v15 = vrot.slane %v7831_v45, 4  ;;  %v2668_v63 = vunpack.c.l.b16 %v790_v55  ;;  %6022 = vmatmul.msk.bf16.vlgmr.msra.gmra.mxu0 %vm1800_vm0, %v2635_v4  ;;  %v1220_v10 = vperm.slane %v1214_v52, %v7091_v56  ;;  %v7847_v25 = vperm.slane %v894_v33, %v7091_v56  ;;  %v10937_v4 = vld [vmem:[#allocation60_spill] sm:$0xff] }
 0x1cc   : > { %v2669_v34 = vunpack.c.l.b16 %v7836_v58  ;;  %v1556_v61 = vsel %vm825_vm1, %v1555_v12, %v7728_v57  ;;  %v1242_v55 = vsel %vm825_vm1, %v1241_v18, %v7739_v27  ;;  %v7860_v28 = vsel %vm825_vm1, %v1319_v9, %v10937_v4 }
 0x1cd   : > { %v725_v49 = vpop.f32.mrf.mxu2  ;;  %v1028_v42 = vsel %vm825_vm1, %v1027_v15, %v10935_v35  ;;  %v922_v15 = vsel %vm825_vm1, %v921_v47, %v7736_v17  ;;  %v1533_v35 = vrot.slane %v1532_v6, 4  ;;  %v5088_v9 = vunpack.c.l.b16 %v822_v53 }
 0x1ce   : > { %v726_v1 = vadd.f32 %v7550_v11, %v725_v49  ;;  %v7854_v5 = vpop.f32.mrf.mxu0  ;;  %v7863_v52 = vperm.slane %v1028_v42, %v10915_v7  ;;  %v7865_v33 = vpop.f32.mrf.mxu1  ;;  %v2670_v12 = vpack.c.b16 %v2669_v34, %v2668_v63  ;;  %v1560_v11 = vperm.slane %v1556_v61, %v10915_v7 }
 0x1cf   : > { %10936 = vst [vmem:[#allocation36_spill] sm:$0xff] %v7854_v5  ;;  %v2805_v49 = vsel %vm1800_vm0, %v7865_v33, -inf  ;;  %v2799_v18 = vsel %vm1800_vm0, %v7854_v5, -inf  ;;  %v1248_v63 = vperm.slane %v1242_v55, %v7091_v56  ;;  %v10939_v47 = vrot.slane %v7716_v38, 4 }
 0x1d0   : > { %10938 = vst [vmem:[#allocation34_spill] sm:$0xff] %v7865_v33  ;;  %v1036_v42 = vsel %vm825_vm1, %v7863_v52, %v1035_v54  ;;  %v7876_v4 = vpack.c.bf16 %v726_v1, %v726_v1  ;;  %2806 = vmax.xlane.f32.xlu2 %v2805_v49  ;;  %2800 = vmax.xlane.f32.xlu0 %v2799_v18  ;;  %v2663_v54 = vunpack.c.l.b16 %v7784_v62  ;;  %v2675_v55 = vsel %vm1800_vm0, %v2670_v12, 0 }
 0x1d1   : > { %v1536_v34 = vsel %vm825_vm1, %v1532_v6, %v10939_v47  ;;  %v7884_v61 = vperm.slane %v7775_v23, %v7091_v56  ;;  %v7887_v22 = vperm.slane %v1036_v42, %v7091_v56  ;;  %v7890_v53 = vperm.slane %v922_v15, %v7091_v56  ;;  %2684 = vmatpush.bf16.xpose.msra.mxu1 %v2675_v55 }
 0x1d2   : > { %v5089_v1 = vunpack.c.l.b16 %v7876_v4  ;;  %v1420_v49 = vshrl.u32 %v1220_v10, 16  ;;  %v10940_v18 = vrot.slane %v7736_v17, 4  ;;  %v1561_v47 = vrot.slane %v1560_v11, 4 }
 0x1d3   : > { %v2664_v42 = vunpack.c.l.b16 %v7831_v45  ;;  %v1419_v57 = vpack.i.b16 %v1248_v63, %v1220_v10  ;;  %v1421_v36 = vshrl.u32 %v1248_v63, 16  ;;  %v1225_v5 = vrot.slane %v1220_v10, 4 }
 0x1d4   : > { %v924_v6 = vsel %vm825_vm1, %v920_v37, %v10940_v18  ;;  %v7901_v15 = vpack.c.b16 %v5089_v1, %v5088_v9  ;;  %v1534_v12 = vsel %vm825_vm1, %v1533_v35, %v7716_v38  ;;  %v7908_v17 = vperm.slane %v1536_v34, %v7091_v56 }
 0x1d5   : > { %v7903_v62 = vpop.f32.mrf.mxu2  ;;  %v1099_v45 = vpack.i.b16 %v7890_v53, %v7847_v25  ;;  %v1798_v9 = vunpack.c.l.b16 %v1419_v57  ;;  %v1422_v1 = vpack.i.b16 %v1421_v36, %v1420_v49  ;;  %v1253_v23 = vrot.slane %v1248_v63, 4 }
 0x1d6   : > { %10941 = vst [vmem:[#allocation69_spill] sm:$0xff] %v7901_v15  ;;  %v2811_v37 = vsel %vm1800_vm0, %v7903_v62, -inf  ;;  %v7912_v18 = vpop.f32.mrf.mxu0  ;;  %v7916_v55 = vpop.f32.mrf.mxu1  ;;  %v7920_v38 = vperm.slane %v924_v6, %v7091_v56  ;;  %v1562_v35 = vsel %vm825_vm1, %v1561_v47, %v7787_v13  ;;  %v2665_v34 = vpack.c.b16 %v2664_v42, %v2663_v54 }
 0x1d7   : > { %10942 = vst [vmem:[#allocation76_spill] sm:$0xff] %v7903_v62  ;;  %2812 = vmax.xlane.f32.xlu1 %v2811_v37  ;;  %v2808_v15 = vsel %vm1800_vm0, %v7916_v55, -inf  ;;  %v1799_v62 = vpack.c.b16 %v1798_v9, %v7539_v31  ;;  %v1825_v57 = vunpack.c.l.b16 %v1422_v1  ;;  %v1226_v36 = vsel %vm825_vm1, 0, %v1225_v5  ;;  %v10949_v5 = vld [vmem:[#allocation26_spill] sm:$0xff] }
 0x1d8   : > { %10943 = vst [vmem:[#allocation64_spill] sm:$0xff] %v7908_v17  ;;  %2809 = vmax.xlane.f32.xlu0 %v2808_v15  ;;  %v1254_v49 = vsel %vm825_vm1, 0, %v1253_v23  ;;  %v10946_v63 = vrot.slane %v7739_v27, 4  ;;  %v10947_v47 = vrot.slane %v7787_v13, 4  ;;  %v1795_v42 = vunpack.c.l.b16 %v1099_v45  ;;  %6023 = vmatmul.msk.bf16.vlgmr.msra.gmra.mxu1 %vm1800_vm0, %v2665_v34 }
 0x1d9   : > { %10944 = vst [vmem:[#allocation62_spill] sm:$0xff] %v7912_v18  ;;  %v1425_v37 = vpack.i.b16 %v1254_v49, %v1226_v36  ;;  %v1805_v31 = vsel %vm1800_vm0, %v1799_v62, 0  ;;  %v10948_v15 = vunpack.c.l.b16 %v7179_v26  ;;  %v7944_v27 = vperm.slane %v10949_v5, %v7091_v56 }
 0x1da   : > { %10945 = vst [vmem:[#allocation58_spill] sm:$0xff] %v7916_v55  ;;  %v7933_v6 = vsel %vm825_vm1, %v7808_v40, %v10946_v63  ;;  %v1564_v54 = vsel %vm825_vm1, %v1560_v11, %v10947_v47  ;;  %v10950_v40 = vld [vmem:[#allocation30_spill] sm:$0xff]  ;;  %1814 = vmatpush.bf16.xpose.msra.mxu3 %v1805_v31  ;;  %v7952_v45 = vperm.slane %v1534_v12, %v7091_v56  ;;  %v1426_v10 = vshrl.u32 %v1226_v36, 16 }
 0x1db   : > { %v1826_v9 = vpack.c.b16 %v1825_v57, %v10948_v15  ;;  %v7948_v23 = vperm.slane %v10950_v40, %v7091_v56  ;;  %v1851_v11 = vunpack.c.l.b16 %v1425_v37  ;;  %v7955_v26 = vperm.slane %v1562_v35, %v7091_v56 }
 0x1dc   : > { %v7958_v62 = vperm.slane %v1564_v54, %v7091_v56  ;;  %v2802_v35 = vsel %vm1800_vm0, %v7912_v18, -inf  ;;  %v1101_v37 = vshrl.u32 %v7890_v53, 16  ;;  %v1796_v31 = vpack.c.b16 %v1795_v42, %v7528_v20 }
 0x1dd   : > { %v1831_v1 = vsel %vm1800_vm0, %v1826_v9, 0  ;;  %v7962_v57 = vpop.f32.mrf.mxu2  ;;  %v1691_v63 = vpack.i.b16 %v7948_v23, %v7944_v27  ;;  %v1739_v54 = vpack.i.b16 %v7955_v26, %v7952_v45  ;;  %v1852_v15 = vpack.c.b16 %v1851_v11, %v7545_v16 }
 0x1de   : > { %10951 = vst [vmem:[#allocation74_spill] sm:$0xff] %v7958_v62  ;;  %v2814_v12 = vsel %vm1800_vm0, %v7962_v57, -inf  ;;  %v7970_v47 = vpop.f32.mrf.mxu0  ;;  %v1703_v5 = vpack.i.b16 %v7512_v60, %v7507_v51  ;;  %v1427_v34 = vshrl.u32 %v1254_v49, 16  ;;  %v7980_v13 = vpop.f32.mrf.mxu1  ;;  %v1751_v20 = vpack.i.b16 %v7958_v62, %v7908_v17 }
 0x1df   : > { %10952 = vst [vmem:[#allocation71_spill] sm:$0xff] %v7962_v57  ;;  %2815 = vmax.xlane.f32.xlu2 %v2814_v12  ;;  %2803 = vmax.xlane.f32.xlu1 %v2802_v35  ;;  %v4218_v9 = vunpack.c.l.b16 %v1691_v63  ;;  %v4219_v40 = vunpack.c.l.b16 %v1739_v54  ;;  %v2823_v57 = vsel %vm1800_vm0, %v7970_v47, -inf  ;;  %v1489_v42 = vrot.slane %v7944_v27, 4 }
 0x1e0   : > { %10953 = vst [vmem:[#allocation75_spill] sm:$0xff] %v7970_v47  ;;  %v4322_v16 = vunpack.c.l.b16 %v1703_v5  ;;  %v1517_v12 = vrot.slane %v7948_v23, 4  ;;  %v1545_v35 = vrot.slane %v7952_v45, 4  ;;  %v1857_v36 = vsel %vm1800_vm0, %v1852_v15, 0 }
 0x1e1   : > { %10954 = vst [vmem:[#allocation60_spill] sm:$0xff] %v7980_v13  ;;  %v4220_v11 = vpack.c.b16 %v4219_v40, %v4218_v9  ;;  %5992 = vmatmul.msk.bf16.vlgmr.msra.gmra.mxu3 %vm1800_vm0, %v1796_v31  ;;  %v4323_v49 = vunpack.c.l.b16 %v1751_v20  ;;  %v1490_v54 = vsel %vm825_vm1, 0, %v1489_v42  ;;  %v1573_v47 = vrot.slane %v7955_v26, 4 }
 0x1e2   : > { %1840 = vmatpush.bf16.xpose.msrb.mxu3 %v1831_v1  ;;  %v1100_v1 = vshrl.u32 %v7847_v25, 16  ;;  %v1428_v5 = vpack.i.b16 %v1427_v34, %v1426_v10  ;;  %v1518_v9 = vsel %vm825_vm1, 0, %v1517_v12  ;;  %v1698_v40 = vshrl.u32 %v1490_v54, 16 }
 0x1e3   : > { %4232 = vmatpush.bf16.msra.mxu2 %v4220_v11  ;;  %v1574_v18 = vsel %vm825_vm1, 0, %v1573_v47  ;;  %v1697_v33 = vpack.i.b16 %v1518_v9, %v1490_v54  ;;  %v1699_v31 = vshrl.u32 %v1518_v9, 16  ;;  %v2829_v15 = vsel %vm1800_vm0, %v7980_v13, -inf  ;;  %v10958_v13 = vld [vmem:[#allocation73_spill] sm:$0xff] }
 0x1e4   : > { %v7987_v63 = vpack.i.b16 %v1101_v37, %v1100_v1  ;;  %v1546_v37 = vsel %vm825_vm1, 0, %v1545_v35  ;;  %v4324_v1 = vpack.c.b16 %v4323_v49, %v4322_v16  ;;  %v1491_v16 = vrot.slane %v7507_v51, 4  ;;  %v11020_v51 = vld [vmem:[#allocation83_spill] sm:$0xff] }
 0x1e5   : > { %v1745_v42 = vpack.i.b16 %v1574_v18, %v1546_v37  ;;  %v1746_v55 = vshrl.u32 %v1546_v37, 16  ;;  %v4270_v34 = vunpack.c.l.b16 %v1697_v33  ;;  %v1700_v11 = vpack.i.b16 %v1699_v31, %v1698_v40 }
 0x1e6   : > { %v8000_v20 = vpop.f32.mrf.mxu0  ;;  %v1519_v35 = vrot.slane %v7512_v60, 4  ;;  %v1547_v49 = vrot.slane %v7908_v17, 4  ;;  %v1877_v54 = vunpack.c.l.b16 %v1428_v5 }
 0x1e7   : > { %10955 = vst [vmem:[#allocation26_spill] sm:$0xff] %v8000_v20  ;;  %2830 = vmax.xlane.f32.xlu1 %v2829_v15  ;;  %2824 = vmax.xlane.f32.xlu2 %v2823_v57  ;;  %v2826_v10 = vsel %vm1800_vm0, %v8000_v20, -inf  ;;  %v4271_v47 = vunpack.c.l.b16 %v1745_v42  ;;  %v4296_v9 = vunpack.c.l.b16 %v1700_v11  ;;  %v1575_v57 = vrot.slane %v7958_v62, 4  ;;  %v8013_v15 = vpop.f32.mrf.mxu1 }
 0x1e8   : > { %2827 = vmax.xlane.f32.xlu0 %v2826_v10  ;;  %4336 = vmatpush.bf16.msrb.mxu2 %v4324_v1  ;;  %v1520_v31 = vsel %vm825_vm1, 0, %v1519_v35  ;;  %v1548_v1 = vsel %vm825_vm1, 0, %v1547_v49  ;;  %10957 = vst [vmem:[#allocation91_spill] sm:$0xff] %v8013_v15  ;;  %v1033_v62 = vrot.slane %v7863_v52, 4  ;;  %v8034_v52 = vperm.slane %v7860_v28, %v10915_v7 }
 0x1e9   : > { %v4272_v33 = vpack.c.b16 %v4271_v47, %v4270_v34  ;;  %v1711_v5 = vshrl.u32 %v1520_v31, 16  ;;  %v10959_v34 = vrot.slane %v7836_v58, 4  ;;  %v1111_v28 = vpack.i.b16 %v7920_v38, %v7839_v43 }
 0x1ea   : > { %1866 = vmatpush.bf16.xpose.msra.mxu3 %v1857_v36  ;;  %v1747_v36 = vshrl.u32 %v1574_v18, 16  ;;  %v1492_v18 = vsel %vm825_vm1, 0, %v1491_v16  ;;  %v8009_v37 = vpop.f32.mrf.mxu2  ;;  %v1758_v16 = vshrl.u32 %v1548_v1, 16 }
 0x1eb   : > { %10956 = vst [vmem:[#allocation30_spill] sm:$0xff] %v8009_v37  ;;  %v1709_v42 = vpack.i.b16 %v1520_v31, %v1492_v18  ;;  %4284 = vmatpush.bf16.msrb.mxu0 %v4272_v33  ;;  %v1348_v47 = vsel %vm825_vm1, %v10959_v34, %v10958_v13  ;;  %v10960_v33 = vunpack.c.l.b16 %v7216_v50  ;;  %v2835_v58 = vsel %vm1800_vm0, %v8009_v37, -inf  ;;  %v11007_v37 = vld [vmem:[#allocation78_spill] sm:$0xff] }
 0x1ec   : > { %v1748_v12 = vpack.i.b16 %v1747_v36, %v1746_v55  ;;  %v1576_v55 = vsel %vm825_vm1, 0, %v1575_v57  ;;  %v1710_v36 = vshrl.u32 %v1492_v18, 16  ;;  %v2832_v18 = vsel %vm1800_vm0, %v8013_v15, -inf  ;;  %v11014_v15 = vld [vmem:[#allocation31_spill] sm:$0xff] }
 0x1ed   : > { %v1757_v11 = vpack.i.b16 %v1576_v55, %v1548_v1  ;;  %v1759_v20 = vshrl.u32 %v1576_v55, 16  ;;  %v4374_v35 = vunpack.c.l.b16 %v1709_v42  ;;  %v8030_v13 = vperm.slane %v7933_v6, %v7091_v56 }
 0x1ee   : > { %v4297_v40 = vunpack.c.l.b16 %v1748_v12  ;;  %v1822_v12 = vunpack.c.l.b16 %v7987_v63  ;;  %v1712_v49 = vpack.i.b16 %v1711_v5, %v1710_v36  ;;  %v10962_v55 = vunpack.c.l.b16 %v7205_v14 }
 0x1ef   : > { %v4375_v57 = vunpack.c.l.b16 %v1757_v11  ;;  %2833 = vmax.xlane.f32.xlu2 %v2832_v18  ;;  %v8046_v6 = vperm.slane %v7824_v24, %v7091_v56  ;;  %v1355_v36 = vrot.slane %v7815_v2, 4  ;;  %v10964_v11 = vrot.slane %v7847_v25, 4 }
 0x1f0   : > { %v4298_v10 = vpack.c.b16 %v4297_v40, %v4296_v9  ;;  %v1760_v9 = vpack.i.b16 %v1759_v20, %v1758_v16  ;;  %v1878_v40 = vpack.c.b16 %v1877_v54, %v10960_v33  ;;  %v4400_v31 = vunpack.c.l.b16 %v1712_v49  ;;  %2836 = vmax.xlane.f32.xlu0 %v2835_v58 }
 0x1f1   : > { %v4376_v63 = vpack.c.b16 %v4375_v57, %v4374_v35  ;;  %v10961_v20 = vrot.slane %v7890_v53, 4  ;;  %v8040_v54 = vperm.slane %v1348_v47, %v10915_v7  ;;  %v1823_v42 = vpack.c.b16 %v1822_v12, %v10962_v55 }
 0x1f2   : > { %4310 = vmatpush.bf16.msrb.mxu1 %v4298_v10  ;;  %v4401_v1 = vunpack.c.l.b16 %v1760_v9  ;;  %v1034_v53 = vsel %vm825_vm1, %v1033_v62, %v7790_v44  ;;  %v8053_v10 = vpop.f32.mrf.mxu2  ;;  %v906_v14 = vsel %vm825_vm1, 0, %v10964_v11  ;;  %v1883_v24 = vsel %vm1800_vm0, %v1878_v40, 0 }
 0x1f3   : > { %v934_v50 = vsel %vm825_vm1, 0, %v10961_v20  ;;  %4388 = vmatpush.bf16.msra.mxu0 %v4376_v63  ;;  %10963 = vst [vmem:[#allocation73_spill] sm:$0xff] %v8053_v10  ;;  %5993 = vmatmul.msk.bf16.vlgmr.msrb.gmra.mxu3 %vm1800_vm0, %v1823_v42  ;;  %v2838_v16 = vsel %vm1800_vm0, %v8053_v10, -inf  ;;  %v1431_v47 = vpack.i.b16 %v8030_v13, %v8046_v6  ;;  %v8066_v44 = vperm.slane %v7780_v3, %v7091_v56 }
 0x1f4   : > { %v4402_v5 = vpack.c.b16 %v4401_v1, %v4400_v31  ;;  %v1105_v34 = vpack.i.b16 %v934_v50, %v906_v14  ;;  %v1019_v62 = vrot.slane %v7884_v61, 4  ;;  %v1325_v25 = vrot.slane %v8034_v52, 4  ;;  %1892 = vmatpush.bf16.xpose.msrb.mxu3 %v1883_v24  ;;  %2839 = vmax.xlane.f32.xlu1 %v2838_v16 }
 0x1f5   : > { %v8070_v12 = vunpack.c.l.b16 %v1111_v28  ;;  %v1136_v35 = vshrl.u32 %v7884_v61, 16  ;;  %v8074_v49 = vperm.slane %v1034_v53, %v7091_v56  ;;  %v1353_v57 = vrot.slane %v8040_v54, 4 }
 0x1f6   : > { %4414 = vmatpush.bf16.msra.mxu1 %v4402_v5  ;;  %v1107_v18 = vshrl.u32 %v934_v50, 16  ;;  %v1047_v3 = vrot.slane %v7887_v22, 4  ;;  %v1112_v33 = vshrl.u32 %v7839_v43, 16  ;;  %v1113_v40 = vshrl.u32 %v7920_v38, 16 }
 0x1f7   : > { %v1137_v31 = vshrl.u32 %v7887_v22, 16  ;;  %v1848_v58 = vunpack.c.l.b16 %v1105_v34  ;;  %v1903_v63 = vunpack.c.l.b16 %v1431_v47  ;;  %v1106_v1 = vshrl.u32 %v906_v14, 16 }
 0x1f8   : > { %v1114_v20 = vpack.i.b16 %v1113_v40, %v1112_v33  ;;  %v907_v55 = vrot.slane %v7839_v43, 4  ;;  %v935_v42 = vrot.slane %v7920_v38, 4  ;;  %v1326_v50 = vsel %vm825_vm1, %v1325_v25, %v7724_v32 }
 0x1f9   : > { %v8087_v28 = vpack.i.b16 %v1107_v18, %v1106_v1  ;;  %v1432_v53 = vshrl.u32 %v8046_v6, 16  ;;  %v1433_v5 = vshrl.u32 %v8030_v13, 16  ;;  %v1332_v11 = vperm.slane %v1326_v50, %v7091_v56 }
 0x1fa   : > { %v1926_v24 = vunpack.c.l.b16 %v1114_v20  ;;  %v908_v16 = vsel %vm825_vm1, 0, %v907_v55  ;;  %v936_v14 = vsel %vm825_vm1, 0, %v935_v42  ;;  %v1354_v43 = vsel %vm825_vm1, %v1353_v57, %v7815_v2 }
 0x1fb   : > { %v1849_v38 = vpack.c.b16 %v1848_v58, %v7567_v30  ;;  %v1117_v47 = vpack.i.b16 %v936_v14, %v908_v16  ;;  %v1360_v25 = vperm.slane %v1354_v43, %v7091_v56  ;;  %v1904_v18 = vpack.c.b16 %v1903_v63, %v7576_v41 }
 0x1fc   : > { %v10965_v33 = vunpack.c.l.b16 %v10880_v48  ;;  %v1118_v1 = vshrl.u32 %v908_v16, 16  ;;  %v1119_v20 = vshrl.u32 %v936_v14, 16  ;;  %v1444_v50 = vshrl.u32 %v1332_v11, 16 }
 0x1fd   : > { %v8104_v55 = vunpack.c.l.b16 %v1117_v47  ;;  %v1443_v42 = vpack.i.b16 %v1360_v25, %v1332_v11  ;;  %v1445_v57 = vshrl.u32 %v1360_v25, 16  ;;  %v1123_v30 = vpack.i.b16 %v8074_v49, %v8066_v44 }
 0x1fe   : > { %v8102_v40 = vpack.c.b16 %v1926_v24, %v10965_v33  ;;  %v1120_v9 = vpack.i.b16 %v1119_v20, %v1118_v1  ;;  %v1337_v58 = vrot.slane %v1332_v11, 4  ;;  %v1365_v34 = vrot.slane %v1360_v25, 4 }
 0x1ff   : > { %v1434_v43 = vpack.i.b16 %v1433_v5, %v1432_v53  ;;  %v8110_v48 = vunpack.c.l.b16 %v1443_v42  ;;  %v1446_v63 = vpack.i.b16 %v1445_v57, %v1444_v50  ;;  %v8112_v16 = vunpack.c.l.b16 %v1123_v30  ;;  %v10966_v5 = vld [vmem:[#allocation52_spill] sm:$0xff] }
 0x200   : > { %v1978_v24 = vunpack.c.l.b16 %v1120_v9  ;;  %v1338_v14 = vsel %vm825_vm1, 0, %v1337_v58  ;;  %v1366_v47 = vsel %vm825_vm1, 0, %v1365_v34  ;;  %v1909_v33 = vsel %vm1800_vm0, %v1904_v18, 0 }
 0x201   : > { %v2033_v25 = vunpack.c.l.b16 %v1446_v63  ;;  %v1449_v53 = vpack.i.b16 %v1366_v47, %v1338_v14  ;;  %v10967_v1 = vunpack.c.l.b16 %v10966_v5  ;;  %v1124_v42 = vshrl.u32 %v8066_v44, 16 }
 0x202   : > { %v1125_v50 = vshrl.u32 %v8074_v49, 16  ;;  %v10968_v34 = vunpack.c.l.b16 %v10891_v21  ;;  %v1450_v30 = vshrl.u32 %v1338_v14, 16  ;;  %v1451_v58 = vshrl.u32 %v1366_v47, 16 }
 0x203   : > { %v8121_v20 = vpack.c.b16 %v1978_v24, %v10967_v1  ;;  %5994 = vmatmul.msk.bf16.vlgmr.msra.gmra.mxu3 %vm1800_vm0, %v1849_v38  ;;  %v8132_v57 = vunpack.c.l.b16 %v1449_v53  ;;  %v1017_v5 = vrot.slane %v8066_v44, 4  ;;  %v1045_v1 = vrot.slane %v8074_v49, 4 }
 0x204   : > { %v8130_v18 = vpack.c.b16 %v2033_v25, %v10968_v34  ;;  %1918 = vmatpush.bf16.xpose.msra.mxu3 %v1909_v33  ;;  %v8134_v63 = vpop.f32.mrf.mxu0  ;;  %v1126_v24 = vpack.i.b16 %v1125_v50, %v1124_v42  ;;  %v10970_v9 = vrot.slane %v7724_v32, 4  ;;  %v1874_v25 = vunpack.c.l.b16 %v8087_v28 }
 0x205   : > { %10969 = vst [vmem:[#allocation52_spill] sm:$0xff] %v8134_v63  ;;  %v2847_v21 = vsel %vm1800_vm0, %v8134_v63, -inf  ;;  %v1452_v47 = vpack.i.b16 %v1451_v58, %v1450_v30  ;;  %v1018_v44 = vsel %vm825_vm1, 0, %v1017_v5  ;;  %v1046_v49 = vsel %vm825_vm1, 0, %v1045_v1  ;;  %v11010_v63 = vld [vmem:[#allocation79_spill] sm:$0xff] }
 0x206   : > { %v1328_v38 = vsel %vm825_vm1, %v8034_v52, %v10970_v9  ;;  %2848 = vmax.xlane.f32.xlu1 %v2847_v21  ;;  %v2030_v33 = vunpack.c.l.b16 %v1126_v24  ;;  %v1929_v53 = vunpack.c.l.b16 %v1434_v43  ;;  %v1129_v52 = vpack.i.b16 %v1046_v49, %v1018_v44 }
 0x207   : > { %v1336_v32 = vperm.slane %v1328_v38, %v7091_v56  ;;  %v2085_v42 = vunpack.c.l.b16 %v1452_v47  ;;  %v1356_v28 = vsel %vm825_vm1, %v8040_v54, %v1355_v36  ;;  %v10971_v9 = vunpack.c.l.b16 %v10895_v59  ;;  %v10974_v47 = vld [vmem:[#allocation39_spill] sm:$0xff] }
 0x208   : > { %v1364_v34 = vperm.slane %v1356_v28, %v7091_v56  ;;  %v1130_v30 = vshrl.u32 %v1018_v44, 16  ;;  %v1131_v58 = vshrl.u32 %v1046_v49, 16  ;;  %v10972_v24 = vunpack.c.l.b16 %v10903_v19  ;;  %v10976_v49 = vld [vmem:[#allocation48_spill] sm:$0xff] }
 0x209   : > { %v8156_v50 = vpack.c.b16 %v2030_v33, %v10971_v9  ;;  %v8163_v43 = vunpack.c.l.b16 %v1129_v52  ;;  %v1456_v1 = vshrl.u32 %v1336_v32, 16  ;;  %v10973_v2 = vpack.i.b16 %v7887_v22, %v7884_v61 }
 0x20a   : > { %v8161_v5 = vpack.c.b16 %v2085_v42, %v10972_v24  ;;  %v1455_v54 = vpack.i.b16 %v1364_v34, %v1336_v32  ;;  %v1132_v59 = vpack.i.b16 %v1131_v58, %v1130_v30  ;;  %v1457_v36 = vshrl.u32 %v1364_v34, 16  ;;  %v10977_v42 = vld [vmem:[#allocation51_spill] sm:$0xff] }
 0x20b   : > { %v8168_v38 = vunpack.c.l.b16 %v10973_v2  ;;  %v1339_v21 = vrot.slane %v1336_v32, 4  ;;  %v10975_v33 = vunpack.c.l.b16 %v10974_v47  ;;  %v1367_v28 = vrot.slane %v1364_v34, 4  ;;  %v10979_v34 = vld [vmem:[#allocation53_spill] sm:$0xff] }
 0x20c   : > { %v8176_v9 = vpop.f32.mrf.mxu0  ;;  %v8178_v24 = vunpack.c.l.b16 %v1455_v54  ;;  %v2082_v2 = vunpack.c.l.b16 %v1132_v59  ;;  %v1458_v14 = vpack.i.b16 %v1457_v36, %v1456_v1  ;;  %v1138_v58 = vpack.i.b16 %v1137_v31, %v1136_v35  ;;  %v10982_v31 = vld [vmem:[#allocation42_spill] sm:$0xff]  ;;  %v10984_v54 = vld [vmem:[#allocation65_spill] sm:$0xff] }
 0x20d   : > { %v1930_v44 = vpack.c.b16 %v1929_v53, %v10975_v33  ;;  %10978 = vst [vmem:[#allocation39_spill] sm:$0xff] %v8176_v9  ;;  %v1340_v30 = vsel %vm825_vm1, 0, %v1339_v21  ;;  %v2850_v32 = vsel %vm1800_vm0, %v8176_v9, -inf  ;;  %v1368_v53 = vsel %vm825_vm1, 0, %v1367_v28  ;;  %v10980_v33 = vld [vmem:[#allocation67_spill] sm:$0xff]  ;;  %v11013_v9 = vld [vmem:[#allocation80_spill] sm:$0xff] }
 0x20e   : > { %v1462_v47 = vshrl.u32 %v1340_v30, 16  ;;  %2851 = vmax.xlane.f32.xlu2 %v2850_v32  ;;  %v10981_v59 = vunpack.c.l.b16 %v10980_v33  ;;  %v2137_v36 = vunpack.c.l.b16 %v1458_v14  ;;  %v1461_v21 = vpack.i.b16 %v1368_v53, %v1340_v30  ;;  %v10986_v30 = vld [vmem:[#allocation66_spill] sm:$0xff] }
 0x20f   : > { %v2134_v52 = vunpack.c.l.b16 %v1138_v58  ;;  %v1463_v19 = vshrl.u32 %v1368_v53, 16  ;;  %v1020_v28 = vsel %vm825_vm1, 0, %v1019_v62  ;;  %v1048_v35 = vsel %vm825_vm1, 0, %v1047_v3  ;;  %v10988_v3 = vld [vmem:[#allocation54_spill] sm:$0xff] }
 0x210   : > { %v8192_v1 = vpack.c.b16 %v2082_v2, %v10981_v59  ;;  %v10983_v32 = vunpack.c.l.b16 %v10982_v31  ;;  %v10985_v41 = vunpack.c.l.b16 %v10984_v54  ;;  %v8206_v2 = vunpack.c.l.b16 %v1461_v21  ;;  %v10989_v54 = vld [vmem:[#allocation49_spill] sm:$0xff] }
 0x211   : > { %v1141_v14 = vpack.i.b16 %v1048_v35, %v1020_v28  ;;  %v10987_v53 = vunpack.c.l.b16 %v10986_v30  ;;  %v1464_v61 = vpack.i.b16 %v1463_v19, %v1462_v47  ;;  %v1142_v62 = vshrl.u32 %v1020_v28, 16  ;;  %v10993_v19 = vld [vmem:[#allocation68_spill] sm:$0xff]  ;;  %v11004_v31 = vld [vmem:[#allocation77_spill] sm:$0xff] }
 0x212   : > { %v1875_v11 = vpack.c.b16 %v1874_v25, %v10983_v32  ;;  %v8204_v33 = vpack.c.b16 %v2137_v36, %v10985_v41  ;;  %v1143_v59 = vshrl.u32 %v1048_v35, 16  ;;  %v1227_v22 = vrot.slane %v8046_v6, 4  ;;  %v10991_v36 = vld [vmem:[#allocation59_spill] sm:$0xff] }
 0x213   : > { %v8210_v58 = vpack.c.b16 %v2134_v52, %v10987_v53  ;;  %v8215_v25 = vunpack.c.l.b16 %v1141_v14  ;;  %v10990_v41 = vunpack.c.l.b16 %v10989_v54  ;;  %v10992_v21 = vunpack.c.l.b16 %v10991_v36  ;;  %v10994_v6 = vld [vmem:[#allocation63_spill] sm:$0xff]  ;;  %v10999_v36 = vld [vmem:[#allocation72_spill] sm:$0xff] }
 0x214   : > { %5995 = vmatmul.msk.bf16.vlgmr.msrb.gmra.mxu3 %vm1800_vm0, %v1875_v11  ;;  %v1935_v52 = vsel %vm1800_vm0, %v1930_v44, 0  ;;  %v2188_v47 = vunpack.c.l.b16 %v10993_v19  ;;  %v2189_v28 = vunpack.c.l.b16 %v1464_v61  ;;  %v1144_v35 = vpack.i.b16 %v1143_v59, %v1142_v62  ;;  %v8230_v14 = vpop.f32.mrf.mxu1  ;;  %v11003_v11 = vld [vmem:[#allocation35_spill] sm:$0xff] }
 0x215   : > { %v8221_v32 = vpack.c.b16 %v10992_v21, %v10990_v41  ;;  %v8228_v30 = vpack.c.bf16 %v10994_v6, %v10994_v6  ;;  %1944 = vmatpush.bf16.xpose.msrb.mxu3 %v1935_v52  ;;  %10996 = vst [vmem:[#allocation51_spill] sm:$0xff] %v8230_v14  ;;  %v10997_v53 = vrot.slane %v8030_v13, 4  ;;  %v10998_v41 = vld [vmem:[#allocation57_spill] sm:$0xff]  ;;  %v2185_v44 = vunpack.c.l.b16 %v10999_v36  ;;  %v6314_v52 = vld [vmem:[%s10587_s6] ss:$0 sm:$0xff] }
 0x216   : > { %v1667_v21 = vrot.slane %v7876_v4, 4  ;;  %v2853_v61 = vsel %vm1800_vm0, %v8230_v14, -inf  ;;  %v8241_v62 = vpack.c.b16 %v2189_v28, %v2188_v47  ;;  %v2186_v59 = vunpack.c.l.b16 %v1144_v35  ;;  %v11000_v13 = vld [vmem:[#allocation37_spill] sm:$0xff]  ;;  %v11001_v6 = vld [vmem:[#allocation50_spill] sm:$0xff] }
 0x217   : > { %10995 = vst [vmem:[#allocation48_spill] sm:$0xff] %v8228_v30  ;;  %v1256_v54 = vsel %vm825_vm1, 0, %v10997_v53  ;;  %v691_v19 = vadd.f32 %v6314_v52, %v11000_v13  ;;  %v8249_v53 = vpack.c.bf16 %v11001_v6, %v11001_v6  ;;  %v1639_v36 = vrot.slane %v11003_v11, 4  ;;  %2854 = vmax.xlane.f32.xlu0 %v2853_v61  ;;  %v11006_v28 = vld [vmem:[#allocation10_spill] sm:$0xff]  ;;  %v11009_v13 = vld [vmem:[#allocation20_spill] sm:$0xff]  ;;  %v11011_v11 = vld [vmem:[#allocation25_spill] sm:$0xff] }
 0x218   : > { %v1228_v4 = vsel %vm825_vm1, 0, %v1227_v22  ;;  %v8255_v47 = vpack.c.bf16 %v11004_v31, %v11004_v31  ;;  %v1577_v35 = vrot.slane %v11006_v28, 4  ;;  %v8258_v10 = vpack.c.b16 %v2186_v59, %v2185_v44  ;;  %v11016_v28 = vld [vmem:[#allocation47_spill] sm:$0xff] }
 0x219   : > { %11002 = vst [vmem:[#allocation53_spill] sm:$0xff] %v8249_v53  ;;  %v1437_v14 = vpack.i.b16 %v1256_v54, %v1228_v4  ;;  %v8262_v52 = vpack.c.bf16 %v11007_v37, %v11007_v37  ;;  %v1605_v6 = vrot.slane %v11009_v13, 4  ;;  %v11012_v61 = vrot.slane %v11011_v11, 4  ;;  %v11018_v59 = vld [vmem:[#allocation55_spill] sm:$0xff] }
 0x21a   : > { %11005 = vst [vmem:[#allocation67_spill] sm:$0xff] %v8255_v47  ;;  %v11015_v31 = vrot.slane %v11014_v15, 4  ;;  %v8275_v44 = vpack.c.bf16 %v11016_v28, %v11016_v28  ;;  %v1661_v60 = vrot.slane %v11018_v59, 4  ;;  %v1668_v37 = vsel %vm825_vm1, %v1667_v21, %v8228_v30  ;;  %v11022_v30 = vld [vmem:[#allocation41_spill] sm:$0xff] }
 0x21b   : > { %11008 = vst [vmem:[#allocation42_spill] sm:$0xff] %v8262_v52  ;;  %v1584_v22 = vsel %vm825_vm1, %v11012_v61, %v11010_v63  ;;  %v8280_v13 = vpack.c.bf16 %v691_v19, %v691_v19  ;;  %v1633_v11 = vrot.slane %v11020_v51, 4  ;;  %v1640_v61 = vsel %vm825_vm1, %v1639_v36, %v8249_v53  ;;  %v11023_v53 = vld [vmem:[#allocation40_spill] sm:$0xff] }
 0x21c   : > { %v1612_v17 = vsel %vm825_vm1, %v11015_v31, %v11013_v9  ;;  %11017 = vst [vmem:[#allocation65_spill] sm:$0xff] %v8275_v44  ;;  %v1578_v15 = vsel %vm825_vm1, %v1577_v35, %v8255_v47  ;;  %v1955_v31 = vunpack.c.l.b16 %v1437_v14  ;;  %v1606_v28 = vsel %vm825_vm1, %v1605_v6, %v8262_v52  ;;  %v8292_v19 = vpop.f32.mrf.mxu1 }
 0x21d   : > { %11019 = vst [vmem:[#allocation66_spill] sm:$0xff] %v8280_v13  ;;  %v1588_v9 = vperm.slane %v1584_v22, %v10915_v7  ;;  %v1616_v59 = vperm.slane %v1612_v17, %v10915_v7  ;;  %v1672_v21 = vperm.slane %v1668_v37, %v10915_v7  ;;  %v1662_v51 = vsel %vm825_vm1, %v1661_v60, %v8275_v44 }
 0x21e   : > { %11021 = vst [vmem:[#allocation54_spill] sm:$0xff] %v8292_v19  ;;  %v1644_v36 = vperm.slane %v1640_v61, %v10915_v7  ;;  %v11024_v35 = vpack.i.b16 %v11022_v30, %v11023_v53  ;;  %v2856_v6 = vsel %vm1800_vm0, %v8292_v19, -inf  ;;  %v1634_v22 = vsel %vm825_vm1, %v1633_v11, %v8280_v13 }
 0x21f   : > { %2857 = vmax.xlane.f32.xlu1 %v2856_v6  ;;  %v1582_v17 = vperm.slane %v1578_v15, %v10915_v7  ;;  %v1610_v63 = vperm.slane %v1606_v28, %v10915_v7  ;;  %v1589_v52 = vrot.slane %v1588_v9, 4  ;;  %v1666_v60 = vperm.slane %v1662_v51, %v10915_v7 }
 0x220   : > { %v1954_v14 = vunpack.c.l.b16 %v11024_v35  ;;  %v1673_v61 = vrot.slane %v1672_v21, 4  ;;  %v1617_v44 = vrot.slane %v1616_v59, 4  ;;  %v1638_v30 = vperm.slane %v1634_v22, %v10915_v7 }
 0x221   : > { %v1645_v53 = vrot.slane %v1644_v36, 4  ;;  %v1439_v35 = vshrl.u32 %v1256_v54, 16  ;;  %v11025_v47 = vpack.c.b16 %v8070_v12, %v7581_v8  ;;  %v1438_v15 = vshrl.u32 %v1228_v4, 16 }
 0x222   : > { %v1956_v37 = vpack.c.b16 %v1955_v31, %v1954_v14  ;;  %v1674_v31 = vsel %vm825_vm1, %v1673_v61, %v1666_v60  ;;  %v1590_v51 = vsel %vm825_vm1, %v1589_v52, %v1582_v17  ;;  %v1618_v14 = vsel %vm825_vm1, %v1617_v44, %v1610_v63 }
 0x223   : > { %v1440_v28 = vpack.i.b16 %v1439_v35, %v1438_v15  ;;  %v1646_v6 = vsel %vm825_vm1, %v1645_v53, %v1638_v30  ;;  %v1591_v22 = vrot.slane %v1582_v17, 4  ;;  %v1596_v54 = vperm.slane %v1590_v51, %v7091_v56  ;;  %v11027_v17 = vld [vmem:[#allocation45_spill] sm:$0xff] }
 0x224   : > { %5996 = vmatmul.msk.bf16.vlgmr.msra.gmra.mxu3 %vm1800_vm0, %v11025_v47  ;;  %v1961_v11 = vsel %vm1800_vm0, %v1956_v37, 0  ;;  %v1624_v8 = vperm.slane %v1618_v14, %v7091_v56  ;;  %v1652_v12 = vperm.slane %v1646_v6, %v7091_v56  ;;  %v1680_v47 = vperm.slane %v1674_v31, %v7091_v56 }
 0x225   : > { %1970 = vmatpush.bf16.xpose.msra.mxu3 %v1961_v11  ;;  %v1619_v4 = vrot.slane %v1610_v63, 4  ;;  %v1647_v37 = vrot.slane %v1638_v30, 4  ;;  %v1675_v61 = vrot.slane %v1666_v60, 4  ;;  %v1981_v11 = vunpack.c.l.b16 %v1440_v28 }
 0x226   : > { %v1715_v35 = vpack.i.b16 %v1624_v8, %v1596_v54  ;;  %v1763_v15 = vpack.i.b16 %v1680_v47, %v1652_v12  ;;  %v1592_v52 = vsel %vm825_vm1, %v1588_v9, %v1591_v22  ;;  %v1716_v44 = vshrl.u32 %v1596_v54, 16 }
 0x227   : > { %v1717_v7 = vshrl.u32 %v1624_v8, 16  ;;  %v1980_v51 = vunpack.c.l.b16 %v11027_v17  ;;  %v1620_v31 = vsel %vm825_vm1, %v1616_v59, %v1619_v4  ;;  %v1648_v63 = vsel %vm825_vm1, %v1644_v36, %v1647_v37 }
 0x228   : > { %v8325_v13 = vunpack.c.l.b16 %v1715_v35  ;;  %v8327_v14 = vunpack.c.l.b16 %v1763_v15  ;;  %v1676_v60 = vsel %vm825_vm1, %v1672_v21, %v1675_v61  ;;  %v8335_v9 = vperm.slane %v1592_v52, %v7091_v56 }
 0x229   : > { %v1982_v28 = vpack.c.b16 %v1981_v11, %v1980_v51  ;;  %v1718_v22 = vpack.i.b16 %v1717_v7, %v1716_v44  ;;  %v1764_v35 = vshrl.u32 %v1652_v12, 16  ;;  %v1765_v15 = vshrl.u32 %v1680_v47, 16 }
 0x22a   : > { %v8322_v53 = vpop.f32.mrf.mxu2  ;;  %11028 = vst [vmem:[#allocation59_spill] sm:$0xff] %v8325_v13  ;;  %v1601_v17 = vrot.slane %v1596_v54, 4  ;;  %v1628_v59 = vperm.slane %v1620_v31, %v7091_v56  ;;  %v1656_v36 = vperm.slane %v1648_v63, %v7091_v56  ;;  %v1684_v21 = vperm.slane %v1676_v60, %v7091_v56 }
 0x22b   : > { %11026 = vst [vmem:[#allocation49_spill] sm:$0xff] %v8322_v53  ;;  %v2859_v30 = vsel %vm1800_vm0, %v8322_v53, -inf  ;;  %v1629_v4 = vrot.slane %v1624_v8, 4  ;;  %v1766_v37 = vpack.i.b16 %v1765_v15, %v1764_v35  ;;  %v4452_v61 = vunpack.c.l.b16 %v1718_v22 }
 0x22c   : > { %11029 = vst [vmem:[#allocation68_spill] sm:$0xff] %v8327_v14  ;;  %2860 = vmax.xlane.f32.xlu2 %v2859_v30  ;;  %v1602_v52 = vsel %vm825_vm1, 0, %v1601_v17  ;;  %v1657_v11 = vrot.slane %v1652_v12, 4  ;;  %v1987_v51 = vsel %vm1800_vm0, %v1982_v28, 0  ;;  %v1685_v7 = vrot.slane %v1680_v47, 4 }
 0x22d   : > { %v1630_v30 = vsel %vm825_vm1, 0, %v1629_v4  ;;  %v1722_v44 = vshrl.u32 %v1602_v52, 16  ;;  %v4453_v6 = vunpack.c.l.b16 %v1766_v37  ;;  %v1603_v12 = vrot.slane %v8335_v9, 4 }
 0x22e   : > { %v1658_v54 = vsel %vm825_vm1, 0, %v1657_v11  ;;  %v1721_v31 = vpack.i.b16 %v1630_v30, %v1602_v52  ;;  %v1723_v13 = vshrl.u32 %v1630_v30, 16  ;;  %v1686_v63 = vsel %vm825_vm1, 0, %v1685_v7 }
 0x22f   : > { %v1770_v60 = vshrl.u32 %v1658_v54, 16  ;;  %v1631_v28 = vrot.slane %v1628_v59, 4  ;;  %v8354_v22 = vpack.c.b16 %v4453_v6, %v4452_v61  ;;  %v1769_v35 = vpack.i.b16 %v1686_v63, %v1658_v54 }
 0x230   : > { %v8356_v15 = vunpack.c.l.b16 %v1721_v31  ;;  %v1724_v17 = vpack.i.b16 %v1723_v13, %v1722_v44  ;;  %v1604_v4 = vsel %vm825_vm1, 0, %v1603_v12  ;;  %v1659_v11 = vrot.slane %v1656_v36, 4 }
 0x231   : > { %11031 = vst [vmem:[#allocation57_spill] sm:$0xff] %v8354_v22  ;;  %v1632_v37 = vsel %vm825_vm1, 0, %v1631_v28  ;;  %v8360_v52 = vunpack.c.l.b16 %v1769_v35  ;;  %v1687_v30 = vrot.slane %v1684_v21, 4  ;;  %v1727_v6 = vpack.i.b16 %v1628_v59, %v8335_v9 }
 0x232   : > { %v8348_v8 = vpop.f32.mrf.mxu2  ;;  %11032 = vst [vmem:[#allocation72_spill] sm:$0xff] %v8356_v15  ;;  %v4504_v56 = vunpack.c.l.b16 %v1724_v17  ;;  %v1735_v14 = vshrl.u32 %v1632_v37, 16  ;;  %v1660_v13 = vsel %vm825_vm1, 0, %v1659_v11  ;;  %v1775_v54 = vpack.i.b16 %v1684_v21, %v1656_v36 }
 0x233   : > { %11030 = vst [vmem:[#allocation63_spill] sm:$0xff] %v8348_v8  ;;  %v2862_v47 = vsel %vm1800_vm0, %v8348_v8, -inf  ;;  %v1688_v44 = vsel %vm825_vm1, 0, %v1687_v30  ;;  %v1782_v12 = vshrl.u32 %v1660_v13, 16  ;;  %v1729_v17 = vshrl.u32 %v1628_v59, 16 }
 0x234   : > { %5997 = vmatmul.msk.bf16.vlgmr.msrb.gmra.mxu3 %vm1800_vm0, %v8102_v40  ;;  %2863 = vmax.xlane.f32.xlu0 %v2862_v47  ;;  %v1771_v40 = vshrl.u32 %v1686_v63, 16  ;;  %11033 = vst [vmem:[#allocation37_spill] sm:$0xff] %v8360_v52  ;;  %v1783_v28 = vshrl.u32 %v1688_v44, 16  ;;  %v8367_v47 = vunpack.c.l.b16 %v1727_v6  ;;  %v8369_v35 = vunpack.c.l.b16 %v1775_v54 }
 0x235   : > { %1996 = vmatpush.bf16.xpose.msrb.mxu3 %v1987_v51  ;;  %v1734_v51 = vshrl.u32 %v1604_v4, 16  ;;  %v1776_v15 = vshrl.u32 %v1656_v36, 16  ;;  %v1781_v52 = vpack.i.b16 %v1688_v44, %v1660_v13  ;;  %v1785_v36 = vlaneseq }
 0x236   : > { %v1772_v7 = vpack.i.b16 %v1771_v40, %v1770_v60  ;;  %11034 = vst [vmem:[#allocation50_spill] sm:$0xff] %v8367_v47  ;;  %v1728_v60 = vshrl.u32 %v8335_v9, 16  ;;  %v1784_v22 = vpack.i.b16 %v1783_v28, %v1782_v12  ;;  %v6449_v28 = vmov 0.0  }
 0x237   : > { %v1736_v63 = vpack.i.b16 %v1735_v14, %v1734_v51  ;;  %11035 = vst [vmem:[#allocation35_spill] sm:$0xff] %v8369_v35  ;;  %v1733_v14 = vpack.i.b16 %v1632_v37, %v1604_v4  ;;  %v8380_v9 = vunpack.c.l.b16 %v1781_v52  ;;  %v8394_v4 = vshrl.u32 %v1785_v36, 7 }
 0x238   : > { %v4505_v31 = vunpack.c.l.b16 %v1772_v7  ;;  %v1730_v30 = vpack.i.b16 %v1729_v17, %v1728_v60  ;;  %v1777_v7 = vshrl.u32 %v1684_v21, 16  ;;  %v4609_v51 = vunpack.c.l.b16 %v1784_v22 }
 0x239   : > { %v4608_v61 = vunpack.c.l.b16 %v1736_v63  ;;  %v8376_v54 = vunpack.c.l.b16 %v1733_v14  ;;  %11039 = vst [vmem:[#allocation20_spill] sm:$0xff] %v8380_v9  ;;  %v11041_v21 = vpack.c.b16 %v8104_v55, %v7615_v0  ;;  %v11042_v22 = vpack.c.b16 %v8110_v48, %v7624_v46  ;;  %6118 = vset.pattern.permute.xlu2 %v8394_v4 }
 0x23a   : > { %v8372_v40 = vpack.c.b16 %v4505_v31, %v4504_v56  ;;  %v1778_v6 = vpack.i.b16 %v1777_v7, %v1776_v15  ;;  %v4556_v53 = vunpack.c.l.b16 %v1730_v30  ;;  %11043 = vst [vmem:[#allocation31_spill] sm:$0xff] %v8394_v4  ;;  %v8398_v37 = vadd.s32 8, %v8394_v4 }
 0x23b   : > { %11037 = vst [vmem:[#allocation10_spill] sm:$0xff] %v8376_v54  ;;  %v8378_v8 = vpack.c.b16 %v4609_v51, %v4608_v61  ;;  %v2013_v15 = vsel %vm1800_vm0, %v11042_v22, 0  ;;  %v2039_v46 = vsel %vm1800_vm0, %v8130_v18, 0  ;;  %v8417_v13 = vand.u32 127, %v1785_v36 }
 0x23c   : > { %11036 = vst [vmem:[#allocation77_spill] sm:$0xff] %v8372_v40  ;;  %v4557_v56 = vunpack.c.l.b16 %v1778_v6  ;;  %6117 = vset.pattern.permute.xlu0 %v8398_v37  ;;  %v11049_v18 = vpack.c.b16 %v8112_v16, %v7629_v29  ;;  %v11050_v63 = vpack.c.b16 %v8132_v57, %v7635_v39  ;;  %v2091_v14 = vsel %vm1800_vm0, %v8161_v5, 0 }
 0x23d   : > { %11038 = vst [vmem:[#allocation78_spill] sm:$0xff] %v8378_v8  ;;  %vm1790_vm2 = vcmp.eq.s32.totalorder %v8394_v4, %v8417_v13  ;;  %vm1791_vm3 = vcmp.eq.s32.totalorder %v8398_v37, %v8417_v13  ;;  %v11056_v5 = vpack.c.b16 %v8178_v24, %v10979_v34 }
 0x23e   : > { %v8384_v31 = vpack.c.b16 %v4557_v56, %v4556_v53  ;;  %11044 = vst [vmem:[#allocation47_spill] sm:$0xff] %v8398_v37  ;;  %v2065_v12 = vsel %vm1800_vm0, %v11050_v63, 0  ;;  %v8433_v60 = vsel %vm1790_vm2, -inf, %v6449_v28  ;;  %v8442_v16 = vsel %vm1791_vm3, -inf, %v6449_v28 }
 0x240   : > { %11040 = vst [vmem:[#allocation25_spill] sm:$0xff] %v8384_v31 }
 0x244   : > { %5998 = vmatmul.msk.bf16.vlgmr.msra.gmra.mxu3 %vm1800_vm0, %v11041_v21 }
 0x245   : > { %2022 = vmatpush.bf16.xpose.msra.mxu3 %v2013_v15  ;;  %v2117_v15 = vsel %vm1800_vm0, %v11056_v5, 0 }
 0x248   : > { %v8401_v53 = vpop.f32.mrf.mxu0 }
 0x249   : > { %11045 = vst [vmem:[#allocation55_spill] sm:$0xff] %v8401_v53  ;;  %v2871_v0 = vsel %vm1800_vm0, %v8401_v53, -inf }
 0x24a   : > { %2872 = vmax.xlane.f32.xlu0 %v2871_v0 }
 0x250   : > { %v8405_v55 = vpop.f32.mrf.mxu0 }
 0x251   : > { %11046 = vst [vmem:[#allocation83_spill] sm:$0xff] %v8405_v55  ;;  %v2874_v48 = vsel %vm1800_vm0, %v8405_v55, -inf }
 0x252   : > { %2875 = vmax.xlane.f32.xlu1 %v2874_v48 }
 0x254   : > { %5999 = vmatmul.msk.bf16.vlgmr.msrb.gmra.mxu3 %vm1800_vm0, %v8121_v20 }
 0x255   : > { %2048 = vmatpush.bf16.xpose.msrb.mxu3 %v2039_v46  ;;  %v8413_v52 = vpop.f32.mrf.mxu1 }
 0x256   : > { %11047 = vst [vmem:[#allocation41_spill] sm:$0xff] %v8413_v52  ;;  %v2877_v61 = vsel %vm1800_vm0, %v8413_v52, -inf }
 0x257   : > { %2878 = vmax.xlane.f32.xlu2 %v2877_v61 }
 0x25d   : > { %v8419_v44 = vpop.f32.mrf.mxu1 }
 0x25e   : > { %11048 = vst [vmem:[#allocation40_spill] sm:$0xff] %v8419_v44  ;;  %v2880_v20 = vsel %vm1800_vm0, %v8419_v44, -inf }
 0x25f   : > { %2881 = vmax.xlane.f32.xlu0 %v2880_v20 }
 0x264   : > { %6000 = vmatmul.msk.bf16.vlgmr.msra.gmra.mxu3 %vm1800_vm0, %v11049_v18  ;;  %v1816_v17 = vpop.f32.mrf.mxu3 }
 0x265   : > { %2074 = vmatpush.bf16.xpose.msra.mxu3 %v2065_v12  ;;  %v8436_v30 = vadd.f32 %v1816_v17, %v8433_v60 }
 0x267   : > { %11051 = vst [vmem:[#allocation45_spill] sm:$0xff] %v8436_v30  ;;  %v2691_v29 = vsel %vm1800_vm0, %v8436_v30, -inf }
 0x268   : > { %2692 = vmax.xlane.f32.xlu0 %v2691_v29 }
 0x26c   : > { %v1818_v39 = vpop.f32.mrf.mxu3 }
 0x26d   : > { %v8445_v57 = vadd.f32 %v1818_v39, %v8442_v16 }
 0x26f   : > { %11052 = vst [vmem:[#allocation92_spill] sm:$0xff] %v8445_v57  ;;  %v2694_v7 = vsel %vm1800_vm0, %v8445_v57, -inf }
 0x270   : > { %2695 = vmax.xlane.f32.xlu0 %v2694_v7 }
 0x274   : > { %6001 = vmatmul.msk.bf16.vlgmr.msrb.gmra.mxu3 %vm1800_vm0, %v8156_v50  ;;  %v11055_v50 = vpack.c.b16 %v8163_v43, %v10976_v49  ;;  %v2143_v49 = vsel %vm1800_vm0, %v8204_v33, 0  ;;  %v11062_v33 = vpack.c.b16 %v8206_v2, %v10988_v3 }
 0x275   : > { %2100 = vmatpush.bf16.xpose.msrb.mxu3 %v2091_v14 }
 0x276   : > { %v1842_v51 = vpop.f32.mrf.mxu3  ;;  %v2169_v17 = vsel %vm1800_vm0, %v11062_v33, 0 }
 0x277   : > { %v8454_v6 = vadd.f32 %v1842_v51, %v8433_v60 }
 0x279   : > { %11053 = vst [vmem:[#allocation93_spill] sm:$0xff] %v8454_v6  ;;  %v2697_v56 = vsel %vm1800_vm0, %v8454_v6, -inf }
 0x27a   : > { %2698 = vmax.xlane.f32.xlu1 %v2697_v56 }
 0x27e   : > { %v1844_v36 = vpop.f32.mrf.mxu3 }
 0x27f   : > { %v8459_v21 = vadd.f32 %v1844_v36, %v8442_v16  ;;  %v11066_v36 = vld [vmem:[#allocation38_spill] sm:$0xff] }
 0x281   : > { %11054 = vst [vmem:[#allocation94_spill] sm:$0xff] %v8459_v21  ;;  %v2700_v22 = vsel %vm1800_vm0, %v8459_v21, -inf }
 0x282   : > { %2701 = vmax.xlane.f32.xlu1 %v2700_v22  ;;  %v2219_v22 = vunpack.c.l.b16 %v11066_v36 }
 0x284   : > { %6002 = vmatmul.msk.bf16.vlgmr.msra.gmra.mxu3 %vm1800_vm0, %v11055_v50  ;;  %v11067_v50 = vld [vmem:[#allocation13_spill] sm:$0xff] }
 0x285   : > { %2126 = vmatpush.bf16.xpose.msra.mxu3 %v2117_v15  ;;  %v2218_v5 = vunpack.c.l.b16 %v11067_v50 }
 0x286   : > { %v1868_v0 = vpop.f32.mrf.mxu3 }
 0x287   : > { %v8472_v46 = vadd.f32 %v1868_v0, %v8433_v60 }
 0x289   : > { %11057 = vst [vmem:[#allocation95_spill] sm:$0xff] %v8472_v46  ;;  %v2703_v48 = vsel %vm1800_vm0, %v8472_v46, -inf }
 0x28a   : > { %2704 = vmax.xlane.f32.xlu2 %v2703_v48  ;;  %v11069_v48 = vpack.c.b16 %v8215_v25, %v10998_v41 }
 0x28e   : > { %v1870_v61 = vpop.f32.mrf.mxu3 }
 0x28f   : > { %v8477_v20 = vadd.f32 %v1870_v61, %v8442_v16 }
 0x291   : > { %11058 = vst [vmem:[#allocation96_spill] sm:$0xff] %v8477_v20  ;;  %v2706_v43 = vsel %vm1800_vm0, %v8477_v20, -inf }
 0x292   : > { %2707 = vmax.xlane.f32.xlu2 %v2706_v43 }
 0x294   : > { %6003 = vmatmul.msk.bf16.vlgmr.msrb.gmra.mxu3 %vm1800_vm0, %v8192_v1  ;;  %v11061_v1 = vpack.c.b16 %v8168_v38, %v10977_v42  ;;  %v2195_v42 = vsel %vm1800_vm0, %v8241_v62, 0 }
 0x295   : > { %2152 = vmatpush.bf16.xpose.msrb.mxu3 %v2143_v49 }
 0x297   : > { %v1894_v24 = vpop.f32.mrf.mxu3 }
 0x298   : > { %v8486_v34 = vadd.f32 %v1894_v24, %v8433_v60 }
 0x29a   : > { %11059 = vst [vmem:[#allocation97_spill] sm:$0xff] %v8486_v34  ;;  %v2709_v18 = vsel %vm1800_vm0, %v8486_v34, -inf }
 0x29b   : > { %2710 = vmax.xlane.f32.xlu0 %v2709_v18  ;;  %v11071_v18 = vld [vmem:[#allocation43_spill] sm:$0xff] }
 0x29f   : > { %v1896_v63 = vpop.f32.mrf.mxu3 }
 0x2a0   : > { %v8491_v12 = vadd.f32 %v1896_v63, %v8442_v16  ;;  %v2249_v63 = vunpack.c.l.b16 %v11071_v18  ;;  %v11081_v18 = vld [vmem:[#allocation16_spill] sm:$0xff] }
 0x2a2   : > { %11060 = vst [vmem:[#allocation98_spill] sm:$0xff] %v8491_v12  ;;  %v2712_v28 = vsel %vm1800_vm0, %v8491_v12, -inf }
 0x2a3   : > { %2713 = vmax.xlane.f32.xlu1 %v2712_v28  ;;  %v11072_v28 = vld [vmem:[#allocation17_spill] sm:$0xff] }
 0x2a4   : > { %6004 = vmatmul.msk.bf16.vlgmr.msra.gmra.mxu3 %vm1800_vm0, %v11061_v1  ;;  %v2248_v1 = vunpack.c.l.b16 %v11072_v28  ;;  %v11082_v28 = vld [vmem:[#allocation22_spill] sm:$0xff] }
 0x2a5   : > { %2178 = vmatpush.bf16.xpose.msra.mxu3 %v2169_v17 }
 0x2a6   : > { %v2250_v41 = vpack.c.b16 %v2249_v63, %v2248_v1  ;;  %v2243_v63 = vunpack.c.l.b16 %v11081_v18  ;;  %v2244_v1 = vunpack.c.l.b16 %v11082_v28  ;;  %v1740_v18 = vshrl.u32 %v7952_v45, 16 }
 0x2a7   : > { %v1920_v29 = vpop.f32.mrf.mxu3 }
 0x2a8   : > { %v8504_v39 = vadd.f32 %v1920_v29, %v8433_v60  ;;  %v2255_v29 = vsel %vm1800_vm0, %v2250_v41, 0 }
 0x2aa   : > { %11063 = vst [vmem:[#allocation99_spill] sm:$0xff] %v8504_v39  ;;  %v2715_v7 = vsel %vm1800_vm0, %v8504_v39, -inf }
 0x2ab   : > { %2716 = vmax.xlane.f32.xlu2 %v2715_v7 }
 0x2af   : > { %v1922_v14 = vpop.f32.mrf.mxu3 }
 0x2b0   : > { %v8509_v51 = vadd.f32 %v1922_v14, %v8442_v16 }
 0x2b2   : > { %11064 = vst [vmem:[#allocation100_spill] sm:$0xff] %v8509_v51  ;;  %v2718_v38 = vsel %vm1800_vm0, %v8509_v51, -inf }
 0x2b3   : > { %2719 = vmax.xlane.f32.xlu0 %v2718_v38 }
 0x2b4   : > { %6005 = vmatmul.msk.bf16.vlgmr.msrb.gmra.mxu3 %vm1800_vm0, %v8210_v58  ;;  %v2220_v58 = vpack.c.b16 %v2219_v22, %v2218_v5 }
 0x2b5   : > { %2204 = vmatpush.bf16.xpose.msrb.mxu3 %v2195_v42  ;;  %v11075_v42 = vld [vmem:[#allocation12_spill] sm:$0xff] }
 0x2b6   : > { %v2225_v61 = vsel %vm1800_vm0, %v2220_v58, 0 }
 0x2b7   : > { %v1946_v2 = vpop.f32.mrf.mxu3 }
 0x2b8   : > { %v8518_v3 = vadd.f32 %v1946_v2, %v8433_v60  ;;  %v2213_v2 = vunpack.c.l.b16 %v11075_v42 }
 0x2ba   : > { %11065 = vst [vmem:[#allocation101_spill] sm:$0xff] %v8518_v3  ;;  %v2721_v56 = vsel %vm1800_vm0, %v8518_v3, -inf }
 0x2bb   : > { %2722 = vmax.xlane.f32.xlu1 %v2721_v56  ;;  %v11076_v56 = vld [vmem:[#allocation15_spill] sm:$0xff] }
 0x2bc   : > { %v2214_v36 = vunpack.c.l.b16 %v11076_v56 }
 0x2bf   : > { %v1948_v15 = vpop.f32.mrf.mxu3 }
 0x2c0   : > { %v8525_v0 = vadd.f32 %v1948_v15, %v8442_v16  ;;  %v11078_v15 = vld [vmem:[#allocation70_spill] sm:$0xff] }
 0x2c1   : > { %v2375_v58 = vsel %vm1800_vm0, %v11078_v15, 0 }
 0x2c2   : > { %11068 = vst [vmem:[#allocation38_spill] sm:$0xff] %v8525_v0  ;;  %v2724_v62 = vsel %vm1800_vm0, %v8525_v0, -inf }
 0x2c3   : > { %2725 = vmax.xlane.f32.xlu2 %v2724_v62 }
 0x2c4   : > { %6006 = vmatmul.msk.bf16.vlgmr.msra.gmra.mxu3 %vm1800_vm0, %v11069_v48 }
 0x2c5   : > { %2234 = vmatpush.bf16.xpose.msra.mxu3 %v2225_v61 }
 0x2c7   : > { %v1972_v43 = vpop.f32.mrf.mxu3 }
 0x2c8   : > { %v8535_v49 = vadd.f32 %v1972_v43, %v8433_v60  ;;  %v11080_v43 = vld [vmem:[#allocation90_spill] sm:$0xff] }
 0x2ca   : > { %11070 = vst [vmem:[#allocation13_spill] sm:$0xff] %v8535_v49  ;;  %v2727_v24 = vsel %vm1800_vm0, %v8535_v49, -inf }
 0x2cb   : > { %2728 = vmax.xlane.f32.xlu0 %v2727_v24  ;;  %v2489_v24 = vunpack.c.l.b16 %v11080_v43  ;;  %v1692_v43 = vshrl.u32 %v7944_v27, 16 }
 0x2cf   : > { %v1974_v33 = vpop.f32.mrf.mxu3 }
 0x2d0   : > { %v8542_v25 = vadd.f32 %v1974_v33, %v8442_v16  ;;  %v11083_v33 = vld [vmem:[#allocation87_spill] sm:$0xff] }
 0x2d1   : > { %v2488_v41 = vunpack.c.l.b16 %v11083_v33 }
 0x2d2   : > { %11073 = vst [vmem:[#allocation43_spill] sm:$0xff] %v8542_v25  ;;  %v2730_v17 = vsel %vm1800_vm0, %v8542_v25, -inf }
 0x2d3   : > { %2731 = vmax.xlane.f32.xlu1 %v2730_v17 }
 0x2d4   : > { %6007 = vmatmul.msk.bf16.vlgmr.msrb.gmra.mxu3 %vm1800_vm0, %v8258_v10  ;;  %v2215_v10 = vpack.c.b16 %v2214_v36, %v2213_v2 }
 0x2d5   : > { %2264 = vmatpush.bf16.xpose.msrb.mxu3 %v2255_v29 }
 0x2d7   : > { %v1998_v7 = vpop.f32.mrf.mxu3 }
 0x2d8   : > { %v8550_v14 = vadd.f32 %v1998_v7, %v8433_v60  ;;  %v2490_v7 = vpack.c.b16 %v2489_v24, %v2488_v41  ;;  %v1693_v24 = vshrl.u32 %v7948_v23, 16 }
 0x2da   : > { %11074 = vst [vmem:[#allocation17_spill] sm:$0xff] %v8550_v14  ;;  %v2733_v38 = vsel %vm1800_vm0, %v8550_v14, -inf  ;;  %v2495_v2 = vsel %vm1800_vm0, %v2490_v7, 0  ;;  %v1694_v33 = vpack.i.b16 %v1693_v24, %v1692_v43  ;;  %v11090_v7 = vld [vmem:[#allocation89_spill] sm:$0xff]  ;;  %v11095_v24 = vld [vmem:[#allocation74_spill] sm:$0xff] }
 0x2db   : > { %2734 = vmax.xlane.f32.xlu2 %v2733_v38  ;;  %v2245_v38 = vpack.c.b16 %v2244_v1, %v2243_v63  ;;  %v1741_v63 = vshrl.u32 %v7955_v26, 16 }
 0x2dd   : > { %v1742_v41 = vpack.i.b16 %v1741_v63, %v1740_v18  ;;  %v1753_v18 = vshrl.u32 %v11095_v24, 16 }
 0x2df   : > { %v2000_v22 = vpop.f32.mrf.mxu3  ;;  %v4245_v23 = vunpack.c.l.b16 %v1742_v41 }
 0x2e0   : > { %v8557_v50 = vadd.f32 %v2000_v22, %v8442_v16 }
 0x2e2   : > { %11077 = vst [vmem:[#allocation12_spill] sm:$0xff] %v8557_v50  ;;  %v2736_v5 = vsel %vm1800_vm0, %v8557_v50, -inf }
 0x2e3   : > { %2737 = vmax.xlane.f32.xlu0 %v2736_v5 }
 0x2e4   : > { %6008 = vmatmul.msk.bf16.vlgmr.msra.gmra.mxu3 %vm1800_vm0, %v2215_v10 }
 0x2e5   : > { %2384 = vmatpush.bf16.xpose.msra.mxu3 %v2375_v58  ;;  %v11087_v58 = vld [vmem:[#allocation19_spill] sm:$0xff] }
 0x2e7   : > { %v2024_v62 = vpop.f32.mrf.mxu3 }
 0x2e8   : > { %v8565_v48 = vadd.f32 %v2024_v62, %v8433_v60  ;;  %v2615_v62 = vsel %vm1800_vm0, %v8221_v32, 0  ;;  %v11089_v32 = vld [vmem:[#allocation86_spill] sm:$0xff] }
 0x2ea   : > { %11079 = vst [vmem:[#allocation15_spill] sm:$0xff] %v8565_v48  ;;  %v2739_v61 = vsel %vm1800_vm0, %v8565_v48, -inf }
 0x2eb   : > { %2740 = vmax.xlane.f32.xlu1 %v2739_v61 }
 0x2ef   : > { %v2026_v17 = vpop.f32.mrf.mxu3 }
 0x2f0   : > { %v8574_v29 = vadd.f32 %v2026_v17, %v8442_v16  ;;  %v2483_v17 = vunpack.c.l.b16 %v11089_v32 }
 0x2f2   : > { %11084 = vst [vmem:[#allocation70_spill] sm:$0xff] %v8574_v29  ;;  %v2742_v42 = vsel %vm1800_vm0, %v8574_v29, -inf }
 0x2f3   : > { %2743 = vmax.xlane.f32.xlu2 %v2742_v42  ;;  %v4244_v42 = vunpack.c.l.b16 %v1694_v33 }
 0x2f4   : > { %6009 = vmatmul.msk.bf16.vlgmr.msrb.gmra.mxu3 %vm1800_vm0, %v2245_v38  ;;  %v2484_v38 = vunpack.c.l.b16 %v11090_v7 }
 0x2f5   : > { %2504 = vmatpush.bf16.xpose.msrb.mxu3 %v2495_v2 }
 0x2f6   : > { %v2485_v26 = vpack.c.b16 %v2484_v38, %v2483_v17 }
 0x2f7   : > { %v2050_v56 = vpop.f32.mrf.mxu3 }
 0x2f8   : > { %v8581_v36 = vadd.f32 %v2050_v56, %v8433_v60  ;;  %v4246_v56 = vpack.c.b16 %v4245_v23, %v4244_v42  ;;  %v11098_v23 = vld [vmem:[#allocation46_spill] sm:$0xff] }
 0x2fa   : > { %11085 = vst [vmem:[#allocation90_spill] sm:$0xff] %v8581_v36  ;;  %v2745_v22 = vsel %vm1800_vm0, %v8581_v36, -inf }
 0x2fb   : > { %2746 = vmax.xlane.f32.xlu0 %v2745_v22 }
 0x2ff   : > { %v2052_v10 = vpop.f32.mrf.mxu3 }
 0x300   : > { %v8586_v5 = vadd.f32 %v2052_v10, %v8442_v16  ;;  %v11092_v10 = vld [vmem:[#allocation81_spill] sm:$0xff] }
 0x302   : > { %11086 = vst [vmem:[#allocation16_spill] sm:$0xff] %v8586_v5  ;;  %v2748_v15 = vsel %vm1800_vm0, %v8586_v5, -inf }
 0x303   : > { %2749 = vmax.xlane.f32.xlu1 %v2748_v15  ;;  %v1704_v15 = vshrl.u32 %v11092_v10, 16 }
 0x304   : > { %6013 = vmatmul.msk.bf16.vlgmr.msra.gmra.mxu3 %vm1800_vm0, %v11087_v58  ;;  %v11093_v58 = vld [vmem:[#allocation82_spill] sm:$0xff] }
 0x305   : > { %2624 = vmatpush.bf16.xpose.msra.mxu3 %v2615_v62  ;;  %v1705_v62 = vshrl.u32 %v11093_v58, 16 }
 0x307   : > { %v2076_v61 = vpop.f32.mrf.mxu3  ;;  %v1706_v33 = vpack.i.b16 %v1705_v62, %v1704_v15 }
 0x308   : > { %v8599_v28 = vadd.f32 %v2076_v61, %v8433_v60  ;;  %v11094_v61 = vld [vmem:[#allocation64_spill] sm:$0xff] }
 0x309   : > { %v1752_v43 = vshrl.u32 %v11094_v61, 16  ;;  %v4348_v17 = vunpack.c.l.b16 %v1706_v33 }
 0x30a   : > { %11088 = vst [vmem:[#allocation22_spill] sm:$0xff] %v8599_v28  ;;  %v2751_v1 = vsel %vm1800_vm0, %v8599_v28, -inf }
 0x30b   : > { %2752 = vmax.xlane.f32.xlu2 %v2751_v1  ;;  %v1754_v41 = vpack.i.b16 %v1753_v18, %v1752_v43 }
 0x30d   : > { %v4349_v7 = vunpack.c.l.b16 %v1754_v41  ;;  %v8650_v41 = vpop.xlane.xlu0 %2800 }
 0x30f   : > { %v2078_v27 = vpop.f32.mrf.mxu3  ;;  %v4350_v42 = vpack.c.b16 %v4349_v7, %v4348_v17 }
 0x310   : > { %v8606_v45 = vadd.f32 %v2078_v27, %v8442_v16 }
 0x312   : > { %11091 = vst [vmem:[#allocation87_spill] sm:$0xff] %v8606_v45  ;;  %v2754_v2 = vsel %vm1800_vm0, %v8606_v45, -inf }
 0x313   : > { %2755 = vmax.xlane.f32.xlu0 %v2754_v2 }
 0x314   : > { %6017 = vmatmul.msk.bf16.vlgmr.msrb.gmra.mxu3 %vm1800_vm0, %v2485_v26 }
 0x315   : > { %4258 = vmatpush.bf16.msrb.mxu3 %v4246_v56 }
 0x317   : > { %v2102_v22 = vpop.f32.mrf.mxu3 }
 0x318   : > { %v8616_v63 = vadd.f32 %v2102_v22, %v8433_v60 }
 0x31a   : > { %11096 = vst [vmem:[#allocation19_spill] sm:$0xff] %v8616_v63  ;;  %v2757_v1 = vsel %vm1800_vm0, %v8616_v63, -inf }
 0x31b   : > { %2758 = vmax.xlane.f32.xlu1 %v2757_v1 }
 0x31f   : > { %v2104_v32 = vpop.f32.mrf.mxu3 }
 0x320   : > { %v8621_v38 = vadd.f32 %v2104_v32, %v8442_v16 }
 0x322   : > { %11097 = vst [vmem:[#allocation86_spill] sm:$0xff] %v8621_v38  ;;  %v2760_v27 = vsel %vm1800_vm0, %v8621_v38, -inf }
 0x323   : > { %2761 = vmax.xlane.f32.xlu2 %v2760_v27  ;;  %v8657_v27 = vpop.xlane.xlu1 %2812 }
 0x324   : > { %6021 = vmatmul.msk.bf16.vlgmr.msra.gmra.mxu3 %vm1800_vm0, %v11098_v23  ;;  %v8661_v23 = vpop.xlane.xlu0 %2809 }
 0x325   : > { %4362 = vmatpush.bf16.msra.mxu3 %v4350_v42 }
 0x327   : > { %v2128_v26 = vpop.f32.mrf.mxu3 }
 0x328   : > { %v8628_v2 = vadd.f32 %v2128_v26, %v8433_v60 }
 0x32a   : > { %11099 = vst [vmem:[#allocation89_spill] sm:$0xff] %v8628_v2  ;;  %v2763_v56 = vsel %vm1800_vm0, %v8628_v2, -inf }
 0x32b   : > { %2764 = vmax.xlane.f32.xlu0 %v2763_v56 }
 0x32f   : > { %v2130_v22 = vpop.f32.mrf.mxu3 }
 0x330   : > { %v8633_v10 = vadd.f32 %v2130_v22, %v8442_v16  ;;  %v8666_v22 = vpop.xlane.xlu2 %2806 }
 0x332   : > { %11100 = vst [vmem:[#allocation81_spill] sm:$0xff] %v8633_v10  ;;  %v2766_v15 = vsel %vm1800_vm0, %v8633_v10, -inf }
 0x333   : > { %2767 = vmax.xlane.f32.xlu1 %v2766_v15 }
 0x337   : > { %v2154_v58 = vpop.f32.mrf.mxu3 }
 0x338   : > { %v8638_v62 = vadd.f32 %v2154_v58, %v8433_v60  ;;  %v8670_v58 = vpop.xlane.xlu1 %2803 }
 0x33a   : > { %11101 = vst [vmem:[#allocation82_spill] sm:$0xff] %v8638_v62  ;;  %v2769_v61 = vsel %vm1800_vm0, %v8638_v62, -inf }
 0x33b   : > { %2770 = vmax.xlane.f32.xlu2 %v2769_v61  ;;  %v8672_v61 = vpop.xlane.xlu0 %2827 }
 0x33f   : > { %v2156_v43 = vpop.f32.mrf.mxu3 }
 0x340   : > { %v8643_v24 = vadd.f32 %v2156_v43, %v8442_v16 }
 0x342   : > { %11102 = vst [vmem:[#allocation64_spill] sm:$0xff] %v8643_v24  ;;  %v2772_v18 = vsel %vm1800_vm0, %v8643_v24, -inf }
 0x343   : > { %2773 = vmax.xlane.f32.xlu0 %v2772_v18 }
 0x347   : > { %v2180_v1 = vpop.f32.mrf.mxu3 }
 0x348   : > { %v8648_v33 = vadd.f32 %v2180_v1, %v8433_v60  ;;  %v8677_v1 = vpop.xlane.xlu2 %2815 }
 0x34a   : > { %11103 = vst [vmem:[#allocation74_spill] sm:$0xff] %v8648_v33  ;;  %v2775_v32 = vsel %vm1800_vm0, %v8648_v33, -inf }
 0x34b   : > { %2776 = vmax.xlane.f32.xlu1 %v2775_v32  ;;  %v8681_v32 = vpop.xlane.xlu1 %2830 }
 0x34f   : > { %v2182_v17 = vpop.f32.mrf.mxu3 }
 0x350   : > { %v8655_v7 = vadd.f32 %v2182_v17, %v8442_v16  ;;  %v8683_v17 = vpop.xlane.xlu0 %2836 }
 0x352   : > { %11104 = vst [vmem:[#allocation46_spill] sm:$0xff] %v8655_v7  ;;  %v2778_v42 = vsel %vm1800_vm0, %v8655_v7, -inf }
 0x353   : > { %2779 = vmax.xlane.f32.xlu2 %v2778_v42 }
 0x357   : > { %v2206_v26 = vpop.f32.mrf.mxu3 }
 0x358   : > { %v8664_v56 = vadd.f32 %v2206_v26, %v8433_v60 }
 0x35a   : > { %11105 = vst [vmem:[#allocation102_spill] sm:$0xff] %v8664_v56  ;;  %v2781_v15 = vsel %vm1800_vm0, %v8664_v56, -inf }
 0x35b   : > { %2782 = vmax.xlane.f32.xlu0 %v2781_v15  ;;  %v8689_v15 = vpop.xlane.xlu2 %2824 }
 0x35f   : > { %v2208_v43 = vpop.f32.mrf.mxu3 }
 0x360   : > { %v8675_v18 = vadd.f32 %v2208_v43, %v8442_v16  ;;  %v8691_v16 = vpop.xlane.xlu1 %2839  ;;  %v8693_v43 = vpop.xlane.xlu0 %2854 }
 0x362   : > { %11106 = vst [vmem:[#allocation103_spill] sm:$0xff] %v8675_v18  ;;  %v2784_v60 = vsel %vm1800_vm0, %v8675_v18, -inf }
 0x363   : > { %2785 = vmax.xlane.f32.xlu1 %v2784_v60  ;;  %v8699_v11 = vpop.xlane.xlu2 %2833 }
 0x367   : > { %v8685_v42 = vpop.f32.mrf.mxu3 }
 0x368   : > { %11107 = vst [vmem:[#allocation104_spill] sm:$0xff] %v8685_v42  ;;  %v2787_v26 = vsel %vm1800_vm0, %v8685_v42, -inf  ;;  %v8701_v52 = vpop.xlane.xlu1 %2848  ;;  %v8703_v53 = vpop.xlane.xlu0 %2863 }
 0x369   : > { %2788 = vmax.xlane.f32.xlu2 %v2787_v26 }
 0x36b   : > { %v8709_v7 = vpop.xlane.xlu2 %2851 }
 0x36f   : > { %v8695_v59 = vpop.f32.mrf.mxu3 }
 0x370   : > { %11108 = vst [vmem:[#allocation105_spill] sm:$0xff] %v8695_v59  ;;  %v2790_v60 = vsel %vm1800_vm0, %v8695_v59, -inf  ;;  %v8711_v56 = vpop.xlane.xlu1 %2857  ;;  %v8713_v18 = vpop.xlane.xlu0 %2872 }
 0x371   : > { %2791 = vmax.xlane.f32.xlu0 %v2790_v60 }
 0x373   : > { %v8719_v24 = vpop.xlane.xlu2 %2860 }
 0x377   : > { %v8705_v33 = vpop.f32.mrf.mxu3 }
 0x378   : > { %v2793_v26 = vsel %vm1800_vm0, %v8705_v33, -inf  ;;  %v8721_v63 = vpop.xlane.xlu1 %2875  ;;  %v8723_v62 = vpop.xlane.xlu0 %2881 }
 0x379   : > { %2794 = vmax.xlane.f32.xlu1 %v2793_v26 }
 0x37b   : > { %v8729_v9 = vpop.xlane.xlu2 %2878 }
 0x37f   : > { %v8715_v38 = vpop.f32.mrf.mxu3 }
 0x380   : > { %11109 = vst [vmem:[#allocation106_spill] sm:$0xff] %v8715_v38  ;;  %v2796_v60 = vsel %vm1800_vm0, %v8715_v38, -inf  ;;  %v2699_v36 = vpop.xlane.xlu1 %2698  ;;  %v2693_v45 = vpop.xlane.xlu0 %2692 }
 0x381   : > { %2797 = vmax.xlane.f32.xlu2 %v2796_v60  ;;  %v2920_v30 = vperm.slane %v2699_v36, %v8417_v13 }
 0x383   : > { %v2705_v31 = vpop.xlane.xlu2 %2704 }
 0x387   : > { %v8725_v54 = vpop.f32.mrf.mxu3 }
 0x388   : > { %11110 = vst [vmem:[#allocation107_spill] sm:$0xff] %v8725_v54  ;;  %v2817_v26 = vsel %vm1800_vm0, %v8725_v54, -inf  ;;  %v2702_v44 = vpop.xlane.xlu1 %2701  ;;  %v2696_v49 = vpop.xlane.xlu0 %2695 }
 0x389   : > { %2818 = vmax.xlane.f32.xlu0 %v2817_v26 }
 0x38b   : > { %v2708_v26 = vpop.xlane.xlu2 %2707 }
 0x38f   : > { %v8731_v5 = vpop.f32.mrf.mxu3 }
 0x390   : > { %11111 = vst [vmem:[#allocation108_spill] sm:$0xff] %v8731_v5  ;;  %v2820_v60 = vsel %vm1800_vm0, %v8731_v5, -inf  ;;  %v2714_v55 = vpop.xlane.xlu1 %2713  ;;  %v2711_v35 = vpop.xlane.xlu0 %2710 }
 0x391   : > { %2821 = vmax.xlane.f32.xlu1 %v2820_v60  ;;  %v2926_v54 = vperm.slane %v2711_v35, %v8417_v13 }
 0x393   : > { %v2717_v28 = vpop.xlane.xlu2 %2716 }
 0x397   : > { %v8735_v25 = vpop.f32.mrf.mxu3 }
 0x398   : > { %11112 = vst [vmem:[#allocation109_spill] sm:$0xff] %v8735_v25  ;;  %v2841_v10 = vsel %vm1800_vm0, %v8735_v25, -inf  ;;  %v2723_v3 = vpop.xlane.xlu1 %2722  ;;  %v2720_v25 = vpop.xlane.xlu0 %2719 }
 0x399   : > { %2842 = vmax.xlane.f32.xlu2 %v2841_v10  ;;  %v2932_v35 = vperm.slane %v2723_v3, %v8417_v13 }
 0x39b   : > { %v2726_v10 = vpop.xlane.xlu2 %2725 }
 0x39f   : > { %v8739_v2 = vpop.f32.mrf.mxu3 }
 0x3a0   : > { %11113 = vst [vmem:[#allocation110_spill] sm:$0xff] %v8739_v2  ;;  %v2844_v47 = vsel %vm1800_vm0, %v8739_v2, -inf  ;;  %v2732_v8 = vpop.xlane.xlu1 %2731  ;;  %v2729_v0 = vpop.xlane.xlu0 %2728 }
 0x3a1   : > { %2845 = vmax.xlane.f32.xlu0 %v2844_v47 }
 0x3a3   : > { %v2735_v47 = vpop.xlane.xlu2 %2734 }
 0x3a7   : > { %v8743_v60 = vpop.f32.mrf.mxu3 }
 0x3a8   : > { %11114 = vst [vmem:[#allocation111_spill] sm:$0xff] %v8743_v60  ;;  %v2865_v29 = vsel %vm1800_vm0, %v8743_v60, -inf  ;;  %v8751_v59 = vpop.xlane.xlu1 %2740  ;;  %v2738_v40 = vpop.xlane.xlu0 %2737  ;;  %v2915_v60 = vperm.slane %v2693_v45, %v8417_v13  ;;  %v2929_v45 = vperm.slane %v2717_v28, %v8417_v13  ;;  %v2935_v28 = vperm.slane %v2729_v0, %v8417_v13 }
 0x3a9   : > { %2866 = vmax.xlane.f32.xlu1 %v2865_v29 }
 0x3ab   : > { %v8753_v39 = vpop.xlane.xlu2 %2743 }
 0x3af   : > { %v8747_v48 = vpop.f32.mrf.mxu3 }
 0x3b0   : > { %11115 = vst [vmem:[#allocation112_spill] sm:$0xff] %v8747_v48  ;;  %v2868_v51 = vsel %vm1800_vm0, %v8747_v48, -inf  ;;  %v2750_v2 = vpop.xlane.xlu1 %2749  ;;  %v2747_v50 = vpop.xlane.xlu0 %2746  ;;  %v2923_v48 = vperm.slane %v2705_v31, %v8417_v13 }
 0x3b1   : > { %2869 = vmax.xlane.f32.xlu2 %v2868_v51  ;;  %v8764_v51 = vadd.s32 4294967288, %v8417_v13 }
 0x3b3   : > { %v8755_v14 = vpop.xlane.xlu2 %2752  ;;  %v2921_v46 = vperm.slane %v2702_v44, %v8764_v51  ;;  %v2924_v6 = vperm.slane %v2708_v26, %v8764_v51  ;;  %v2917_v57 = vperm.slane %v2696_v49, %v8764_v51  ;;  %v2927_v42 = vperm.slane %v2714_v55, %v8764_v51 }
 0x3b4   : > { %v2930_v44 = vperm.slane %v2720_v25, %v8764_v51  ;;  %v2933_v36 = vperm.slane %v2726_v10, %v8764_v51  ;;  %v2942_v3 = vperm.slane %v8753_v39, %v8764_v51  ;;  %v2941_v39 = vperm.slane %v8751_v59, %v8417_v13 }
 0x3b5   : > { %v2922_v19 = vsel %vm2918_vm4, %v2921_v46, %v2920_v30  ;;  %v2925_v49 = vsel %vm2918_vm4, %v2924_v6, %v2923_v48  ;;  %v2919_v55 = vsel %vm2918_vm4, %v2917_v57, %v2915_v60  ;;  %v2928_v31 = vsel %vm2918_vm4, %v2927_v42, %v2926_v54 }
 0x3b6   : > { %v2966_v30 = vsel %vm2965_vm5, %v2922_v19, %v2919_v55  ;;  %v2936_v46 = vperm.slane %v2732_v8, %v8764_v51  ;;  %v2931_v6 = vsel %vm2918_vm4, %v2930_v44, %v2929_v45  ;;  %v2939_v48 = vperm.slane %v2738_v40, %v8764_v51 }
 0x3b7   : > { %v2968_v38 = vsel %vm2967_vm6, %v2925_v49, %v2966_v30  ;;  %v2934_v54 = vsel %vm2918_vm4, %v2933_v36, %v2932_v35  ;;  %v2938_v19 = vperm.slane %v2735_v47, %v8417_v13  ;;  %v2945_v8 = vperm.slane %v2750_v2, %v8764_v51 }
 0x3b8   : > { %v8757_v29 = vpop.xlane.xlu1 %2758  ;;  %v2756_v12 = vpop.xlane.xlu0 %2755  ;;  %v2970_v57 = vsel %vm2969_vm7, %v2928_v31, %v2968_v38  ;;  %v2937_v60 = vsel %vm2918_vm4, %v2936_v46, %v2935_v28  ;;  %v2944_v38 = vperm.slane %v2747_v50, %v8417_v13  ;;  %v2943_v30 = vsel %vm2918_vm4, %v2942_v3, %v2941_v39 }
 0x3b9   : > { %v2948_v42 = vperm.slane %v2756_v12, %v8764_v51  ;;  %v2972_v40 = vsel %vm2971_vm8, %v2931_v6, %v2970_v57  ;;  %v2940_v47 = vsel %vm2918_vm4, %v2939_v48, %v2938_v19  ;;  %v2947_v12 = vperm.slane %v8755_v14, %v8417_v13 }
 0x3ba   : > { %v2974_v49 = vsel %vm2973_vm9, %v2934_v54, %v2972_v40  ;;  %v2946_v50 = vsel %vm2918_vm4, %v2945_v8, %v2944_v38 }
 0x3bb   : > { %v8759_v34 = vpop.xlane.xlu2 %2761  ;;  %v2976_v55 = vsel %vm2975_vm10, %v2937_v60, %v2974_v49  ;;  %v2949_v59 = vsel %vm2918_vm4, %v2948_v42, %v2947_v12 }
 0x3bc   : > { %v2951_v0 = vperm.slane %v8759_v34, %v8764_v51  ;;  %v2950_v34 = vperm.slane %v8757_v29, %v8417_v13  ;;  %v2978_v45 = vsel %vm2977_vm11, %v2940_v47, %v2976_v55  ;;  %v3062_v55 = vperm.slane %v8661_v23, %v8764_v51 }
 0x3bd   : > { %v3064_v23 = vperm.slane %v8657_v27, %v8417_v13  ;;  %v3074_v27 = vperm.slane %v8699_v11, %v8764_v51 }
 0x3be   : > { %v2952_v35 = vsel %vm2918_vm4, %v2951_v0, %v2950_v34 }
 0x3c0   : > { %v8761_v20 = vpop.xlane.xlu1 %2767  ;;  %v8766_v21 = vpop.xlane.xlu0 %2764 }
 0x3c1   : > { %v2954_v2 = vperm.slane %v8761_v20, %v8764_v51  ;;  %v2953_v14 = vperm.slane %v8766_v21, %v8417_v13 }
 0x3c3   : > { %v2771_v5 = vpop.xlane.xlu2 %2770  ;;  %v2955_v6 = vsel %vm2918_vm4, %v2954_v2, %v2953_v14 }
 0x3c4   : > { %v2956_v29 = vperm.slane %v2771_v5, %v8417_v13 }
 0x3c8   : > { %v2777_v26 = vpop.xlane.xlu1 %2776  ;;  %v2774_v25 = vpop.xlane.xlu0 %2773 }
 0x3c9   : > { %v2957_v36 = vperm.slane %v2774_v25, %v8764_v51  ;;  %v2979_v25 = vsel %vm2965_vm5, %v2946_v50, %v2943_v30  ;;  %v2959_v21 = vperm.slane %v2777_v26, %v8417_v13  ;;  %v3058_v50 = vperm.slane %v8650_v41, %v8417_v13 }
 0x3ca   : > { %v2980_v48 = vsel %vm2967_vm6, %v2949_v59, %v2979_v25 }
 0x3cb   : > { %v2780_v10 = vpop.xlane.xlu2 %2779  ;;  %v2958_v57 = vsel %vm2918_vm4, %v2957_v36, %v2956_v29  ;;  %v2981_v28 = vsel %vm2969_vm7, %v2952_v35, %v2980_v48 }
 0x3cc   : > { %v2960_v31 = vperm.slane %v2780_v10, %v8764_v51  ;;  %v2982_v3 = vsel %vm2971_vm8, %v2955_v6, %v2981_v28 }
 0x3cd   : > { %v2983_v8 = vsel %vm2973_vm9, %v2958_v57, %v2982_v3  ;;  %v3073_v57 = vperm.slane %v8681_v32, %v8417_v13 }
 0x3ce   : > { %v2961_v19 = vsel %vm2918_vm4, %v2960_v31, %v2959_v21  ;;  %v3061_v31 = vperm.slane %v8666_v22, %v8417_v13 }
 0x3cf   : > { %v2984_v42 = vsel %vm2975_vm10, %v2961_v19, %v2983_v8 }
 0x3d0   : > { %v2783_v20 = vpop.xlane.xlu0 %2782  ;;  %v3063_v41 = vsel %vm2918_vm4, %v3062_v55, %v3061_v31  ;;  %v3088_v55 = vperm.slane %v8719_v24, %v8417_v13 }
 0x3d1   : > { %v2962_v54 = vperm.slane %v2783_v20, %v8417_v13 }
 0x3d6   : > { %v2786_v44 = vpop.xlane.xlu1 %2785 }
 0x3d7   : > { %v2963_v46 = vperm.slane %v2786_v44, %v8764_v51  ;;  %v3059_v44 = vperm.slane %v8670_v58, %v8764_v51 }
 0x3d9   : > { %v2964_v5 = vsel %vm2918_vm4, %v2963_v46, %v2962_v54  ;;  %v3060_v59 = vsel %vm2918_vm4, %v3059_v44, %v3058_v50  ;;  %v3071_v46 = vperm.slane %v8672_v61, %v8764_v51  ;;  %v3075_v61 = vsel %vm2918_vm4, %v3074_v27, %v3073_v57 }
 0x3da   : > { %v2985_v26 = vsel %vm2977_vm11, %v2964_v5, %v2984_v42  ;;  %v3089_v50 = vperm.slane %v8703_v53, %v8764_v51  ;;  %v3095_v53 = vperm.slane %v8721_v63, %v8764_v51 }
 0x3dc   : > { %v2789_v60 = vpop.xlane.xlu2 %2788 }
 0x3dd   : > { %v3052_v12 = vperm.slane %v2789_v60, %v8417_v13  ;;  %v3077_v60 = vperm.slane %v8691_v16, %v8764_v51 }
 0x3e3   : > { %2988 = vxpose.xlu1.b32.start [1/2] (short) (narrow) %v2978_v45, 16  ;;  %v3065_v45 = vperm.slane %v8677_v1, %v8764_v51  ;;  %v3070_v1 = vperm.slane %v8689_v15, %v8417_v13 }
 0x3e4   : > { %v2792_v38 = vpop.xlane.xlu0 %2791 }
 0x3e5   : > { %v3053_v47 = vperm.slane %v2792_v38, %v8764_v51  ;;  %v3066_v22 = vsel %vm2918_vm4, %v3065_v45, %v3064_v23  ;;  %v3072_v48 = vsel %vm2918_vm4, %v3071_v46, %v3070_v1  ;;  %v3076_v38 = vperm.slane %v8683_v17, %v8417_v13 }
 0x3e6   : > { %v3086_v17 = vperm.slane %v8711_v56, %v8764_v51 }
 0x3e7   : > { %v3054_v49 = vsel %vm2918_vm4, %v3053_v47, %v3052_v12  ;;  %v3078_v47 = vsel %vm2918_vm4, %v3077_v60, %v3076_v38 }
 0x3eb   : > { %2989 = vxpose.xlu1.b32.end [2/2] (short) (narrow) %v2985_v26, 16 }
 0x3ec   : > { %v2795_v0 = vpop.xlane.xlu1 %2794 }
 0x3ed   : > { %v3055_v39 = vperm.slane %v2795_v0, %v8417_v13 }
 0x3f4   : > { %v2798_v40 = vpop.xlane.xlu2 %2797 }
 0x3f5   : > { %v3056_v10 = vperm.slane %v2798_v40, %v8764_v51 }
 0x3f7   : > { %v3057_v2 = vsel %vm2918_vm4, %v3056_v10, %v3055_v39  ;;  %v3083_v10 = vperm.slane %v8709_v7, %v8764_v51  ;;  %v3082_v39 = vperm.slane %v8701_v52, %v8417_v13  ;;  %v3085_v7 = vperm.slane %v8693_v43, %v8417_v13 }
 0x3f8   : > { %v3100_v34 = vsel %vm2965_vm5, %v3057_v2, %v3054_v49 }
 0x3f9   : > { %v3101_v20 = vsel %vm2967_vm6, %v3060_v59, %v3100_v34  ;;  %v3084_v2 = vsel %vm2918_vm4, %v3083_v10, %v3082_v39  ;;  %v3087_v52 = vsel %vm2918_vm4, %v3086_v17, %v3085_v7 }
 0x3fa   : > { %v3102_v35 = vsel %vm2969_vm7, %v3063_v41, %v3101_v20  ;;  %v3094_v20 = vperm.slane %v8713_v18, %v8417_v13  ;;  %v3097_v41 = vperm.slane %v8729_v9, %v8417_v13 }
 0x3fb   : > { %v3103_v6 = vsel %vm2971_vm8, %v3066_v22, %v3102_v35 }
 0x3fc   : > { %v2819_v14 = vpop.xlane.xlu0 %2818  ;;  %v3096_v45 = vsel %vm2918_vm4, %v3095_v53, %v3094_v20 }
 0x3fd   : > { %v3067_v30 = vperm.slane %v2819_v14, %v8417_v13  ;;  %v3090_v14 = vsel %vm2918_vm4, %v3089_v50, %v3088_v55 }
 0x404   : > { %v2822_v36 = vpop.xlane.xlu1 %2821 }
 0x405   : > { %v3068_v58 = vperm.slane %v2822_v36, %v8764_v51 }
 0x407   : > { %v3069_v29 = vsel %vm2918_vm4, %v3068_v58, %v3067_v30  ;;  %v3098_v58 = vperm.slane %v8723_v62, %v8764_v51 }
 0x408   : > { %v3104_v21 = vsel %vm2973_vm9, %v3069_v29, %v3103_v6 }
 0x409   : > { %v3105_v54 = vsel %vm2975_vm10, %v3072_v48, %v3104_v21  ;;  %v3099_v23 = vsel %vm2918_vm4, %v3098_v58, %v3097_v41 }
 0x40a   : > { %v3106_v19 = vsel %vm2977_vm11, %v3075_v61, %v3105_v54 }
 0x40c   : > { %v2843_v42 = vpop.xlane.xlu2 %2842 }
 0x40d   : > { %v3079_v40 = vperm.slane %v2843_v42, %v8417_v13 }
 0x414   : > { %v2846_v8 = vpop.xlane.xlu0 %2845 }
 0x415   : > { %v3080_v26 = vperm.slane %v2846_v8, %v8764_v51 }
 0x417   : > { %v3081_v0 = vsel %vm2918_vm4, %v3080_v26, %v3079_v40  ;;  %v11118_v26 = vld [vmem:[#allocation36_spill] sm:$0xff]  ;;  %v11119_v40 = vld [vmem:[#allocation106_spill] sm:$0xff] }
 0x418   : > { %v3107_v16 = vsel %vm2965_vm5, %v3081_v0, %v3078_v47 }
 0x419   : > { %v3108_v44 = vsel %vm2967_vm6, %v3084_v2, %v3107_v16  ;;  %v11120_v2 = vld [vmem:[#allocation62_spill] sm:$0xff] }
 0x41a   : > { %v3109_v43 = vsel %vm2969_vm7, %v3087_v52, %v3108_v44 }
 0x41b   : > { %v3110_v31 = vsel %vm2971_vm8, %v3090_v14, %v3109_v43 }
 0x41c   : > { %v2867_v25 = vpop.xlane.xlu1 %2866 }
 0x41d   : > { %v3091_v34 = vperm.slane %v2867_v25, %v8417_v13 }
 0x424   : > { %v2870_v12 = vpop.xlane.xlu2 %2869 }
 0x425   : > { %v3092_v49 = vperm.slane %v2870_v12, %v8764_v51 }
 0x427   : > { %v3093_v59 = vsel %vm2918_vm4, %v3092_v49, %v3091_v34 }
 0x428   : > { %v3111_v24 = vsel %vm2973_vm9, %v3093_v59, %v3110_v31 }
 0x429   : > { %v3112_v30 = vsel %vm2975_vm10, %v3096_v45, %v3111_v24  ;;  %v11121_v24 = vld [vmem:[#allocation71_spill] sm:$0xff] }
 0x42a   : > { %v3113_v18 = vsel %vm2977_vm11, %v3099_v23, %v3112_v30 }
 0x43e   : > { %6116 = vset.pattern.permute.xlu1 %v8394_v4 }
 0x487   : > { %v3004_v28 = vpop.trf.xlu1 }
 0x488   : > { %v8879_v5 = vmax.f32 %v3004_v28, %v3106_v19  ;;  %v11116_v28 = vld [vmem:[#allocation58_spill] sm:$0xff] }
 0x48a   : > { %v3467_v15 = vperm.slane %v8879_v5, 1  ;;  %v3454_v3 = vperm.slane %v8879_v5, 0  ;;  %v3480_v11 = vperm.slane %v8879_v5, 2  ;;  %v3493_v32 = vperm.slane %v8879_v5, 3 }
 0x48b   : > { %v3506_v36 = vperm.slane %v8879_v5, 4  ;;  %v3519_v56 = vperm.slane %v8879_v5, 5  ;;  %v3532_v62 = vperm.slane %v8879_v5, 6  ;;  %v3545_v9 = vperm.slane %v8879_v5, 7 }
 0x48c   : > { %3472 = vperm.xlu2 %6118, %v3467_v15   ;;  %3465 = vperm.xlu0 %6117, %v3454_v3  }
 0x48d   : > { %3459 = vperm.xlu1 %6116, %v3454_v3  }
 0x48f   : > { %v3005_v63 = vpop.trf.xlu1 }
 0x490   : > { %v8937_v35 = vmax.f32 %v3005_v63, %v3113_v18 }
 0x492   : > { %v3558_v29 = vperm.slane %v8937_v35, 0  ;;  %v3584_v22 = vperm.slane %v8937_v35, 2  ;;  %v3623_v46 = vperm.slane %v8937_v35, 5  ;;  %v3571_v25 = vperm.slane %v8937_v35, 1 }
 0x493   : > { %v3649_v6 = vperm.slane %v8937_v35, 7  ;;  %v3597_v21 = vperm.slane %v8937_v35, 3  ;;  %v3610_v48 = vperm.slane %v8937_v35, 4  ;;  %v3636_v47 = vperm.slane %v8937_v35, 6 }
 0x494   : > { %3485 = vperm.xlu2 %6118, %v3480_v11   ;;  %6120 = vset.pattern.permute.xlu0 %v8394_v4 }
 0x495   : > { %6119 = vset.pattern.permute.xlu1 %v8398_v37 }
 0x49c   : > { %6121 = vset.pattern.permute.xlu2 %v8398_v37  ;;  %3498 = vperm.xlu0 %6120, %v3493_v32  }
 0x49d   : > { %3478 = vperm.xlu1 %6119, %v3467_v15  }
 0x4a4   : > { %3504 = vperm.xlu2 %6121, %v3493_v32   ;;  %6123 = vset.pattern.permute.xlu0 %v8398_v37  ;;  %v11117_v32 = vld [vmem:[#allocation34_spill] sm:$0xff] }
 0x4a5   : > { %3491 = vperm.xlu1 %6119, %v3480_v11  }
 0x4ac   : > { %3517 = vperm.xlu2 %6121, %v3506_v36   ;;  %3530 = vperm.xlu0 %6123, %v3519_v56  }
 0x4ad   : > { %6122 = vset.pattern.permute.xlu1 %v8394_v4 }
 0x4b4   : > { %6124 = vset.pattern.permute.xlu2 %v8394_v4  ;;  %6126 = vset.pattern.permute.xlu0 %v8394_v4 }
 0x4b5   : > { %3511 = vperm.xlu1 %6122, %v3506_v36  }
 0x4bc   : > { %3537 = vperm.xlu2 %6124, %v3532_v62   ;;  %3563 = vperm.xlu0 %6126, %v3558_v29  }
 0x4bd   : > { %3524 = vperm.xlu1 %6122, %v3519_v56  }
 0x4c4   : > { %3550 = vperm.xlu2 %6124, %v3545_v9   ;;  %6129 = vset.pattern.permute.xlu0 %v8398_v37 }
 0x4c5   : > { %6125 = vset.pattern.permute.xlu1 %v8398_v37 }
 0x4cc   : > { %3595 = vperm.xlu0 %6129, %v3584_v22  }
 0x4cd   : > { %3543 = vperm.xlu1 %6125, %v3532_v62  }
 0x4d4   : > { %6132 = vset.pattern.permute.xlu0 %v8394_v4 }
 0x4d5   : > { %3556 = vperm.xlu1 %6125, %v3545_v9  }
 0x4dc   : > { %3628 = vperm.xlu0 %6132, %v3623_v46  }
 0x4dd   : > { %6128 = vset.pattern.permute.xlu1 %v8394_v4 }
 0x4e4   : > { %6135 = vset.pattern.permute.xlu0 %v8398_v37 }
 0x4e5   : > { %3576 = vperm.xlu1 %6128, %v3571_v25  }
 0x4e6   : > { %v3473_v1 = vpop.permute.xlu2 %3472 }
 0x4ea   : > { %3118 = vxpose.xlu2.b32.start [1/2] (short) (narrow) %v8879_v5, 16  ;;  %v3664_v5 = vsub.f32 %v8705_v33, %v3473_v1 }
 0x4ec   : > { %3660 = vperm.xlu0 %6135, %v3649_v6   ;;  %v3698_v3 = vmul.f32 1.442695, %v3664_v5 }
 0x4ed   : > { %3589 = vperm.xlu1 %6128, %v3584_v22  }
 0x4ee   : > { %v3486_v27 = vpop.permute.xlu2 %3485 }
 0x4ef   : > { %v3666_v60 = vsub.f32 %v11118_v26, %v3486_v27  ;;  %v11123_v27 = vld [vmem:[#allocation76_spill] sm:$0xff] }
 0x4f1   : > { %v3702_v33 = vmul.f32 1.442695, %v3666_v60 }
 0x4f2   : > { %3119 = vxpose.xlu2.b32.end [2/2] (short) (narrow) %v8937_v35, 16  ;;  %v11139_v35 = vld [vmem:[#allocation30_spill] sm:$0xff] }
 0x4f4   : > { %6136 = vset.pattern.permute.xlu0 %v8394_v4 }
 0x4f5   : > { %6131 = vset.pattern.permute.xlu1 %v8398_v37 }
 0x4fd   : > { %3608 = vperm.xlu1 %6131, %v3597_v21  }
 0x4fe   : > { %v3505_v57 = vpop.permute.xlu2 %3504  ;;  %v8967_v54 = vpop.permute.xlu0 %3465 }
 0x4ff   : > { %v8969_v61 = vpop.permute.xlu1 %3459  ;;  %v3669_v19 = vsub.f32 %v11116_v28, %v3505_v57 }
 0x501   : > { %v3708_v15 = vmul.f32 1.442695, %v3669_v19 }
 0x503   : > { %6179 = vpow2.f32 %v3708_v15 }
 0x504   : > { %6181 = vpow2.f32 %v3698_v3  ;;  %v11124_v3 = vld [vmem:[#allocation107_spill] sm:$0xff] }
 0x505   : > { %3621 = vperm.xlu1 %6131, %v3610_v48  }
 0x506   : > { %v3518_v59 = vpop.permute.xlu2 %3517 }
 0x507   : > { %v3671_v58 = vsub.f32 %v11121_v24, %v3518_v59 }
 0x509   : > { %v8978_v39 = vpop.eup %6179  ;;  %v3712_v63 = vmul.f32 1.442695, %v3671_v58  ;;  %v11128_v58 = vld [vmem:[#allocation60_spill] sm:$0xff] }
 0x50a   : > { %v8982_v16 = vpop.eup %6181  ;;  %v4636_v17 = vpack.c.bf16 %v8978_v39, %v8978_v39 }
 0x50b   : > { %v4631_v49 = vpack.c.bf16 %v8982_v16, %v8982_v16 }
 0x50c   : > { %v8997_v56 = vunpack.c.l.b16 %v4636_v17 }
 0x50d   : > { %6134 = vset.pattern.permute.xlu1 %v8394_v4  ;;  %v9001_v43 = vunpack.c.l.b16 %v4631_v49 }
 0x50e   : > { %v3499_v11 = vpop.permute.xlu0 %3498 }
 0x50f   : > { %v3668_v8 = vsub.f32 %v11117_v32, %v3499_v11  ;;  %v3479_v42 = vpop.permute.xlu1 %3478 }
 0x510   : > { %v3665_v38 = vsub.f32 %v11119_v40, %v3479_v42 }
 0x511   : > { %v3706_v0 = vmul.f32 1.442695, %v3668_v8 }
 0x512   : > { %v3700_v10 = vmul.f32 1.442695, %v3665_v38 }
 0x513   : > { %6183 = vpow2.f32 %v3706_v0 }
 0x514   : > { %6185 = vpow2.f32 %v3700_v10 }
 0x515   : > { %3641 = vperm.xlu1 %6134, %v3636_v47   ;;  %6187 = vpow2.f32 %v3702_v33  ;;  %v11125_v33 = vld [vmem:[#allocation75_spill] sm:$0xff] }
 0x516   : > { %v3538_v26 = vpop.permute.xlu2 %3537 }
 0x517   : > { %v3492_v12 = vpop.permute.xlu1 %3491 }
 0x518   : > { %v3667_v7 = vsub.f32 %v11120_v2, %v3492_v12  ;;  %v3674_v12 = vsub.f32 %v11125_v33, %v3538_v26 }
 0x519   : > { %v8987_v44 = vpop.eup %6183 }
 0x51a   : > { %v8991_v50 = vpop.eup %6185  ;;  %v4635_v52 = vpack.c.bf16 %v8987_v44, %v8987_v44  ;;  %v3704_v34 = vmul.f32 1.442695, %v3667_v7  ;;  %v3718_v49 = vmul.f32 1.442695, %v3674_v12 }
 0x51b   : > { %v4632_v36 = vpack.c.bf16 %v8991_v50, %v8991_v50  ;;  %v9005_v53 = vpop.eup %6187 }
 0x51c   : > { %v8999_v55 = vunpack.c.l.b16 %v4635_v52  ;;  %6189 = vpow2.f32 %v3704_v34  ;;  %v4633_v45 = vpack.c.bf16 %v9005_v53, %v9005_v53 }
 0x51d   : > { %v9003_v14 = vunpack.c.l.b16 %v4632_v36  ;;  %3654 = vperm.xlu1 %6134, %v3649_v6   ;;  %6191 = vpow2.f32 %v3712_v63  ;;  %v11122_v6 = vld [vmem:[#allocation108_spill] sm:$0xff] }
 0x51e   : > { %v9018_v23 = vunpack.c.l.b16 %v4633_v45  ;;  %v3531_v62 = vpop.permute.xlu0 %3530  ;;  %v3551_v34 = vpop.permute.xlu2 %3550 }
 0x51f   : > { %v3673_v1 = vsub.f32 %v11122_v6, %v3531_v62  ;;  %v3676_v45 = vsub.f32 %v11128_v58, %v3551_v34 }
 0x521   : > { %v3716_v19 = vmul.f32 1.442695, %v3673_v1 }
 0x522   : > { %v9014_v41 = vpop.eup %6189 }
 0x523   : > { %v4634_v30 = vpack.c.bf16 %v9014_v41, %v9014_v41  ;;  %v9026_v5 = vpop.eup %6191 }
 0x524   : > { %v4638_v32 = vpack.c.bf16 %v9026_v5, %v9026_v5 }
 0x525   : > { %v9020_v18 = vunpack.c.l.b16 %v4634_v30  ;;  %v11129_v30 = vld [vmem:[#allocation26_spill] sm:$0xff] }
 0x526   : > { %v9035_v40 = vunpack.c.l.b16 %v4638_v32 }
 0x527   : > { %v3512_v22 = vpop.permute.xlu1 %3511 }
 0x528   : > { %v3670_v57 = vsub.f32 %v11123_v27, %v3512_v22  ;;  %v3722_v22 = vmul.f32 1.442695, %v3676_v45  ;;  %v11130_v27 = vld [vmem:[#allocation91_spill] sm:$0xff] }
 0x529   : > { %v11135_v45 = vld [vmem:[#allocation39_spill] sm:$0xff] }
 0x52a   : > { %v3710_v28 = vmul.f32 1.442695, %v3670_v57 }
 0x52c   : > { %6193 = vpow2.f32 %v3710_v28 }
 0x52d   : > { %6195 = vpow2.f32 %v3716_v19 }
 0x52e   : > { %v3564_v32 = vpop.permute.xlu0 %3563 }
 0x52f   : > { %v3525_v15 = vpop.permute.xlu1 %3524 }
 0x530   : > { %v3672_v11 = vsub.f32 %v11124_v3, %v3525_v15 }
 0x532   : > { %v9031_v8 = vpop.eup %6193  ;;  %v3714_v42 = vmul.f32 1.442695, %v3672_v11 }
 0x533   : > { %v4637_v60 = vpack.c.bf16 %v9031_v8, %v9031_v8  ;;  %v9039_v0 = vpop.eup %6195 }
 0x534   : > { %6197 = vpow2.f32 %v3714_v42  ;;  %v4640_v17 = vpack.c.bf16 %v9039_v0, %v9039_v0 }
 0x535   : > { %v9037_v38 = vunpack.c.l.b16 %v4637_v60  ;;  %6199 = vpow2.f32 %v3718_v49 }
 0x536   : > { %v9050_v52 = vunpack.c.l.b16 %v4640_v17 }
 0x538   : > { %11126 = vst [vmem:[#allocation58_spill] sm:$0xff] %v9050_v52 }
 0x53a   : > { %v9046_v2 = vpop.eup %6197 }
 0x53b   : > { %v4639_v7 = vpack.c.bf16 %v9046_v2, %v9046_v2  ;;  %v9058_v6 = vpop.eup %6199 }
 0x53c   : > { %v4641_v28 = vpack.c.bf16 %v9058_v6, %v9058_v6 }
 0x53d   : > { %v9052_v36 = vunpack.c.l.b16 %v4639_v7 }
 0x53e   : > { %v9067_v11 = vunpack.c.l.b16 %v4641_v28  ;;  %v3596_v49 = vpop.permute.xlu0 %3595 }
 0x53f   : > { %11127 = vst [vmem:[#allocation34_spill] sm:$0xff] %v9052_v36  ;;  %v3544_v24 = vpop.permute.xlu1 %3543 }
 0x540   : > { %v3675_v63 = vsub.f32 %v11129_v30, %v3544_v24  ;;  %11131 = vst [vmem:[#allocation36_spill] sm:$0xff] %v9067_v11  ;;  %v3683_v30 = vsub.f32 %v11135_v45, %v3596_v49  ;;  %v11141_v24 = vld [vmem:[#allocation54_spill] sm:$0xff]  ;;  %v11159_v11 = vld [vmem:[#allocation93_spill] sm:$0xff] }
 0x542   : > { %v3720_v62 = vmul.f32 1.442695, %v3675_v63  ;;  %v3736_v63 = vmul.f32 1.442695, %v3683_v30 }
 0x544   : > { %6201 = vpow2.f32 %v3720_v62 }
 0x545   : > { %6203 = vpow2.f32 %v3722_v22  ;;  %v11136_v22 = vld [vmem:[#allocation52_spill] sm:$0xff] }
 0x547   : > { %v3557_v1 = vpop.permute.xlu1 %3556 }
 0x548   : > { %v3677_v57 = vsub.f32 %v11130_v27, %v3557_v1 }
 0x54a   : > { %v9063_v19 = vpop.eup %6201  ;;  %v3724_v15 = vmul.f32 1.442695, %v3677_v57 }
 0x54b   : > { %v4642_v3 = vpack.c.bf16 %v9063_v19, %v9063_v19  ;;  %v9071_v26 = vpop.eup %6203 }
 0x54c   : > { %6205 = vpow2.f32 %v3724_v15  ;;  %v4643_v33 = vpack.c.bf16 %v9071_v26, %v9071_v26 }
 0x54d   : > { %v9069_v42 = vunpack.c.l.b16 %v4642_v3  ;;  %6207 = vpow2.f32 %v3736_v63 }
 0x54e   : > { %v9082_v7 = vunpack.c.l.b16 %v4643_v33 }
 0x54f   : > { %11132 = vst [vmem:[#allocation106_spill] sm:$0xff] %v9069_v42 }
 0x550   : > { %11133 = vst [vmem:[#allocation62_spill] sm:$0xff] %v9082_v7 }
 0x552   : > { %v9077_v12 = vpop.eup %6205 }
 0x553   : > { %v4644_v17 = vpack.c.bf16 %v9077_v12, %v9077_v12  ;;  %v9096_v57 = vpop.eup %6207 }
 0x554   : > { %6127 = vset.pattern.permute.xlu2 %v8398_v37  ;;  %v4650_v28 = vpack.c.bf16 %v9096_v57, %v9096_v57 }
 0x555   : > { %v9084_v34 = vunpack.c.l.b16 %v4644_v17 }
 0x557   : > { %11134 = vst [vmem:[#allocation71_spill] sm:$0xff] %v9084_v34  ;;  %v9088_v58 = vpop.permute.xlu1 %3576 }
 0x55c   : > { %3569 = vperm.xlu2 %6127, %v3558_v29   ;;  %v9105_v29 = vunpack.c.l.b16 %v4650_v28 }
 0x55e   : > { %11137 = vst [vmem:[#allocation108_spill] sm:$0xff] %v9105_v29 }
 0x55f   : > { %v3590_v62 = vpop.permute.xlu1 %3589 }
 0x560   : > { %v3682_v1 = vsub.f32 %v11136_v22, %v3590_v62 }
 0x562   : > { %v3734_v27 = vmul.f32 1.442695, %v3682_v1 }
 0x564   : > { %6209 = vpow2.f32 %v3734_v27  ;;  %3582 = vperm.xlu2 %6127, %v3571_v25  }
 0x56a   : > { %v9100_v15 = vpop.eup %6209 }
 0x56b   : > { %v4649_v3 = vpack.c.bf16 %v9100_v15, %v9100_v15 }
 0x56c   : > { %6130 = vset.pattern.permute.xlu2 %v8394_v4 }
 0x56d   : > { %v9107_v33 = vunpack.c.l.b16 %v4649_v3  ;;  %v11140_v3 = vld [vmem:[#allocation73_spill] sm:$0xff] }
 0x56f   : > { %11138 = vst [vmem:[#allocation76_spill] sm:$0xff] %v9107_v33 }
 0x574   : > { %3602 = vperm.xlu2 %6130, %v3597_v21  }
 0x57c   : > { %3615 = vperm.xlu2 %6130, %v3610_v48  }
 0x583   : > { %v9115_v25 = vpop.trf.xlu2 }
 0x584   : > { %6133 = vset.pattern.permute.xlu2 %v8398_v37  ;;  %v3176_v49 = vperm.slane %v9115_v25, 2  ;;  %v3150_v45 = vperm.slane %v9115_v25, 0  ;;  %v10747_v30 = vperm.slane %v9115_v25, 6  ;;  %v3241_v21 = vperm.slane %v9115_v25, 7 }
 0x585   : > { %v3163_v48 = vperm.slane %v9115_v25, 1  ;;  %v10749_v62 = vperm.slane %v9115_v25, 5  ;;  %v3189_v27 = vperm.slane %v9115_v25, 3 }
 0x586   : > { %3181 = vperm.xlu1 %6134, %v3176_v49   ;;  %3155 = vperm.xlu0 %6136, %v3150_v45  }
 0x58c   : > { %3634 = vperm.xlu2 %6133, %v3623_v46   ;;  %v9132_v46 = vpop.trf.xlu2 }
 0x58d   : > { %v3254_v63 = vperm.slane %v9132_v46, 0  ;;  %v10750_v22 = vperm.slane %v9132_v46, 2  ;;  %v3306_v59 = vperm.slane %v9132_v46, 4 }
 0x58e   : > { %3233 = vperm.xlu1 %6134, %v10747_v30   ;;  %6137 = vset.pattern.permute.xlu0 %v8398_v37 }
 0x594   : > { %3647 = vperm.xlu2 %6133, %v3636_v47   ;;  %v3678_v47 = vsub.f32 %v11139_v35, %v3564_v32  ;;  %v10746_v32 = vperm.slane %v9132_v46, 3 }
 0x596   : > { %6147 = vset.pattern.permute.xlu1 %v8398_v37  ;;  %3161 = vperm.xlu0 %6137, %v3150_v45   ;;  %v3726_v1 = vmul.f32 1.442695, %v3678_v47 }
 0x598   : > { %6211 = vpow2.f32 %v3726_v1  ;;  %v3609_v1 = vpop.permute.xlu1 %3608 }
 0x599   : > { %v3685_v60 = vsub.f32 %v11141_v24, %v3609_v1 }
 0x59b   : > { %v3740_v31 = vmul.f32 1.442695, %v3685_v60  ;;  %v3202_v60 = vperm.slane %v9115_v25, 4 }
 0x59c   : > { %6138 = vset.pattern.permute.xlu2 %v8394_v4 }
 0x59e   : > { %3252 = vperm.xlu1 %6147, %v3241_v21   ;;  %3174 = vperm.xlu0 %6137, %v3163_v48  }
 0x5a0   : > { %v3622_v9 = vpop.permute.xlu1 %3621 }
 0x5a4   : > { %3168 = vperm.xlu2 %6138, %v3163_v48   ;;  %v9149_v48 = vpop.eup %6211 }
 0x5a5   : > { %v4645_v35 = vpack.c.bf16 %v9149_v48, %v9149_v48 }
 0x5a6   : > { %3187 = vperm.xlu0 %6137, %v3176_v49   ;;  %3265 = vperm.xlu1 %6147, %v3254_v63  }
 0x5ac   : > { %6144 = vset.pattern.permute.xlu2 %v8398_v37 }
 0x5ae   : > { %6139 = vset.pattern.permute.xlu0 %v8394_v4  ;;  %6150 = vset.pattern.permute.xlu1 %v8394_v4 }
 0x5b4   : > { %3226 = vperm.xlu2 %6144, %v10749_v62  }
 0x5b6   : > { %3194 = vperm.xlu0 %6139, %v3189_v27   ;;  %3285 = vperm.xlu1 %6150, %v10750_v22   ;;  %v3570_v28 = vpop.permute.xlu2 %3569 }
 0x5b7   : > { %v3679_v49 = vsub.f32 %v11140_v3, %v3570_v28  ;;  %v9160_v3 = vunpack.c.l.b16 %v4645_v35 }
 0x5b9   : > { %v3728_v45 = vmul.f32 1.442695, %v3679_v49 }
 0x5bb   : > { %6213 = vpow2.f32 %v3728_v45  ;;  %v11143_v45 = vld [vmem:[#allocation51_spill] sm:$0xff] }
 0x5bc   : > { %6146 = vset.pattern.permute.xlu2 %v8394_v4  ;;  %6215 = vpow2.f32 %v3740_v31  ;;  %v11144_v31 = vld [vmem:[#allocation49_spill] sm:$0xff] }
 0x5be   : > { %6140 = vset.pattern.permute.xlu0 %v8398_v37  ;;  %3298 = vperm.xlu1 %6150, %v10746_v32   ;;  %v9166_v17 = vpop.permute.xlu2 %3582 }
 0x5c1   : > { %v9156_v47 = vpop.eup %6213 }
 0x5c2   : > { %v4646_v28 = vpack.c.bf16 %v9156_v47, %v9156_v47  ;;  %v9177_v24 = vpop.eup %6215 }
 0x5c4   : > { %v9162_v49 = vunpack.c.l.b16 %v4646_v28  ;;  %3246 = vperm.xlu2 %6146, %v3241_v21   ;;  %v11142_v21 = vld [vmem:[#allocation63_spill] sm:$0xff] }
 0x5c5   : > { %v3687_v28 = vsub.f32 %v11142_v21, %v3622_v9  ;;  %v4652_v9 = vpack.c.bf16 %v9177_v24, %v9177_v24  ;;  %v3629_v21 = vpop.permute.xlu0 %3628 }
 0x5c6   : > { %3200 = vperm.xlu0 %6140, %v3189_v27   ;;  %6153 = vset.pattern.permute.xlu1 %v8398_v37  ;;  %v3319_v27 = vperm.slane %v9132_v46, 5 }
 0x5c7   : > { %v3744_v32 = vmul.f32 1.442695, %v3687_v28  ;;  %v9187_v28 = vunpack.c.l.b16 %v4652_v9 }
 0x5c9   : > { %11145 = vst [vmem:[#allocation107_spill] sm:$0xff] %v9187_v28  ;;  %v11151_v28 = vld [vmem:[#allocation112_spill] sm:$0xff] }
 0x5cc   : > { %3259 = vperm.xlu2 %6146, %v3254_v63  }
 0x5ce   : > { %6141 = vset.pattern.permute.xlu0 %v8394_v4  ;;  %3317 = vperm.xlu1 %6153, %v3306_v59   ;;  %v3603_v35 = vpop.permute.xlu2 %3602 }
 0x5cf   : > { %v3684_v20 = vsub.f32 %v11143_v45, %v3603_v35 }
 0x5d1   : > { %v3738_v10 = vmul.f32 1.442695, %v3684_v20  ;;  %v10748_v20 = vperm.slane %v9132_v46, 1 }
 0x5d3   : > { %6217 = vpow2.f32 %v3738_v10 }
 0x5d4   : > { %6149 = vset.pattern.permute.xlu2 %v8398_v37  ;;  %6219 = vpow2.f32 %v3744_v32 }
 0x5d6   : > { %3207 = vperm.xlu0 %6141, %v3202_v60   ;;  %3330 = vperm.xlu1 %6153, %v3319_v27   ;;  %v3616_v63 = vpop.permute.xlu2 %3615 }
 0x5d7   : > { %v3686_v1 = vsub.f32 %v11144_v31, %v3616_v63  ;;  %v11147_v31 = vld [vmem:[#allocation111_spill] sm:$0xff] }
 0x5d9   : > { %v9183_v45 = vpop.eup %6217  ;;  %v3742_v10 = vmul.f32 1.442695, %v3686_v1  ;;  %v3688_v1 = vsub.f32 %v11147_v31, %v3629_v21  ;;  %v11155_v21 = vld [vmem:[#allocation104_spill] sm:$0xff] }
 0x5da   : > { %v4651_v35 = vpack.c.bf16 %v9183_v45, %v9183_v45  ;;  %v9193_v32 = vpop.eup %6219 }
 0x5db   : > { %6221 = vpow2.f32 %v3742_v10  ;;  %v4654_v9 = vpack.c.bf16 %v9193_v32, %v9193_v32  ;;  %v3746_v62 = vmul.f32 1.442695, %v3688_v1 }
 0x5dc   : > { %v9189_v30 = vunpack.c.l.b16 %v4651_v35  ;;  %3278 = vperm.xlu2 %6149, %v10748_v20   ;;  %v10755_v20 = vperm.slane %v9132_v46, 7 }
 0x5dd   : > { %v9207_v22 = vunpack.c.l.b16 %v4654_v9  ;;  %6223 = vpow2.f32 %v3746_v62 }
 0x5de   : > { %11146 = vst [vmem:[#allocation75_spill] sm:$0xff] %v9189_v30  ;;  %6142 = vset.pattern.permute.xlu0 %v8398_v37  ;;  %6156 = vset.pattern.permute.xlu1 %v8394_v4  ;;  %v11150_v30 = vperm.slane %v9132_v46, 2 }
 0x5df   : > { %11148 = vst [vmem:[#allocation60_spill] sm:$0xff] %v9207_v22 }
 0x5e1   : > { %v9202_v10 = vpop.eup %6221 }
 0x5e2   : > { %v4653_v35 = vpack.c.bf16 %v9202_v10, %v9202_v10 }
 0x5e3   : > { %v9219_v1 = vpop.eup %6223 }
 0x5e4   : > { %v9209_v63 = vunpack.c.l.b16 %v4653_v35  ;;  %3291 = vperm.xlu2 %6149, %v11150_v30   ;;  %v4655_v30 = vpack.c.bf16 %v9219_v1, %v9219_v1  ;;  %v11154_v35 = vperm.slane %v9115_v25, 5 }
 0x5e6   : > { %11149 = vst [vmem:[#allocation26_spill] sm:$0xff] %v9209_v63  ;;  %3213 = vperm.xlu0 %6142, %v3202_v60   ;;  %3350 = vperm.xlu1 %6156, %v10755_v20   ;;  %v3635_v31 = vpop.permute.xlu2 %3634  ;;  %v9229_v9 = vunpack.c.l.b16 %v4655_v30  ;;  %v3662_v20 = vsub.f32 %v11155_v21, %v8969_v61  ;;  %v11158_v61 = vld [vmem:[#allocation92_spill] sm:$0xff]  ;;  %v10763_v63 = vperm.slane %v9132_v46, 6 }
 0x5e7   : > { %v3689_v33 = vsub.f32 %v11151_v28, %v3635_v31  ;;  %v9239_v31 = vpop.permute.xlu1 %3641 }
 0x5e8   : > { %11152 = vst [vmem:[#allocation91_spill] sm:$0xff] %v9229_v9  ;;  %v3694_v34 = vmul.f32 1.442695, %v3662_v20 }
 0x5e9   : > { %v3748_v29 = vmul.f32 1.442695, %v3689_v33 }
 0x5eb   : > { %6225 = vpow2.f32 %v3748_v29  ;;  %v9233_v29 = vpop.permute.xlu0 %3660 }
 0x5ec   : > { %6152 = vset.pattern.permute.xlu2 %v8394_v4  ;;  %6227 = vpow2.f32 %v3694_v34 }
 0x5ee   : > { %6143 = vset.pattern.permute.xlu0 %v8394_v4  ;;  %6157 = vset.pattern.permute.xlu1 %v8398_v37  ;;  %v9244_v30 = vpop.permute.xlu2 %3647 }
 0x5ef   : > { %v9248_v9 = vpop.permute.xlu1 %3654 }
 0x5f1   : > { %v9225_v60 = vpop.eup %6225 }
 0x5f2   : > { %v4656_v62 = vpack.c.bf16 %v9225_v60, %v9225_v60  ;;  %v9255_v20 = vpop.eup %6227 }
 0x5f4   : > { %v9231_v33 = vunpack.c.l.b16 %v4656_v62  ;;  %3311 = vperm.xlu2 %6152, %v3306_v59   ;;  %v11156_v59 = vld [vmem:[#allocation45_spill] sm:$0xff] }
 0x5f6   : > { %11153 = vst [vmem:[#allocation39_spill] sm:$0xff] %v9231_v33  ;;  %3220 = vperm.xlu0 %6143, %v11154_v35   ;;  %v11157_v35 = vperm.slane %v9115_v25, 6 }
 0x5f8   : > { %v3156_v7 = vpop.permute.xlu0 %3155  ;;  %v3182_v34 = vpop.permute.xlu1 %3181 }
 0x5f9   : > { %v3358_v62 = vsub.f32 %v11156_v59, %v3156_v7 }
 0x5fb   : > { %v3390_v28 = vmul.f32 1.442695, %v3358_v62 }
 0x5fc   : > { %3324 = vperm.xlu2 %6152, %v3319_v27  }
 0x5fd   : > { %6229 = vpow2.f32 %v3390_v28 }
 0x5fe   : > { %6145 = vset.pattern.permute.xlu0 %v8398_v37  ;;  %v3169_v27 = vpop.permute.xlu2 %3168 }
 0x5ff   : > { %v3360_v42 = vsub.f32 %v11159_v11, %v3169_v27  ;;  %v11160_v11 = vld [vmem:[#allocation95_spill] sm:$0xff] }
 0x600   : > { %v3362_v62 = vsub.f32 %v11160_v11, %v3182_v34  ;;  %v11163_v34 = vperm.slane %v9132_v46, 1 }
 0x601   : > { %v3394_v59 = vmul.f32 1.442695, %v3360_v42 }
 0x602   : > { %v3398_v22 = vmul.f32 1.442695, %v3362_v62 }
 0x603   : > { %v9260_v25 = vpop.eup %6229 }
 0x604   : > { %6155 = vset.pattern.permute.xlu2 %v8398_v37 }
 0x606   : > { %3239 = vperm.xlu0 %6145, %v11157_v35   ;;  %v11161_v35 = vld [vmem:[#allocation94_spill] sm:$0xff] }
 0x608   : > { %v3162_v33 = vpop.permute.xlu0 %3161 }
 0x609   : > { %v3359_v21 = vsub.f32 %v11158_v61, %v3162_v33  ;;  %v3982_v33 = vsel %vm1800_vm0, %v9255_v20, 0.0  ;;  %v4181_v61 = vpack.c.bf16 %v9260_v25, %v9260_v25 }
 0x60b   : > { %v3392_v7 = vmul.f32 1.442695, %v3359_v21  ;;  %v4215_v36 = vunpack.c.l.b16 %v4181_v61  ;;  %v11165_v61 = vld [vmem:[#allocation68_spill] sm:$0xff] }
 0x60c   : > { %3343 = vperm.xlu2 %6155, %v10763_v63   ;;  %v11162_v63 = vperm.slane %v9132_v46, 7 }
 0x60d   : > { %6231 = vpow2.f32 %v3392_v7 }
 0x60e   : > { %6148 = vset.pattern.permute.xlu0 %v8394_v4  ;;  %6233 = vpow2.f32 %v3394_v59 }
 0x610   : > { %v3175_v28 = vpop.permute.xlu0 %3174  ;;  %3983 = vadd.xlane.f32.xlu1 %v3982_v33 }
 0x611   : > { %v3361_v27 = vsub.f32 %v11161_v35, %v3175_v28  ;;  %v3988_v28 = vsel %vm1800_vm0, %v8982_v16, 0.0 }
 0x613   : > { %v9268_v21 = vpop.eup %6231  ;;  %v3396_v42 = vmul.f32 1.442695, %v3361_v27  ;;  %v11164_v27 = vld [vmem:[#allocation96_spill] sm:$0xff] }
 0x614   : > { %v4182_v7 = vpack.c.bf16 %v9268_v21, %v9268_v21  ;;  %3356 = vperm.xlu2 %6155, %v11162_v63   ;;  %v9278_v59 = vpop.eup %6233 }
 0x615   : > { %6235 = vpow2.f32 %v3396_v42  ;;  %v4183_v63 = vpack.c.bf16 %v9278_v59, %v9278_v59  ;;  %v11166_v42 = vld [vmem:[#allocation59_spill] sm:$0xff] }
 0x616   : > { %v4216_v33 = vunpack.c.l.b16 %v4182_v7  ;;  %3272 = vperm.xlu0 %6148, %v11163_v34   ;;  %6237 = vpow2.f32 %v3398_v22  ;;  %v11167_v7 = vpack.c.b16 %v11165_v61, %v11166_v42  ;;  %v11169_v42 = vperm.slane %v9132_v46, 3 }
 0x617   : > { %v4241_v22 = vunpack.c.l.b16 %v4183_v63 }
 0x618   : > { %v4217_v11 = vpack.c.b16 %v4216_v33, %v4215_v36  ;;  %v3188_v35 = vpop.permute.xlu0 %3187  ;;  %3989 = vadd.xlane.f32.xlu1 %v3988_v28  ;;  %v3994_v28 = vsel %vm1800_vm0, %v9005_v53, 0.0  ;;  %v4000_v53 = vsel %vm1800_vm0, %v8987_v44, 0.0  ;;  %v9316_v44 = vpop.permute.xlu1 %3233 }
 0x619   : > { %v3363_v52 = vsub.f32 %v11164_v27, %v3188_v35 }
 0x61a   : > { %6024 = vmatmul.msk.bf16.vlgmr.msra.gmra.mxu2 %vm1800_vm0, %v4217_v11 }
 0x61b   : > { %v3400_v62 = vmul.f32 1.442695, %v3363_v52  ;;  %4440 = vmatpush.bf16.msra.mxu2 %v11167_v7  ;;  %v9287_v34 = vpop.eup %6235 }
 0x61c   : > { %v4184_v16 = vpack.c.bf16 %v9287_v34, %v9287_v34  ;;  %v9292_v36 = vpop.eup %6237 }
 0x61d   : > { %6239 = vpow2.f32 %v3400_v62  ;;  %v4185_v11 = vpack.c.bf16 %v9292_v36, %v9292_v36  ;;  %v11168_v62 = vld [vmem:[#allocation57_spill] sm:$0xff] }
 0x61e   : > { %6151 = vset.pattern.permute.xlu0 %v8398_v37  ;;  %v4242_v33 = vunpack.c.l.b16 %v4184_v16  ;;  %v11170_v16 = vld [vmem:[#allocation37_spill] sm:$0xff] }
 0x61f   : > { %v4267_v61 = vunpack.c.l.b16 %v4185_v11  ;;  %v11173_v11 = vld [vmem:[#allocation97_spill] sm:$0xff] }
 0x620   : > { %3995 = vadd.xlane.f32.xlu1 %v3994_v28  ;;  %v4243_v52 = vpack.c.b16 %v4242_v33, %v4241_v22  ;;  %v11171_v22 = vld [vmem:[#allocation72_spill] sm:$0xff] }
 0x621   : > { %v11172_v33 = vpack.c.b16 %v11170_v16, %v11171_v22 }
 0x622   : > { %6025 = vmatmul.msk.bf16.vlgmr.msrb.gmra.mxu3 %vm1800_vm0, %v4243_v52  ;;  %v4006_v52 = vsel %vm1800_vm0, %v9031_v8, 0.0 }
 0x623   : > { %v9298_v35 = vpop.eup %6239  ;;  %4466 = vmatpush.bf16.msrb.mxu3 %v11168_v62  ;;  %v3227_v62 = vpop.permute.xlu2 %3226 }
 0x624   : > { %v4186_v27 = vpack.c.bf16 %v9298_v35, %v9298_v35 }
 0x626   : > { %v4268_v63 = vunpack.c.l.b16 %v4186_v27  ;;  %3304 = vperm.xlu0 %6151, %v11169_v42  }
 0x628   : > { %v4269_v7 = vpack.c.b16 %v4268_v63, %v4267_v61  ;;  %4001 = vadd.xlane.f32.xlu1 %v4000_v53  ;;  %v3195_v28 = vpop.permute.xlu0 %3194  ;;  %v11174_v61 = vperm.slane %v9132_v46, 6  ;;  %v4012_v63 = vsel %vm1800_vm0, %v9046_v2, 0.0  ;;  %v11176_v46 = vld [vmem:[#allocation17_spill] sm:$0xff]  ;;  %v4021_v2 = vsel %vm1800_vm0, %v9063_v19, 0.0 }
 0x629   : > { %v3364_v27 = vsub.f32 %v11173_v11, %v3195_v28  ;;  %v3253_v28 = vpop.permute.xlu1 %3252 }
 0x62a   : > { %6026 = vmatmul.msk.bf16.vlgmr.msrb.gmra.mxu0 %vm1800_vm0, %v4269_v7  ;;  %v11175_v7 = vld [vmem:[#allocation98_spill] sm:$0xff] }
 0x62b   : > { %4492 = vmatpush.bf16.msrb.mxu0 %v11172_v33  ;;  %v3402_v42 = vmul.f32 1.442695, %v3364_v27  ;;  %v3247_v8 = vpop.permute.xlu2 %3246  ;;  %v4018_v33 = vsel %vm1800_vm0, %v9058_v6, 0.0  ;;  %v11177_v27 = vld [vmem:[#allocation12_spill] sm:$0xff] }
 0x62c   : > { %v3372_v11 = vsub.f32 %v11176_v46, %v3247_v8 }
 0x62d   : > { %6241 = vpow2.f32 %v3402_v42  ;;  %v3373_v42 = vsub.f32 %v11177_v27, %v3253_v28  ;;  %v4027_v28 = vsel %vm1800_vm0, %v9077_v12, 0.0  ;;  %v11179_v27 = vld [vmem:[#allocation99_spill] sm:$0xff] }
 0x62e   : > { %6154 = vset.pattern.permute.xlu0 %v8394_v4 }
 0x630   : > { %4007 = vadd.xlane.f32.xlu1 %v4006_v52 }
 0x633   : > { %v9325_v52 = vpop.eup %6241 }
 0x636   : > { %3337 = vperm.xlu0 %6154, %v11174_v61   ;;  %v4187_v61 = vpack.c.bf16 %v9325_v52, %v9325_v52 }
 0x638   : > { %v3201_v53 = vpop.permute.xlu0 %3200  ;;  %4013 = vadd.xlane.f32.xlu1 %v4012_v63  ;;  %v4293_v8 = vunpack.c.l.b16 %v4187_v61 }
 0x639   : > { %v3365_v16 = vsub.f32 %v11175_v7, %v3201_v53  ;;  %v3418_v53 = vmul.f32 1.442695, %v3372_v11  ;;  %v3758_v7 = vsel %vm1800_vm0, %v9260_v25, 0.0 }
 0x63b   : > { %v3404_v22 = vmul.f32 1.442695, %v3365_v16  ;;  %v3420_v16 = vmul.f32 1.442695, %v3373_v42  ;;  %v11180_v42 = vld [vmem:[#allocation77_spill] sm:$0xff] }
 0x63d   : > { %6243 = vpow2.f32 %v3404_v22  ;;  %4019 = vadd.xlane.f32.xlu2 %v4018_v33  ;;  %v11178_v22 = vld [vmem:[#allocation110_spill] sm:$0xff] }
 0x63e   : > { %v3681_v19 = vsub.f32 %v11178_v22, %v9166_v17  ;;  %6245 = vpow2.f32 %v3418_v53  ;;  %v3767_v17 = vsel %vm1800_vm0, %v9287_v34, 0.0  ;;  %v11181_v53 = vld [vmem:[#allocation105_spill] sm:$0xff]  ;;  %v4033_v22 = vsel %vm1800_vm0, %v9156_v47, 0.0 }
 0x63f   : > { %6247 = vpow2.f32 %v3420_v16  ;;  %v3663_v12 = vsub.f32 %v11181_v53, %v8967_v54 }
 0x640   : > { %4022 = vadd.xlane.f32.xlu1 %v4021_v2  ;;  %v3732_v11 = vmul.f32 1.442695, %v3681_v19 }
 0x642   : > { %6249 = vpow2.f32 %v3732_v11  ;;  %v3773_v11 = vsel %vm1800_vm0, %v9298_v35, 0.0 }
 0x643   : > { %v9333_v63 = vpop.eup %6243 }
 0x644   : > { %v4188_v6 = vpack.c.bf16 %v9333_v63, %v9333_v63  ;;  %v9348_v61 = vpop.eup %6245 }
 0x645   : > { %3759 = vadd.xlane.f32.xlu2 %v3758_v7  ;;  %v3266_v7 = vpop.permute.xlu1 %3265  ;;  %v4195_v19 = vpack.c.bf16 %v9348_v61, %v9348_v61 }
 0x646   : > { %v4294_v33 = vunpack.c.l.b16 %v4188_v6  ;;  %v9352_v6 = vpop.eup %6247 }
 0x647   : > { %v4196_v34 = vpack.c.bf16 %v9352_v6, %v9352_v6 }
 0x648   : > { %v4295_v46 = vpack.c.b16 %v4294_v33, %v4293_v8  ;;  %v3208_v2 = vpop.permute.xlu0 %3207  ;;  %4028 = vadd.xlane.f32.xlu1 %v4027_v28  ;;  %v3696_v8 = vmul.f32 1.442695, %v3663_v12  ;;  %v3260_v33 = vpop.permute.xlu2 %3259  ;;  %v11182_v28 = vld [vmem:[#allocation38_spill] sm:$0xff] }
 0x649   : > { %v3366_v25 = vsub.f32 %v11179_v27, %v3208_v2  ;;  %v9361_v54 = vpop.eup %6249  ;;  %v4397_v2 = vunpack.c.l.b16 %v4195_v19  ;;  %v4398_v47 = vunpack.c.l.b16 %v4196_v34  ;;  %v11184_v19 = vld [vmem:[#allocation78_spill] sm:$0xff] }
 0x64a   : > { %6027 = vmatmul.msk.bf16.vlgmr.msrb.gmra.mxu1 %vm1800_vm0, %v4295_v46  ;;  %v3369_v46 = vsub.f32 %v11182_v28, %v3227_v62  ;;  %v11183_v62 = vld [vmem:[#allocation100_spill] sm:$0xff]  ;;  %v11185_v28 = vld [vmem:[#allocation15_spill] sm:$0xff] }
 0x64b   : > { %4518 = vmatpush.bf16.msrb.mxu1 %v11180_v42  ;;  %v3406_v16 = vmul.f32 1.442695, %v3366_v25  ;;  %v4039_v42 = vsel %vm1800_vm0, %v9361_v54, 0.0 }
 0x64c   : > { %v3412_v27 = vmul.f32 1.442695, %v3369_v46  ;;  %v3374_v46 = vsub.f32 %v11185_v28, %v3260_v33 }
 0x64d   : > { %3768 = vadd.xlane.f32.xlu2 %v3767_v17  ;;  %6251 = vpow2.f32 %v3406_v16  ;;  %v3286_v25 = vpop.permute.xlu1 %3285  ;;  %v4399_v17 = vpack.c.b16 %v4398_v47, %v4397_v2 }
 0x64e   : > { %6253 = vpow2.f32 %v3696_v8 }
 0x64f   : > { %6255 = vpow2.f32 %v3412_v27  ;;  %v11186_v27 = vld [vmem:[#allocation70_spill] sm:$0xff] }
 0x650   : > { %4034 = vadd.xlane.f32.xlu1 %v4033_v22  ;;  %v9368_v22 = vpop.permute.xlu2 %3278 }
 0x653   : > { %v6252_v12 = vpop.eup %6251 }
 0x654   : > { %v9372_v8 = vpop.eup %6253  ;;  %v3782_v34 = vsel %vm1800_vm0, %v6252_v12, 0.0 }
 0x655   : > { %3774 = vadd.xlane.f32.xlu2 %v3773_v11  ;;  %v3985_v2 = vsel %vm1800_vm0, %v9372_v8, 0.0  ;;  %v4045_v11 = vsel %vm1800_vm0, %v9096_v57, 0.0  ;;  %v6256_v47 = vpop.eup %6255 }
 0x658   : > { %v3214_v53 = vpop.permute.xlu0 %3213  ;;  %4040 = vadd.xlane.f32.xlu1 %v4039_v42  ;;  %v3375_v42 = vsub.f32 %v11186_v27, %v3266_v7  ;;  %v3991_v7 = vsel %vm1800_vm0, %v8991_v50, 0.0  ;;  %v11187_v27 = vld [vmem:[#allocation101_spill] sm:$0xff] }
 0x659   : > { %v3367_v16 = vsub.f32 %v11183_v62, %v3214_v53  ;;  %v4189_v53 = vpack.c.bf16 %v6252_v12, %v6252_v12  ;;  %v4051_v12 = vsel %vm1800_vm0, %v9177_v24, 0.0  ;;  %v3800_v24 = vsel %vm1800_vm0, %v9348_v61, 0.0 }
 0x65a   : > { %6031 = vmatmul.msk.bf16.vlgmr.msra.gmra.mxu1 %vm1800_vm0, %v4399_v17  ;;  %v9381_v17 = vpop.permute.xlu1 %3298 }
 0x65b   : > { %v3408_v35 = vmul.f32 1.442695, %v3367_v16  ;;  %4622 = vmatpush.bf16.msra.mxu1 %v11184_v19  ;;  %v3422_v16 = vmul.f32 1.442695, %v3374_v46  ;;  %v3791_v19 = vsel %vm1800_vm0, %v6256_v47, 0.0  ;;  %v4319_v57 = vunpack.c.l.b16 %v4189_v53 }
 0x65d   : > { %6257 = vpow2.f32 %v3408_v35  ;;  %3783 = vadd.xlane.f32.xlu2 %v3782_v34  ;;  %v9385_v35 = vpop.permute.xlu2 %3291  ;;  %v3424_v34 = vmul.f32 1.442695, %v3375_v42  ;;  %v11188_v42 = vld [vmem:[#allocation22_spill] sm:$0xff] }
 0x65e   : > { %6259 = vpow2.f32 %v3422_v16  ;;  %v3378_v53 = vsub.f32 %v11188_v42, %v3286_v25  ;;  %v11189_v16 = vld [vmem:[#allocation35_spill] sm:$0xff]  ;;  %v11196_v42 = vld [vmem:[#allocation81_spill] sm:$0xff] }
 0x65f   : > { %6261 = vpow2.f32 %v3424_v34  ;;  %v11193_v34 = vld [vmem:[#allocation83_spill] sm:$0xff] }
 0x660   : > { %3986 = vadd.xlane.f32.xlu0 %v3985_v2  ;;  %4046 = vadd.xlane.f32.xlu1 %v4045_v11 }
 0x662   : > { %v3318_v11 = vpop.permute.xlu1 %3317 }
 0x663   : > { %v9383_v62 = vpop.eup %6257 }
 0x664   : > { %v4190_v33 = vpack.c.bf16 %v9383_v62, %v9383_v62 }
 0x665   : > { %3792 = vadd.xlane.f32.xlu2 %v3791_v19  ;;  %v11190_v19 = vld [vmem:[#allocation50_spill] sm:$0xff]  ;;  %v3312_v50 = vpop.permute.xlu2 %3311 }
 0x666   : > { %v4320_v28 = vunpack.c.l.b16 %v4190_v33  ;;  %v11191_v4 = vpack.c.b16 %v11189_v16, %v11190_v19 }
 0x668   : > { %v4321_v2 = vpack.c.b16 %v4320_v28, %v4319_v57  ;;  %v3221_v46 = vpop.permute.xlu0 %3220  ;;  %3992 = vadd.xlane.f32.xlu0 %v3991_v7  ;;  %4052 = vadd.xlane.f32.xlu1 %v4051_v12  ;;  %v9402_v57 = vpop.eup %6259  ;;  %v3691_v28 = vsub.f32 %v11193_v34, %v9244_v30  ;;  %v3430_v12 = vmul.f32 1.442695, %v3378_v53  ;;  %v3383_v30 = vsub.f32 %v11196_v42, %v3318_v11 }
 0x669   : > { %v3368_v37 = vsub.f32 %v11187_v27, %v3221_v46  ;;  %11192 = vst [vmem:[#allocation52_spill] sm:$0xff] %v9402_v57  ;;  %v6262_v7 = vpop.eup %6261  ;;  %v11195_v46 = vld [vmem:[#allocation13_spill] sm:$0xff]  ;;  %v4197_v27 = vpack.c.bf16 %v9402_v57, %v9402_v57  ;;  %v4192_v53 = vpack.c.bf16 %v6256_v47, %v6256_v47  ;;  %v11199_v47 = vld [vmem:[#allocation40_spill] sm:$0xff] }
 0x66a   : > { %6028 = vmatmul.msk.bf16.vlgmr.msrb.gmra.mxu2 %vm1800_vm0, %v4321_v2  ;;  %v11194_v2 = vld [vmem:[#allocation89_spill] sm:$0xff]  ;;  %v3370_v61 = vsub.f32 %v11195_v46, %v9316_v44  ;;  %v4198_v16 = vpack.c.bf16 %v6262_v7, %v6262_v7  ;;  %v3809_v34 = vsel %vm1800_vm0, %v6262_v7, 0.0  ;;  %v3440_v46 = vmul.f32 1.442695, %v3383_v30 }
 0x66b   : > { %v3410_v33 = vmul.f32 1.442695, %v3368_v37  ;;  %4544 = vmatpush.bf16.msrb.mxu2 %v11191_v4  ;;  %v3382_v25 = vsub.f32 %v11194_v2, %v3312_v50  ;;  %v3997_v37 = vsel %vm1800_vm0, %v9014_v41, 0.0  ;;  %v4057_v4 = vsel %vm1800_vm0, %v9193_v32, 0.0  ;;  %v9418_v41 = vpop.permute.xlu1 %3330  ;;  %v11197_v2 = vld [vmem:[#allocation14_spill] sm:$0xff] }
 0x66c   : > { %v3414_v32 = vmul.f32 1.442695, %v3370_v61  ;;  %v4424_v42 = vunpack.c.l.b16 %v4198_v16  ;;  %v4003_v61 = vsel %vm1800_vm0, %v8978_v39, 0.0  ;;  %v4063_v7 = vsel %vm1800_vm0, %v9225_v60, 0.0 }
 0x66d   : > { %6263 = vpow2.f32 %v3410_v33  ;;  %3801 = vadd.xlane.f32.xlu2 %v3800_v24  ;;  %v3752_v33 = vmul.f32 1.442695, %v3691_v28  ;;  %v3438_v50 = vmul.f32 1.442695, %v3382_v25  ;;  %v4423_v24 = vunpack.c.l.b16 %v4197_v27 }
 0x66e   : > { %6265 = vpow2.f32 %v3430_v12  ;;  %v3693_v28 = vsub.f32 %v11199_v47, %v9233_v29  ;;  %v4346_v12 = vunpack.c.l.b16 %v4192_v53 }
 0x66f   : > { %6267 = vpow2.f32 %v3752_v33  ;;  %v4425_v27 = vpack.c.b16 %v4424_v42, %v4423_v24  ;;  %v11200_v33 = vld [vmem:[#allocation43_spill] sm:$0xff]  ;;  %v11205_v42 = vld [vmem:[#allocation16_spill] sm:$0xff] }
 0x670   : > { %3998 = vadd.xlane.f32.xlu0 %v3997_v37  ;;  %4058 = vadd.xlane.f32.xlu1 %v4057_v4  ;;  %v4668_v37 = vunpack.c.l.b16 %v11197_v2  ;;  %v11198_v4 = vld [vmem:[#allocation67_spill] sm:$0xff]  ;;  %6269 = vpow2.f32 %v3438_v50  ;;  %v3756_v16 = vmul.f32 1.442695, %v3693_v28  ;;  %v11201_v50 = vld [vmem:[#allocation25_spill] sm:$0xff]  ;;  %v4009_v28 = vsel %vm1800_vm0, %v9026_v5, 0.0 }
 0x671   : > { %v4669_v11 = vunpack.c.l.b16 %v11198_v4  ;;  %6271 = vpow2.f32 %v3414_v32 }
 0x672   : > { %6273 = vpow2.f32 %v3440_v46 }
 0x673   : > { %v9416_v19 = vpop.eup %6263  ;;  %v4670_v30 = vpack.c.b16 %v4669_v11, %v4668_v37  ;;  %v9436_v39 = vpop.permute.xlu1 %3350  ;;  %v11204_v11 = vld [vmem:[#allocation87_spill] sm:$0xff] }
 0x674   : > { %v4191_v44 = vpack.c.bf16 %v9416_v19, %v9416_v19  ;;  %v9431_v29 = vpop.eup %6265  ;;  %v3379_v47 = vsub.f32 %v11204_v11, %v9385_v35 }
 0x675   : > { %3810 = vadd.xlane.f32.xlu2 %v3809_v34  ;;  %v9439_v32 = vpop.eup %6267  ;;  %v3818_v24 = vsel %vm1800_vm0, %v9431_v29, 0.0 }
 0x676   : > { %v4345_v25 = vunpack.c.l.b16 %v4191_v44  ;;  %11202 = vst [vmem:[#allocation30_spill] sm:$0xff] %v9439_v32  ;;  %v9443_v44 = vpop.eup %6269  ;;  %v4069_v46 = vsel %vm1800_vm0, %v9439_v32, 0.0  ;;  %v3432_v5 = vmul.f32 1.442695, %v3379_v47 }
 0x677   : > { %v9445_v34 = vpop.eup %6271 }
 0x678   : > { %v4347_v2 = vpack.c.b16 %v4346_v12, %v4345_v25  ;;  %v3240_v4 = vpop.permute.xlu0 %3239  ;;  %4004 = vadd.xlane.f32.xlu0 %v4003_v61  ;;  %4064 = vadd.xlane.f32.xlu1 %v4063_v7  ;;  %v9447_v37 = vpop.eup %6273  ;;  %v4205_v12 = vpack.c.bf16 %v9443_v44, %v9443_v44  ;;  %v3377_v25 = vsub.f32 %v11205_v42, %v9368_v22 }
 0x679   : > { %v3371_v53 = vsub.f32 %v11200_v33, %v3240_v4  ;;  %11203 = vst [vmem:[#allocation73_spill] sm:$0xff] %v9447_v37  ;;  %v4193_v61 = vpack.c.bf16 %v9445_v34, %v9445_v34  ;;  %v4206_v35 = vpack.c.bf16 %v9447_v37, %v9447_v37  ;;  %v11223_v37 = vld [vmem:[#allocation66_spill] sm:$0xff] }
 0x67a   : > { %6029 = vmatmul.msk.bf16.vlgmr.msra.gmra.mxu3 %vm1800_vm0, %v4347_v2  ;;  %6032 = vmatmul.msk.bf16.vlgmr.msra.gmra.mxu2 %vm1800_vm0, %v4425_v27  ;;  %v4527_v4 = vunpack.c.l.b16 %v4205_v12  ;;  %v3428_v33 = vmul.f32 1.442695, %v3377_v25  ;;  %v11209_v25 = vld [vmem:[#allocation20_spill] sm:$0xff] }
 0x67b   : > { %v3416_v60 = vmul.f32 1.442695, %v3371_v53  ;;  %4570 = vmatpush.bf16.msra.mxu3 %v11201_v50  ;;  %4682 = vmatpush.bf16.msra.mxu2 %v4670_v30  ;;  %v4371_v53 = vunpack.c.l.b16 %v4193_v61  ;;  %v4528_v22 = vunpack.c.l.b16 %v4206_v35  ;;  %v11210_v61 = vld [vmem:[#allocation10_spill] sm:$0xff]  ;;  %v11212_v35 = vld [vmem:[#allocation11_spill] sm:$0xff] }
 0x67d   : > { %6275 = vpow2.f32 %v3416_v60  ;;  %3819 = vadd.xlane.f32.xlu2 %v3818_v24  ;;  %v4015_v60 = vsel %vm1800_vm0, %v9039_v0, 0.0  ;;  %v4529_v24 = vpack.c.b16 %v4528_v22, %v4527_v4  ;;  %v11211_v0 = vpack.c.b16 %v11209_v25, %v11210_v61  ;;  %v11215_v22 = vld [vmem:[#allocation82_spill] sm:$0xff] }
 0x67e   : > { %6277 = vpow2.f32 %v3756_v16 }
 0x67f   : > { %6279 = vpow2.f32 %v3432_v5 }
 0x680   : > { %4010 = vadd.xlane.f32.xlu0 %v4009_v28  ;;  %4070 = vadd.xlane.f32.xlu1 %v4069_v46  ;;  %6281 = vpow2.f32 %v3428_v33  ;;  %v3325_v28 = vpop.permute.xlu2 %3324  ;;  %v11208_v46 = vld [vmem:[#allocation90_spill] sm:$0xff] }
 0x683   : > { %v9463_v7 = vpop.eup %6275  ;;  %v9465_v27 = vpop.xlane.xlu1 %3983 }
 0x684   : > { %11206 = vst [vmem:[#allocation54_spill] sm:$0xff] %v9463_v7  ;;  %v9467_v2 = vpop.eup %6277  ;;  %v4194_v30 = vpack.c.bf16 %v9463_v7, %v9463_v7 }
 0x685   : > { %11207 = vst [vmem:[#allocation63_spill] sm:$0xff] %v9467_v2  ;;  %v4075_v50 = vsel %vm1800_vm0, %v9467_v2, 0.0  ;;  %v9484_v4 = vpop.eup %6279 }
 0x686   : > { %v4372_v16 = vunpack.c.l.b16 %v4194_v30  ;;  %v11213_v30 = vld [vmem:[#allocation109_spill] sm:$0xff] }
 0x687   : > { %v3680_v33 = vsub.f32 %v11213_v30, %v9088_v58  ;;  %v4630_v58 = vpack.c.bf16 %v9372_v8, %v9372_v8  ;;  %v11219_v8 = vld [vmem:[#allocation42_spill] sm:$0xff]  ;;  %v11220_v30 = vld [vmem:[#allocation23_spill] sm:$0xff] }
 0x688   : > { %v4373_v11 = vpack.c.b16 %v4372_v16, %v4371_v53  ;;  %4016 = vadd.xlane.f32.xlu0 %v4015_v60  ;;  %v3273_v47 = vpop.permute.xlu0 %3272  ;;  %4076 = vadd.xlane.f32.xlu1 %v4075_v50  ;;  %v9488_v53 = vpop.eup %6281  ;;  %v3384_v16 = vsub.f32 %v11215_v22, %v3325_v28  ;;  %v4024_v60 = vsel %vm1800_vm0, %v9071_v26, 0.0  ;;  %v3761_v50 = vsel %vm1800_vm0, %v9268_v21, 0.0  ;;  %v11218_v21 = vld [vmem:[#allocation21_spill] sm:$0xff]  ;;  %v11221_v22 = vld [vmem:[#allocation79_spill] sm:$0xff] }
 0x689   : > { %v3376_v12 = vsub.f32 %v11208_v46, %v3273_v47  ;;  %11214 = vst [vmem:[#allocation51_spill] sm:$0xff] %v9488_v53  ;;  %v4202_v47 = vpack.c.bf16 %v9484_v4, %v9484_v4  ;;  %v4629_v28 = vpack.c.bf16 %v9255_v20, %v9255_v20  ;;  %v11217_v46 = vld [vmem:[#allocation64_spill] sm:$0xff]  ;;  %v3730_v25 = vmul.f32 1.442695, %v3680_v33 }
 0x68a   : > { %6030 = vmatmul.msk.bf16.vlgmr.msra.gmra.mxu0 %vm1800_vm0, %v4373_v11  ;;  %6036 = vmatmul.msk.bf16.vlgmr.msrb.gmra.mxu2 %vm1800_vm0, %v4529_v24  ;;  %v11216_v24 = vld [vmem:[#allocation19_spill] sm:$0xff]  ;;  %v3385_v26 = vsub.f32 %v11217_v46, %v9418_v41  ;;  %v4200_v61 = vpack.c.bf16 %v9488_v53, %v9488_v53  ;;  %v4724_v20 = vunpack.c.l.b16 %v11220_v30  ;;  %v3442_v41 = vmul.f32 1.442695, %v3384_v16 }
 0x68b   : > { %v3426_v42 = vmul.f32 1.442695, %v3376_v12  ;;  %4596 = vmatpush.bf16.msra.mxu0 %v11211_v0  ;;  %4794 = vmatpush.bf16.msrb.mxu2 %v11212_v35  ;;  %v9482_v5 = vpop.xlane.xlu1 %3989  ;;  %v3380_v11 = vsub.f32 %v11216_v24, %v9381_v17  ;;  %v9505_v12 = vpop.permute.xlu2 %3343  ;;  %v4201_v17 = vpack.c.bf16 %v9431_v29, %v9431_v29  ;;  %v4697_v35 = vunpack.c.l.b16 %v11219_v8  ;;  %v11222_v24 = vld [vmem:[#allocation84_spill] sm:$0xff] }
 0x68c   : > { %v4892_v46 = vunpack.c.l.b16 %v11222_v24  ;;  %v4893_v53 = vunpack.c.l.b16 %v11223_v37  ;;  %v4664_v57 = vunpack.c.l.b16 %v4630_v58  ;;  %v4663_v2 = vunpack.c.l.b16 %v4629_v28  ;;  %v11224_v28 = vld [vmem:[#allocation86_spill] sm:$0xff] }
 0x68d   : > { %6283 = vpow2.f32 %v3426_v42  ;;  %v4696_v42 = vunpack.c.l.b16 %v11218_v21  ;;  %v3434_v33 = vmul.f32 1.442695, %v3380_v11  ;;  %v4476_v21 = vunpack.c.l.b16 %v4202_v47 }
 0x68e   : > { %v3444_v32 = vmul.f32 1.442695, %v3385_v26  ;;  %6285 = vpow2.f32 %v3730_v25  ;;  %v4475_v8 = vunpack.c.l.b16 %v4201_v17  ;;  %v4450_v30 = vunpack.c.l.b16 %v4200_v61 }
 0x68f   : > { %6287 = vpow2.f32 %v3442_v41  ;;  %v4030_v16 = vsel %vm1800_vm0, %v9149_v48, 0.0  ;;  %v3770_v11 = vsel %vm1800_vm0, %v9292_v36, 0.0  ;;  %v4698_v37 = vpack.c.b16 %v4697_v35, %v4696_v42  ;;  %v11226_v35 = vld [vmem:[#allocation102_spill] sm:$0xff] }
 0x690   : > { %4025 = vadd.xlane.f32.xlu0 %v4024_v60  ;;  %3762 = vadd.xlane.f32.xlu1 %v3761_v50  ;;  %v4725_v60 = vunpack.c.l.b16 %v11221_v22  ;;  %6289 = vpow2.f32 %v3434_v33  ;;  %v4477_v47 = vpack.c.b16 %v4476_v21, %v4475_v8  ;;  %v4665_v58 = vpack.c.b16 %v4664_v57, %v4663_v2  ;;  %v11225_v2 = vld [vmem:[#allocation103_spill] sm:$0xff]  ;;  %v11227_v21 = vld [vmem:[#allocation46_spill] sm:$0xff] }
 0x691   : > { %6291 = vpow2.f32 %v3444_v32  ;;  %v4894_v17 = vpack.c.b16 %v4893_v53, %v4892_v46  ;;  %v3776_v41 = vsel %vm1800_vm0, %v9325_v52, 0.0 }
 0x692   : > { %v4726_v25 = vpack.c.b16 %v4725_v60, %v4724_v20  ;;  %v3388_v20 = vsub.f32 %v11226_v35, %v9436_v39  ;;  %v3785_v35 = vsel %vm1800_vm0, %v9383_v62, 0.0  ;;  %v11231_v62 = vpack.c.b16 %v9035_v40, %v9037_v38 }
 0x693   : > { %v9512_v0 = vpop.eup %6283  ;;  %v9517_v50 = vpop.xlane.xlu1 %3995  ;;  %v4048_v38 = vsel %vm1800_vm0, %v9183_v45, 0.0 }
 0x694   : > { %v4199_v29 = vpack.c.bf16 %v9512_v0, %v9512_v0  ;;  %v3357_v48 = vpop.permute.xlu2 %3356 }
 0x695   : > { %v3389_v53 = vsub.f32 %v11225_v2, %v3357_v48 }
 0x696   : > { %v4449_v7 = vunpack.c.l.b16 %v4199_v29  ;;  %v3387_v29 = vsub.f32 %v11227_v21, %v9505_v12 }
 0x698   : > { %v4451_v22 = vpack.c.b16 %v4450_v30, %v4449_v7  ;;  %4031 = vadd.xlane.f32.xlu0 %v4030_v16  ;;  %v3305_v24 = vpop.permute.xlu0 %3304  ;;  %3771 = vadd.xlane.f32.xlu1 %v3770_v11  ;;  %v9533_v7 = vpop.eup %6285  ;;  %v3452_v30 = vmul.f32 1.442695, %v3389_v53  ;;  %v3450_v16 = vmul.f32 1.442695, %v3388_v20  ;;  %v4042_v53 = vsel %vm1800_vm0, %v9100_v15, 0.0 }
 0x699   : > { %v3381_v26 = vsub.f32 %v11224_v28, %v3305_v24  ;;  %v6288_v57 = vpop.eup %6287  ;;  %v4036_v60 = vsel %vm1800_vm0, %v9533_v7, 0.0  ;;  %v11229_v28 = vld [vmem:[#allocation80_spill] sm:$0xff] }
 0x69a   : > { %6033 = vmatmul.msk.bf16.vlgmr.msrb.gmra.mxu3 %vm1800_vm0, %v4451_v22  ;;  %6034 = vmatmul.msk.bf16.vlgmr.msrb.gmra.mxu0 %vm1800_vm0, %v4477_v47  ;;  %v9535_v32 = vpop.eup %6289  ;;  %v4207_v46 = vpack.c.bf16 %v6288_v57, %v6288_v57 }
 0x69b   : > { %v3436_v61 = vmul.f32 1.442695, %v3381_v26  ;;  %6040 = vmatmul.msk.bf16.vlgmr.msra.gmra.mxu2 %vm1800_vm0, %v4665_v58  ;;  %4710 = vmatpush.bf16.msrb.mxu3 %v4698_v37  ;;  %v9531_v36 = vpop.xlane.xlu1 %4001  ;;  %v9538_v42 = vpop.eup %6291  ;;  %v4203_v33 = vpack.c.bf16 %v9535_v32, %v9535_v32  ;;  %v11228_v37 = vld [vmem:[#allocation28_spill] sm:$0xff]  ;;  %v4753_v26 = vunpack.c.l.b16 %v11229_v28 }
 0x69c   : > { %4738 = vmatpush.bf16.msrb.mxu0 %v4726_v25  ;;  %4906 = vmatpush.bf16.msra.mxu2 %v4894_v17  ;;  %v4208_v8 = vpack.c.bf16 %v9538_v42, %v9538_v42  ;;  %v4553_v22 = vunpack.c.l.b16 %v4207_v46  ;;  %v4752_v58 = vunpack.c.l.b16 %v11228_v37  ;;  %v3448_v17 = vmul.f32 1.442695, %v3387_v29  ;;  %v11230_v29 = vld [vmem:[#allocation74_spill] sm:$0xff] }
 0x69d   : > { %6293 = vpow2.f32 %v3436_v61  ;;  %v4234_v11 = vpop.f32.mrf.mxu2  ;;  %v4501_v25 = vunpack.c.l.b16 %v4203_v33 }
 0x69e   : > { %v4554_v12 = vunpack.c.l.b16 %v4208_v8  ;;  %6295 = vpow2.f32 %v3452_v30  ;;  %v5112_v61 = vrot.slane %v4234_v11, 4  ;;  %v4754_v21 = vpack.c.b16 %v4753_v26, %v4752_v58 }
 0x69f   : > { %6297 = vpow2.f32 %v3450_v16  ;;  %v3794_v58 = vsel %vm1800_vm0, %v9445_v34, 0.0 }
 0x6a0   : > { %4037 = vadd.xlane.f32.xlu0 %v4036_v60  ;;  %3777 = vadd.xlane.f32.xlu1 %v3776_v41  ;;  %v4555_v20 = vpack.c.b16 %v4554_v12, %v4553_v22  ;;  %6299 = vpow2.f32 %v3448_v17  ;;  %v11232_v22 = vld [vmem:[#allocation24_spill] sm:$0xff] }
 0x6a3   : > { %v6294_v39 = vpop.eup %6293  ;;  %v9552_v47 = vpop.xlane.xlu1 %4007 }
 0x6a4   : > { %v4204_v52 = vpack.c.bf16 %v6294_v39, %v6294_v39  ;;  %v3827_v24 = vsel %vm1800_vm0, %v6294_v39, 0.0  ;;  %v9576_v16 = vpop.eup %6295 }
 0x6a5   : > { %3828 = vadd.xlane.f32.xlu2 %v3827_v24  ;;  %v9581_v24 = vpop.eup %6297  ;;  %v4212_v40 = vpack.c.bf16 %v9576_v16, %v9576_v16 }
 0x6a6   : > { %v4502_v48 = vunpack.c.l.b16 %v4204_v52  ;;  %v11233_v52 = vld [vmem:[#allocation85_spill] sm:$0xff]  ;;  %v6300_v37 = vpop.eup %6299 }
 0x6a7   : > { %v4286_v2 = vpop.f32.mrf.mxu0  ;;  %v4210_v26 = vpack.c.bf16 %v6300_v37, %v6300_v37  ;;  %v4606_v17 = vunpack.c.l.b16 %v4212_v40  ;;  %v3845_v34 = vsel %vm1800_vm0, %v6300_v37, 0.0  ;;  %v11237_v37 = vpack.c.b16 %v9003_v14, %v9001_v43  ;;  %v11238_v40 = vld [vmem:[#allocation27_spill] sm:$0xff] }
 0x6a8   : > { %v4503_v60 = vpack.c.b16 %v4502_v48, %v4501_v25  ;;  %v5109_v41 = vrot.slane %v4286_v2, 4  ;;  %v9562_v46 = vsel %vm825_vm1, %v4286_v2, %v5112_v61  ;;  %4043 = vadd.xlane.f32.xlu0 %v4042_v53  ;;  %v3338_v33 = vpop.permute.xlu0 %3337  ;;  %3786 = vadd.xlane.f32.xlu1 %v3785_v35  ;;  %v11234_v2 = vld [vmem:[#allocation55_spill] sm:$0xff]  ;;  %v3812_v43 = vsel %vm1800_vm0, %v9512_v0, 0.0 }
 0x6a9   : > { %v3386_v8 = vsub.f32 %v11230_v29, %v3338_v33  ;;  %v3690_v53 = vsub.f32 %v11234_v2, %v9239_v31  ;;  %v11235_v33 = vld [vmem:[#allocation88_spill] sm:$0xff]  ;;  %v11236_v29 = vld [vmem:[#allocation65_spill] sm:$0xff]  ;;  %v3821_v2 = vsel %vm1800_vm0, %v9484_v4, 0.0  ;;  %v11248_v4 = vld [vmem:[#allocation58_spill] sm:$0xff] }
 0x6aa   : > { %v9566_v30 = vsel %vm825_vm1, %v5109_v41, %v4234_v11  ;;  %6035 = vmatmul.msk.bf16.vlgmr.msrb.gmra.mxu1 %vm1800_vm0, %v4503_v60  ;;  %6037 = vmatmul.msk.bf16.vlgmr.msra.gmra.mxu3 %vm1800_vm0, %v4555_v20  ;;  %v3836_v11 = vsel %vm1800_vm0, %v6288_v57, 0.0  ;;  %v4211_v57 = vpack.c.bf16 %v9581_v24, %v9581_v24  ;;  %v4580_v20 = vunpack.c.l.b16 %v4210_v26 }
 0x6ab   : > { %v3446_v15 = vmul.f32 1.442695, %v3386_v8  ;;  %4766 = vmatpush.bf16.msrb.mxu1 %v4754_v21  ;;  %6044 = vmatmul.msk.bf16.vlgmr.msrb.gmra.mxu2 %vm1800_vm0, %v11231_v62  ;;  %v9574_v39 = vpop.xlane.xlu1 %4013  ;;  %v4920_v21 = vunpack.c.l.b16 %v11235_v33  ;;  %v4921_v8 = vunpack.c.l.b16 %v11236_v29  ;;  %v3803_v62 = vsel %vm1800_vm0, %v9352_v6, 0.0 }
 0x6ac   : > { %4822 = vmatpush.bf16.msra.mxu3 %v11232_v22  ;;  %5018 = vmatpush.bf16.msrb.mxu2 %v11233_v52  ;;  %v4605_v35 = vunpack.c.l.b16 %v4211_v57  ;;  %v3750_v31 = vmul.f32 1.442695, %v3690_v53  ;;  %v11240_v6 = vpack.c.b16 %v9162_v49, %v9160_v3  ;;  %v4260_v57 = vpop.f32.mrf.mxu3  ;;  %v11242_v3 = vld [vmem:[#allocation44_spill] sm:$0xff]  ;;  %v11247_v29 = vpack.c.b16 %v8997_v56, %v8999_v55 }
 0x6ad   : > { %6301 = vpow2.f32 %v3446_v15  ;;  %3837 = vadd.xlane.f32.xlu2 %v3836_v11  ;;  %v4054_v15 = vsel %vm1800_vm0, %v9202_v10, 0.0  ;;  %v4922_v11 = vpack.c.b16 %v4921_v8, %v4920_v21  ;;  %v11239_v10 = vld [vmem:[#allocation32_spill] sm:$0xff]  ;;  %v4948_v49 = vunpack.c.l.b16 %v11242_v3  ;;  %v11249_v8 = vld [vmem:[#allocation34_spill] sm:$0xff] }
 0x6ae   : > { %v4607_v22 = vpack.c.b16 %v4606_v17, %v4605_v35  ;;  %6303 = vpow2.f32 %v3750_v31  ;;  %v11243_v17 = vld [vmem:[#allocation53_spill] sm:$0xff]  ;;  %v11246_v21 = vpack.c.b16 %v9020_v18, %v9018_v23  ;;  %v11254_v23 = vld [vmem:[#allocation56_spill] sm:$0xff]  ;;  %v3830_v56 = vsel %vm1800_vm0, %v9443_v44, 0.0  ;;  %v11259_v3 = vld [vmem:[#allocation62_spill] sm:$0xff] }
 0x6af   : > { %v4648_v55 = vpack.c.bf16 %v9361_v54, %v9361_v54  ;;  %v3839_v54 = vsel %vm1800_vm0, %v9538_v42, 0.0  ;;  %v4113_v42 = vperm.slane %v9482_v5, %v8417_v13  ;;  %v4116_v5 = vperm.slane %v9517_v50, %v8417_v13 }
 0x6b0   : > { %4049 = vadd.xlane.f32.xlu0 %v4048_v38  ;;  %3795 = vadd.xlane.f32.xlu1 %v3794_v58  ;;  %v4020_v28 = vpop.xlane.xlu2 %4019  ;;  %v11241_v38 = vld [vmem:[#allocation41_spill] sm:$0xff] }
 0x6b1   : > { %v4128_v61 = vperm.slane %v4020_v28, %v8417_v13  ;;  %v3692_v58 = vsub.f32 %v11241_v38, %v9248_v9  ;;  %v4060_v28 = vsel %vm1800_vm0, %v9219_v1, 0.0  ;;  %v4916_v38 = vunpack.c.l.b16 %v4648_v55  ;;  %v11272_v55 = vld [vmem:[#allocation54_spill] sm:$0xff] }
 0x6b3   : > { %v9591_v25 = vpop.eup %6301  ;;  %v4023_v12 = vpop.xlane.xlu1 %4022  ;;  %v3754_v14 = vmul.f32 1.442695, %v3692_v58 }
 0x6b4   : > { %v4209_v48 = vpack.c.bf16 %v9591_v25, %v9591_v25  ;;  %v4129_v45 = vperm.slane %v4023_v12, %v8764_v51  ;;  %v9627_v26 = vpop.eup %6303  ;;  %v4949_v12 = vunpack.c.l.b16 %v11243_v17  ;;  %v11261_v17 = vld [vmem:[#allocation33_spill] sm:$0xff] }
 0x6b5   : > { %3846 = vadd.xlane.f32.xlu2 %v3845_v34  ;;  %6305 = vpow2.f32 %v3754_v14  ;;  %v5124_v34 = vrot.slane %v4260_v57, 4  ;;  %v4066_v0 = vsel %vm1800_vm0, %v9627_v26, 0.0  ;;  %v11256_v14 = vld [vmem:[#allocation36_spill] sm:$0xff] }
 0x6b6   : > { %v4579_v60 = vunpack.c.l.b16 %v4209_v48  ;;  %v9601_v41 = vsel %vm2918_vm4, %v4129_v45, %v4128_v61  ;;  %v11244_v48 = vld [vmem:[#allocation61_spill] sm:$0xff]  ;;  %v11245_v45 = vld [vmem:[#allocation48_spill] sm:$0xff] }
 0x6b7   : > { %v4976_v61 = vunpack.c.l.b16 %v11244_v48  ;;  %v4977_v9 = vunpack.c.l.b16 %v11245_v45  ;;  %v11262_v48 = vld [vmem:[#allocation69_spill] sm:$0xff] }
 0x6b8   : > { %v4581_v52 = vpack.c.b16 %v4580_v20, %v4579_v60  ;;  %4055 = vadd.xlane.f32.xlu0 %v4054_v15  ;;  %3804 = vadd.xlane.f32.xlu1 %v3803_v62  ;;  %v4950_v20 = vpack.c.b16 %v4949_v12, %v4948_v49  ;;  %v11250_v15 = vpack.c.b16 %v11248_v4, %v11249_v8  ;;  %v11266_v4 = vld [vmem:[#allocation107_spill] sm:$0xff] }
 0x6b9   : > { %v4978_v60 = vpack.c.b16 %v4977_v9, %v4976_v61  ;;  %v11267_v8 = vld [vmem:[#allocation75_spill] sm:$0xff] }
 0x6ba   : > { %6038 = vmatmul.msk.bf16.vlgmr.msra.gmra.mxu0 %vm1800_vm0, %v4581_v52  ;;  %6039 = vmatmul.msk.bf16.vlgmr.msra.gmra.mxu1 %vm1800_vm0, %v4607_v22  ;;  %v11251_v22 = vld [vmem:[#allocation60_spill] sm:$0xff]  ;;  %v11252_v52 = vld [vmem:[#allocation26_spill] sm:$0xff]  ;;  %v11268_v50 = vpack.c.b16 %v11266_v4, %v11267_v8 }
 0x6bb   : > { %6041 = vmatmul.msk.bf16.vlgmr.msrb.gmra.mxu3 %vm1800_vm0, %v11237_v37  ;;  %4850 = vmatpush.bf16.msra.mxu0 %v11238_v40  ;;  %v6306_v62 = vpop.eup %6305  ;;  %v11253_v31 = vpack.c.b16 %v11251_v22, %v11252_v52  ;;  %v4647_v37 = vpack.c.bf16 %v9533_v7, %v9533_v7  ;;  %v11255_v7 = vld [vmem:[#allocation106_spill] sm:$0xff]  ;;  %v11270_v22 = vld [vmem:[#allocation91_spill] sm:$0xff] }
 0x6bc   : > { %4878 = vmatpush.bf16.msra.mxu1 %v11239_v10  ;;  %6048 = vmatmul.msk.bf16.vlgmr.msra.gmra.mxu2 %vm1800_vm0, %v11240_v6  ;;  %v4072_v18 = vsel %vm1800_vm0, %v6306_v62, 0.0  ;;  %v4110_v10 = vperm.slane %v9465_v27, %v8417_v13  ;;  %v11258_v27 = vld [vmem:[#allocation71_spill] sm:$0xff] }
 0x6bd   : > { %4934 = vmatpush.bf16.msrb.mxu3 %v4922_v11  ;;  %v9665_v11 = vpop.xlane.xlu1 %4028  ;;  %v4915_v44 = vunpack.c.l.b16 %v4647_v37  ;;  %v11260_v49 = vpack.c.b16 %v11258_v27, %v11259_v3  ;;  %v3797_v37 = vsel %vm1800_vm0, %v11272_v55, 0.0 }
 0x6c0   : > { %4061 = vadd.xlane.f32.xlu0 %v4060_v28  ;;  %3813 = vadd.xlane.f32.xlu1 %v3812_v43  ;;  %v3764_v28 = vsel %vm1800_vm0, %v9278_v59, 0.0  ;;  %v4917_v43 = vpack.c.b16 %v4916_v38, %v4915_v44 }
 0x6c5   : > { %v9689_v12 = vpop.xlane.xlu1 %4034 }
 0x6c7   : > { %v4312_v1 = vpop.f32.mrf.mxu1 }
 0x6c8   : > { %v5122_v53 = vrot.slane %v4312_v1, 4  ;;  %v9638_v35 = vsel %vm825_vm1, %v4312_v1, %v5124_v34  ;;  %4067 = vadd.xlane.f32.xlu0 %v4066_v0  ;;  %3822 = vadd.xlane.f32.xlu1 %v3821_v2  ;;  %v3779_v34 = vsel %vm1800_vm0, %v9333_v63, 0.0  ;;  %v3848_v1 = vsel %vm1800_vm0, %v9581_v24, 0.0  ;;  %v11264_v24 = vld [vmem:[#allocation76_spill] sm:$0xff] }
 0x6c9   : > { %v3788_v63 = vsel %vm1800_vm0, %v9416_v19, 0.0  ;;  %v4119_v19 = vperm.slane %v9531_v36, %v8417_v13  ;;  %v4657_v36 = vpack.c.bf16 %v9627_v26, %v9627_v26 }
 0x6ca   : > { %v9641_v33 = vsel %vm825_vm1, %v5122_v53, %v4260_v57  ;;  %6042 = vmatmul.msk.bf16.vlgmr.msrb.gmra.mxu0 %vm1800_vm0, %v11246_v21  ;;  %6043 = vmatmul.msk.bf16.vlgmr.msrb.gmra.mxu1 %vm1800_vm0, %v11247_v29  ;;  %v11257_v57 = vpack.c.b16 %v11255_v7, %v11256_v14  ;;  %v11263_v21 = vld [vmem:[#allocation108_spill] sm:$0xff]  ;;  %v4122_v7 = vperm.slane %v9552_v47, %v8417_v13  ;;  %v9737_v14 = vpop.f32.mrf.mxu2 }
 0x6cb   : > { %6045 = vmatmul.msk.bf16.vlgmr.msra.gmra.mxu3 %vm1800_vm0, %v11250_v15  ;;  %4962 = vmatpush.bf16.msrb.mxu0 %v4950_v20  ;;  %v11265_v29 = vpack.c.b16 %v11263_v21, %v11264_v24  ;;  %v11269_v15 = vld [vmem:[#allocation39_spill] sm:$0xff]  ;;  %v9764_v21 = vpop.f32.mrf.mxu0 }
 0x6cc   : > { %4990 = vmatpush.bf16.msrb.mxu1 %v4978_v60  ;;  %6052 = vmatmul.msk.bf16.vlgmr.msrb.gmra.mxu2 %vm1800_vm0, %v11253_v31  ;;  %v11271_v52 = vpack.c.b16 %v11269_v15, %v11270_v22 }
 0x6cd   : > { %5046 = vmatpush.bf16.msra.mxu3 %v11254_v23  ;;  %v9702_v53 = vpop.xlane.xlu1 %4040 }
 0x6cf   : > { %v9742_v27 = vpop.f32.mrf.mxu1 }
 0x6d0   : > { %4073 = vadd.xlane.f32.xlu0 %v4072_v18  ;;  %3831 = vadd.xlane.f32.xlu1 %v3830_v56 }
 0x6d3   : > { %v3987_v40 = vpop.xlane.xlu0 %3986 }
 0x6d4   : > { %v4111_v6 = vperm.slane %v3987_v40, %v8764_v51  ;;  %v4659_v40 = vpack.c.bf16 %v6306_v62, %v6306_v62 }
 0x6d5   : > { %v9729_v38 = vpop.xlane.xlu1 %4046 }
 0x6d6   : > { %v4112_v58 = vsel %vm2918_vm4, %v4111_v6, %v4110_v10  ;;  %v11273_v10 = vld [vmem:[#allocation30_spill] sm:$0xff] }
 0x6d7   : > { %v4658_v6 = vpack.c.bf16 %v11273_v10, %v11273_v10  ;;  %v4416_v24 = vpop.f32.mrf.mxu1  ;;  %v3824_v10 = vsel %vm1800_vm0, %v9535_v32, 0.0 }
 0x6d8   : > { %3765 = vadd.xlane.f32.xlu0 %v3764_v28  ;;  %3840 = vadd.xlane.f32.xlu1 %v3839_v54  ;;  %v5083_v54 = vunpack.c.l.b16 %v4659_v40  ;;  %v5146_v15 = vrot.slane %v4416_v24, 4 }
 0x6da   : > { %6046 = vmatmul.msk.bf16.vlgmr.msra.gmra.mxu0 %vm1800_vm0, %v11257_v57  ;;  %6047 = vmatmul.msk.bf16.vlgmr.msra.gmra.mxu1 %vm1800_vm0, %v11260_v49  ;;  %v9740_v57 = vpop.f32.mrf.mxu3  ;;  %v5055_v49 = vunpack.c.l.b16 %v4657_v36 }
 0x6db   : > { %6049 = vmatmul.msk.bf16.vlgmr.msrb.gmra.mxu3 %vm1800_vm0, %v4917_v43  ;;  %5074 = vmatpush.bf16.msra.mxu0 %v11261_v17  ;;  %v3993_v59 = vpop.xlane.xlu0 %3992  ;;  %v5056_v43 = vunpack.c.l.b16 %v4658_v6 }
 0x6dc   : > { %5102 = vmatpush.bf16.msra.mxu1 %v11262_v48  ;;  %v4114_v61 = vperm.slane %v3993_v59, %v8764_v51  ;;  %v11275_v59 = vld [vmem:[#allocation18_spill] sm:$0xff]  ;;  %v11276_v48 = vld [vmem:[#allocation52_spill] sm:$0xff] }
 0x6dd   : > { %v5129_v26 = vperm.slane %v9641_v33, %v11275_v59  ;;  %v3806_v47 = vsel %vm1800_vm0, %v11276_v48, 0.0  ;;  %v4125_v33 = vperm.slane %v9574_v39, %v8417_v13 }
 0x6de   : > { %v4115_v45 = vsel %vm2918_vm4, %v4114_v61, %v4113_v42 }
 0x6df   : > { %v4158_v9 = vsel %vm2965_vm5, %v4115_v45, %v4112_v58  ;;  %v11274_v58 = vld [vmem:[#allocation63_spill] sm:$0xff]  ;;  %v5057_v45 = vpack.c.b16 %v5056_v43, %v5055_v49 }
 0x6e0   : > { %3780 = vadd.xlane.f32.xlu0 %v3779_v34  ;;  %3849 = vadd.xlane.f32.xlu1 %v3848_v1  ;;  %v4660_v44 = vpack.c.bf16 %v11274_v58, %v11274_v58  ;;  %v5158_v34 = vrot.slane %v5129_v26, 4 }
 0x6e2   : > { %v5084_v3 = vunpack.c.l.b16 %v4660_v44 }
 0x6e3   : > { %v3999_v0 = vpop.xlane.xlu0 %3998 }
 0x6e4   : > { %v4117_v2 = vperm.slane %v3999_v0, %v8764_v51  ;;  %v5085_v61 = vpack.c.b16 %v5084_v3, %v5083_v54 }
 0x6e6   : > { %v4118_v20 = vsel %vm2918_vm4, %v4117_v2, %v4116_v5  ;;  %v5117_v5 = vperm.slane %v9566_v30, %v11275_v59  ;;  %v5121_v30 = vperm.slane %v9562_v46, %v11275_v59 }
 0x6e7   : > { %v4159_v60 = vsel %vm2967_vm6, %v4118_v20, %v4158_v9  ;;  %v9752_v9 = vpop.xlane.xlu1 %4052 }
 0x6e8   : > { %3789 = vadd.xlane.f32.xlu0 %v3788_v63  ;;  %v5159_v8 = vsel %vm825_vm1, %v5158_v34, %v5117_v5  ;;  %v5160_v6 = vrot.slane %v5117_v5, 4  ;;  %v11278_v5 = vld [vmem:[#allocation29_spill] sm:$0xff] }
 0x6ea   : > { %6050 = vmatmul.msk.bf16.vlgmr.msrb.gmra.mxu0 %vm1800_vm0, %v11265_v29  ;;  %6051 = vmatmul.msk.bf16.vlgmr.msrb.gmra.mxu1 %vm1800_vm0, %v11268_v50  ;;  %v11277_v29 = vld [vmem:[#allocation51_spill] sm:$0xff]  ;;  %v5133_v50 = vperm.slane %v9638_v35, %v11275_v59  ;;  %v9799_v3 = vsel %vm825_vm1, %v5129_v26, %v5160_v6 }
 0x6eb   : > { %6053 = vmatmul.msk.bf16.vlgmr.msra.gmra.mxu3 %vm1800_vm0, %v11271_v52  ;;  %v4005_v31 = vpop.xlane.xlu0 %4004  ;;  %v3815_v4 = vsel %vm1800_vm0, %v11277_v29, 0.0 }
 0x6ec   : > { %v4120_v23 = vperm.slane %v4005_v31, %v8764_v51 }
 0x6ed   : > { %v4338_v2 = vpop.f32.mrf.mxu2 }
 0x6ee   : > { %v4121_v18 = vsel %vm2918_vm4, %v4120_v23, %v4119_v19  ;;  %v5136_v55 = vrot.slane %v4338_v2, 4 }
 0x6ef   : > { %v4160_v56 = vsel %vm2969_vm7, %v4121_v18, %v4159_v60  ;;  %v9776_v52 = vpop.xlane.xlu1 %4058  ;;  %v5172_v18 = vrot.slane %v5121_v30, 4 }
 0x6f0   : > { %3798 = vadd.xlane.f32.xlu0 %v3797_v37 }
 0x6f1   : > { %v9789_v36 = vsel %vm825_vm1, %v5133_v50, %v5172_v18 }
 0x6f3   : > { %v4011_v28 = vpop.xlane.xlu0 %4010 }
 0x6f4   : > { %v4123_v62 = vperm.slane %v4011_v28, %v8764_v51  ;;  %v4418_v28 = vpop.f32.mrf.mxu1 }
 0x6f5   : > { %v4340_v40 = vpop.f32.mrf.mxu2 }
 0x6f6   : > { %v4124_v17 = vsel %vm2918_vm4, %v4123_v62, %v4122_v7 }
 0x6f7   : > { %v9748_v42 = vsel %vm2971_vm8, %v4124_v17, %v4160_v56  ;;  %v5170_v56 = vrot.slane %v5133_v50, 4 }
 0x6f8   : > { %3807 = vadd.xlane.f32.xlu0 %v3806_v47 }
 0x6f9   : > { %v5171_v32 = vsel %vm825_vm1, %v5170_v56, %v5121_v30  ;;  %v5165_v30 = vperm.slane %v5159_v8, %v11278_v5 }
 0x6fa   : > { %6054 = vmatmul.msk.bf16.vlgmr.msra.gmra.mxu0 %vm1800_vm0, %v5057_v45  ;;  %6055 = vmatmul.msk.bf16.vlgmr.msra.gmra.mxu1 %vm1800_vm0, %v5085_v61  ;;  %v4135_v61 = vperm.slane %v9689_v12, %v8764_v51  ;;  %v9834_v56 = vperm.slane %v5171_v32, %v11278_v5 }
 0x6fb   : > { %v4017_v1 = vpop.xlane.xlu0 %4016 }
 0x6fc   : > { %v4126_v0 = vperm.slane %v4017_v1, %v8764_v51  ;;  %v9815_v1 = vpop.xlane.xlu1 %4064 }
 0x6fd   : > { %v4364_v20 = vpop.f32.mrf.mxu3 }
 0x6fe   : > { %v9762_v60 = vsel %vm2918_vm4, %v4126_v0, %v4125_v33  ;;  %v5148_v63 = vrot.slane %v4364_v20, 4  ;;  %v5147_v31 = vsel %vm825_vm1, %v5146_v15, %v4364_v20  ;;  %v5360_v33 = vrot.slane %v4340_v40, 4  ;;  %v9827_v15 = vpop.f32.mrf.mxu2 }
 0x6ff   : > { %v9783_v46 = vperm.slane %v5147_v31, %v11275_v59  ;;  %v5346_v20 = vrot.slane %v9742_v27, 4  ;;  %11280 = vst [vmem:[#allocation49_spill] sm:$0xff] %v9827_v15 }
 0x700   : > { %v5149_v39 = vsel %vm825_vm1, %v4416_v24, %v5148_v63  ;;  %3816 = vadd.xlane.f32.xlu0 %v3815_v4  ;;  %v11279_v24 = vld [vmem:[#allocation73_spill] sm:$0xff] }
 0x701   : > { %v9780_v19 = vperm.slane %v5149_v39, %v11275_v59  ;;  %v5182_v49 = vrot.slane %v9783_v46, 4  ;;  %v3833_v12 = vsel %vm1800_vm0, %v11279_v24, 0.0 }
 0x703   : > { %v9774_v22 = vpop.xlane.xlu0 %4025  ;;  %v5194_v54 = vrot.slane %v9780_v19, 4 }
 0x705   : > { %v4366_v23 = vpop.f32.mrf.mxu3 }
 0x706   : > { %v5372_v37 = vrot.slane %v4366_v23, 4 }
 0x707   : > { %v4390_v35 = vpop.f32.mrf.mxu0 }
 0x708   : > { %v5134_v58 = vrot.slane %v4390_v35, 4  ;;  %v5137_v44 = vsel %vm825_vm1, %v4390_v35, %v5136_v55  ;;  %3825 = vadd.xlane.f32.xlu0 %v3824_v10  ;;  %v5373_v7 = vsel %vm825_vm1, %v4418_v28, %v5372_v37 }
 0x709   : > { %v9793_v43 = vperm.slane %v5137_v44, %v11275_v59  ;;  %v9811_v34 = vperm.slane %v5373_v7, %v11275_v59  ;;  %v5347_v44 = vsel %vm825_vm1, %v5346_v20, %v9740_v57  ;;  %v5334_v7 = vrot.slane %v9764_v21, 4 }
 0x70a   : > { %v5135_v62 = vsel %vm825_vm1, %v5134_v58, %v4338_v2  ;;  %v4138_v58 = vperm.slane %v9702_v53, %v8764_v51  ;;  %v3842_v53 = vsel %vm1800_vm0, %v9591_v25, 0.0  ;;  %v4141_v20 = vperm.slane %v9729_v38, %v8764_v51 }
 0x70b   : > { %v9803_v17 = vperm.slane %v5135_v62, %v11275_v59  ;;  %v5195_v48 = vsel %vm825_vm1, %v5194_v54, %v9793_v43  ;;  %v4032_v47 = vpop.xlane.xlu0 %4031  ;;  %v5418_v31 = vrot.slane %v9811_v34, 4  ;;  %v5370_v54 = vrot.slane %v4418_v28, 4 }
 0x70c   : > { %v4134_v45 = vperm.slane %v4032_v47, %v8417_v13  ;;  %v9823_v29 = vperm.slane %v5195_v48, %v11278_v5  ;;  %v3851_v38 = vsel %vm1800_vm0, %v9576_v16, 0.0 }
 0x70d   : > { %v5183_v26 = vsel %vm825_vm1, %v5182_v49, %v9803_v17  ;;  %v5371_v62 = vsel %vm825_vm1, %v5370_v54, %v4366_v23  ;;  %v9858_v49 = vperm.slane %v5347_v44, %v11275_v59  ;;  %v5335_v23 = vsel %vm825_vm1, %v5334_v7, %v9737_v14 }
 0x70e   : > { %v4136_v0 = vsel %vm2918_vm4, %v4135_v61, %v4134_v45  ;;  %v5189_v2 = vperm.slane %v5183_v26, %v11278_v5  ;;  %v5214_v55 = vrot.slane %v9823_v29, 4  ;;  %v9865_v61 = vpop.xlane.xlu1 %4070  ;;  %v9868_v28 = vperm.slane %v5371_v62, %v11275_v59  ;;  %v4444_v26 = vpop.f32.mrf.mxu2 }
 0x70f   : > { %v4392_v63 = vpop.f32.mrf.mxu0  ;;  %v5382_v45 = vrot.slane %v9858_v49, 4  ;;  %v9880_v24 = vperm.slane %v5335_v23, %v11275_v59 }
 0x710   : > { %v5358_v4 = vrot.slane %v4392_v63, 4  ;;  %v5361_v39 = vsel %vm825_vm1, %v4392_v63, %v5360_v33  ;;  %3834 = vadd.xlane.f32.xlu0 %v3833_v12  ;;  %v5206_v50 = vrot.slane %v5189_v2, 4  ;;  %v9847_v6 = vsel %vm825_vm1, %v5214_v55, %v9834_v56 }
 0x711   : > { %v9831_v18 = vperm.slane %v5361_v39, %v11275_v59  ;;  %11282 = vst [vmem:[#allocation112_spill] sm:$0xff] %v9847_v6  ;;  %v5208_v63 = vrot.slane %v5165_v30, 4  ;;  %v5406_v12 = vrot.slane %v9868_v28, 4  ;;  %v5448_v39 = vrot.slane %v4444_v26, 4 }
 0x712   : > { %v5359_v37 = vsel %vm825_vm1, %v5358_v4, %v4340_v40  ;;  %v9839_v35 = vsel %vm825_vm1, %v5206_v50, %v5165_v30  ;;  %v5383_v30 = vsel %vm825_vm1, %v5382_v45, %v9880_v24 }
 0x713   : > { %11281 = vst [vmem:[#allocation111_spill] sm:$0xff] %v9839_v35  ;;  %v9843_v8 = vsel %vm825_vm1, %v5418_v31, %v9831_v18  ;;  %v4038_v10 = vpop.xlane.xlu0 %4037  ;;  %v9874_v33 = vperm.slane %v5359_v37, %v11275_v59  ;;  %v9887_v31 = vsel %vm825_vm1, %v5189_v2, %v5208_v63  ;;  %v5348_v2 = vrot.slane %v9740_v57, 4 }
 0x714   : > { %v4137_v40 = vperm.slane %v4038_v10, %v8417_v13  ;;  %11283 = vst [vmem:[#allocation104_spill] sm:$0xff] %v9887_v31  ;;  %v9905_v16 = vperm.slane %v5383_v30, %v11278_v5  ;;  %v5184_v63 = vrot.slane %v9803_v17, 4  ;;  %v5384_v31 = vrot.slane %v9880_v24, 4 }
 0x715   : > { %v5407_v10 = vsel %vm825_vm1, %v5406_v12, %v9874_v33 }
 0x716   : > { %v4139_v32 = vsel %vm2918_vm4, %v4138_v58, %v4137_v40  ;;  %v9898_v54 = vperm.slane %v5407_v10, %v11278_v5  ;;  %v9901_v40 = vpop.xlane.xlu1 %4076 }
 0x717   : > { %v4165_v48 = vsel %vm2965_vm5, %v4139_v32, %v4136_v0  ;;  %v9861_v47 = vpop.f32.mrf.mxu0 }
 0x718   : > { %3843 = vadd.xlane.f32.xlu0 %v3842_v53  ;;  %v5430_v62 = vrot.slane %v9898_v54, 4  ;;  %v4144_v53 = vperm.slane %v9752_v9, %v8764_v51 }
 0x71a   : > { %v9915_v57 = vsel %vm825_vm1, %v5430_v62, %v9905_v16 }
 0x71b   : > { %v4044_v0 = vpop.xlane.xlu0 %4043  ;;  %11284 = vst [vmem:[#allocation45_spill] sm:$0xff] %v9915_v57 }
 0x71c   : > { %v4140_v25 = vperm.slane %v4044_v0, %v8417_v13 }
 0x71d   : > { %v9883_v4 = vpop.f32.mrf.mxu3 }
 0x71e   : > { %v4142_v50 = vsel %vm2918_vm4, %v4141_v20, %v4140_v25 }
 0x71f   : > { %v4166_v55 = vsel %vm2967_vm6, %v4142_v50, %v4165_v48  ;;  %v4496_v37 = vpop.f32.mrf.mxu0  ;;  %v5349_v48 = vsel %vm825_vm1, %v9742_v27, %v5348_v2  ;;  %v5336_v27 = vrot.slane %v9737_v14, 4  ;;  %v5169_v50 = vperm.slane %v9799_v3, %v11278_v5 }
 0x720   : > { %v5446_v58 = vrot.slane %v4496_v37, 4  ;;  %v5449_v44 = vsel %vm825_vm1, %v4496_v37, %v5448_v39  ;;  %3852 = vadd.xlane.f32.xlu0 %v3851_v38  ;;  %v9919_v0 = vperm.slane %v5349_v48, %v11275_v59  ;;  %v9931_v37 = vpop.xlane.xlu2 %3759  ;;  %v9935_v38 = vpop.xlane.xlu1 %3762  ;;  %v5185_v3 = vsel %vm825_vm1, %v9783_v46, %v5184_v63 }
 0x721   : > { %v5337_v9 = vsel %vm825_vm1, %v9764_v21, %v5336_v27  ;;  %v5193_v62 = vperm.slane %v5185_v3, %v11278_v5  ;;  %v9958_v46 = vpop.f32.mrf.mxu2  ;;  %v9989_v3 = vperm.slane %v5449_v44, %v11275_v59 }
 0x722   : > { %v5447_v7 = vsel %vm825_vm1, %v5446_v58, %v4444_v26  ;;  %v5394_v12 = vrot.slane %v9919_v0, 4  ;;  %v9939_v30 = vperm.slane %v5337_v9, %v11275_v59  ;;  %v5216_v58 = vrot.slane %v9834_v56, 4  ;;  %11286 = vst [vmem:[#allocation93_spill] sm:$0xff] %v9958_v46 }
 0x723   : > { %v4050_v32 = vpop.xlane.xlu0 %4049  ;;  %v9968_v9 = vperm.slane %v9843_v8, %v11278_v5  ;;  %v4150_v8 = vperm.slane %v9815_v1, %v8764_v51 }
 0x724   : > { %v4143_v23 = vperm.slane %v4050_v32, %v8417_v13  ;;  %v5212_v32 = vrot.slane %v5169_v50, 4  ;;  %v5395_v48 = vsel %vm825_vm1, %v5394_v12, %v9939_v30 }
 0x725   : > { %v4470_v45 = vpop.f32.mrf.mxu3  ;;  %v9972_v12 = vperm.slane %v5395_v48, %v11278_v5  ;;  %v5248_v48 = vrot.slane %v9958_v46, 4 }
 0x726   : > { %v4145_v26 = vsel %vm2918_vm4, %v4144_v53, %v4143_v23  ;;  %v5460_v17 = vrot.slane %v4470_v45, 4  ;;  %v9964_v27 = vsel %vm825_vm1, %v5193_v62, %v5212_v32  ;;  %v5196_v32 = vrot.slane %v9793_v43, 4 }
 0x727   : > { %v4167_v20 = vsel %vm2969_vm7, %v4145_v26, %v4166_v55  ;;  %v9922_v25 = vpop.f32.mrf.mxu1  ;;  %v4147_v55 = vperm.slane %v9776_v52, %v8764_v51  ;;  %v9956_v26 = vsel %vm825_vm1, %v9823_v29, %v5216_v58  ;;  %11287 = vst [vmem:[#allocation95_spill] sm:$0xff] %v9964_v27 }
 0x728   : > { %v9999_v1 = vpop.xlane.xlu1 %3771 }
 0x72b   : > { %v4056_v39 = vpop.xlane.xlu0 %4055 }
 0x72c   : > { %v4146_v14 = vperm.slane %v4056_v39, %v8417_v13 }
 0x72d   : > { %v9941_v21 = vpop.f32.mrf.mxu3 }
 0x72e   : > { %11285 = vst [vmem:[#allocation92_spill] sm:$0xff] %v9941_v21  ;;  %v4148_v10 = vsel %vm2918_vm4, %v4147_v55, %v4146_v14 }
 0x72f   : > { %v9948_v2 = vsel %vm2971_vm8, %v4148_v10, %v4167_v20  ;;  %v4522_v52 = vpop.f32.mrf.mxu1  ;;  %v5210_v20 = vrot.slane %v5193_v62, 4  ;;  %v9996_v62 = vpop.xlane.xlu2 %3768 }
 0x730   : > { %v5458_v53 = vrot.slane %v4522_v52, 4  ;;  %v5461_v23 = vsel %vm825_vm1, %v4522_v52, %v5460_v17  ;;  %v5438_v17 = vrot.slane %v9968_v9, 4  ;;  %v10058_v24 = vpop.xlane.xlu1 %3777 }
 0x731   : > { %v9961_v56 = vperm.slane %v5461_v23, %v11275_v59  ;;  %v9979_v14 = vsel %vm825_vm1, %v5210_v20, %v5169_v50 }
 0x732   : > { %v5459_v63 = vsel %vm825_vm1, %v5458_v53, %v4470_v45  ;;  %11288 = vst [vmem:[#allocation94_spill] sm:$0xff] %v9979_v14  ;;  %v9986_v45 = vperm.slane %v5447_v7, %v11275_v59  ;;  %v9994_v50 = vsel %vm825_vm1, %v5438_v17, %v9972_v12  ;;  %v5260_v7 = vrot.slane %v9941_v21, 4 }
 0x733   : > { %v9975_v29 = vperm.slane %v5459_v63, %v11275_v59  ;;  %v5506_v39 = vrot.slane %v9961_v56, 4  ;;  %v4062_v55 = vpop.xlane.xlu0 %4061  ;;  %11289 = vst [vmem:[#allocation96_spill] sm:$0xff] %v9994_v50 }
 0x734   : > { %v4149_v10 = vperm.slane %v4062_v55, %v8417_v13 }
 0x735   : > { %v5494_v58 = vrot.slane %v9975_v29, 4  ;;  %v4574_v52 = vpop.f32.mrf.mxu3  ;;  %v10014_v63 = vsel %vm825_vm1, %v5506_v39, %v9989_v3 }
 0x736   : > { %v10004_v44 = vsel %vm2918_vm4, %v4150_v8, %v4149_v10  ;;  %v5181_v8 = vperm.slane %v9789_v36, %v11278_v5  ;;  %v5197_v10 = vsel %vm825_vm1, %v9780_v19, %v5196_v32 }
 0x737   : > { %v10006_v53 = vpop.f32.mrf.mxu0  ;;  %v10008_v23 = vpop.f32.mrf.mxu1  ;;  %v5495_v20 = vsel %vm825_vm1, %v5494_v58, %v9986_v45  ;;  %v5205_v27 = vperm.slane %v5197_v10, %v11278_v5  ;;  %v5484_v10 = vrot.slane %v4574_v52, 4 }
 0x738   : > { %11290 = vst [vmem:[#allocation68_spill] sm:$0xff] %v10006_v53  ;;  %v5249_v43 = vsel %vm825_vm1, %v10006_v53, %v5248_v48  ;;  %v5261_v55 = vsel %vm825_vm1, %v10008_v23, %v5260_v7  ;;  %v4548_v58 = vpop.f32.mrf.mxu2  ;;  %v4153_v48 = vperm.slane %v9865_v61, %v8764_v51  ;;  %v5224_v7 = vrot.slane %v9827_v15, 4 }
 0x739   : > { %v10021_v17 = vperm.slane %v5249_v43, %v11275_v59  ;;  %v10029_v39 = vperm.slane %v5261_v55, %v11275_v59  ;;  %v5220_v19 = vrot.slane %v5181_v8, 4  ;;  %v5472_v32 = vrot.slane %v4548_v58, 4 }
 0x73a   : > { %v5225_v14 = vsel %vm825_vm1, %v9861_v47, %v5224_v7  ;;  %v5236_v55 = vrot.slane %v9883_v4, 4  ;;  %v10053_v7 = vpop.xlane.xlu2 %3774  ;;  %v5218_v53 = vrot.slane %v5205_v27, 4 }
 0x73b   : > { %11291 = vst [vmem:[#allocation59_spill] sm:$0xff] %v10021_v17  ;;  %v5308_v50 = vrot.slane %v10021_v17, 4  ;;  %v4068_v6 = vpop.xlane.xlu0 %4067  ;;  %v4132_v17 = vperm.slane %v9665_v11, %v8764_v51  ;;  %v4131_v11 = vperm.slane %v9774_v22, %v8417_v13 }
 0x73c   : > { %11292 = vst [vmem:[#allocation57_spill] sm:$0xff] %v10029_v39  ;;  %v4152_v43 = vperm.slane %v4068_v6, %v8417_v13  ;;  %v5396_v6 = vrot.slane %v9939_v30, 4  ;;  %v10061_v30 = vperm.slane %v5225_v14, %v11275_v59 }
 0x73d   : > { %v5309_v36 = vsel %vm825_vm1, %v10029_v39, %v5308_v50  ;;  %v10049_v50 = vsel %vm825_vm1, %v5205_v27, %v5220_v19 }
 0x73e   : > { %v10042_v57 = vsel %vm2918_vm4, %v4153_v48, %v4152_v43  ;;  %v10044_v61 = vpop.f32.mrf.mxu3  ;;  %11294 = vst [vmem:[#allocation72_spill] sm:$0xff] %v10049_v50  ;;  %v5237_v48 = vsel %vm825_vm1, %v9922_v25, %v5236_v55 }
 0x73f   : > { %11293 = vst [vmem:[#allocation37_spill] sm:$0xff] %v10044_v61  ;;  %v4600_v35 = vpop.f32.mrf.mxu0  ;;  %v4626_v39 = vpop.f32.mrf.mxu1 }
 0x740   : > { %v5470_v43 = vrot.slane %v4600_v35, 4  ;;  %v5473_v61 = vsel %vm825_vm1, %v4600_v35, %v5472_v32  ;;  %v5482_v50 = vrot.slane %v4626_v39, 4  ;;  %v5485_v46 = vsel %vm825_vm1, %v4626_v39, %v5484_v10 }
 0x741   : > { %v5481_v19 = vperm.slane %v5473_v61, %v11275_v59  ;;  %v5493_v55 = vperm.slane %v5485_v46, %v11275_v59  ;;  %v10070_v35 = vperm.slane %v5237_v48, %v11275_v59  ;;  %v5385_v61 = vsel %vm825_vm1, %v9858_v49, %v5384_v31 }
 0x742   : > { %v5471_v15 = vsel %vm825_vm1, %v5470_v43, %v4548_v58  ;;  %v5483_v14 = vsel %vm825_vm1, %v5482_v50, %v4574_v52  ;;  %v5408_v39 = vrot.slane %v9874_v33, 4  ;;  %v5432_v58 = vrot.slane %v9905_v16, 4 }
 0x743   : > { %v5532_v32 = vrot.slane %v5481_v19, 4  ;;  %v10073_v21 = vpop.xlane.xlu0 %4073  ;;  %v5489_v22 = vperm.slane %v5483_v14, %v11275_v59  ;;  %v5530_v10 = vrot.slane %v5493_v55, 4  ;;  %v5284_v46 = vrot.slane %v10061_v30, 4 }
 0x744   : > { %v5477_v27 = vperm.slane %v5471_v15, %v11275_v59  ;;  %v5501_v52 = vperm.slane %v5495_v20, %v11278_v5  ;;  %v10090_v33 = vsel %vm825_vm1, %v5218_v53, %v5181_v8  ;;  %v10094_v31 = vsel %vm825_vm1, %v9898_v54, %v5432_v58 }
 0x745   : > { %v10083_v48 = vsel %vm825_vm1, %v5493_v55, %v5532_v32  ;;  %v5518_v50 = vrot.slane %v5489_v22, 4  ;;  %v5531_v49 = vsel %vm825_vm1, %v5530_v10, %v5481_v19  ;;  %11295 = vst [vmem:[#allocation97_spill] sm:$0xff] %v10090_v33  ;;  %v5285_v20 = vsel %vm825_vm1, %v10070_v35, %v5284_v46 }
 0x746   : > { %v10086_v43 = vpop.f32.mrf.mxu3  ;;  %11296 = vst [vmem:[#allocation98_spill] sm:$0xff] %v10094_v31  ;;  %v10099_v15 = vperm.slane %v5531_v49, %v11278_v5  ;;  %v5317_v55 = vperm.slane %v5309_v36, %v11278_v5  ;;  %v5397_v19 = vsel %vm825_vm1, %v9919_v0, %v5396_v6  ;;  %v5513_v54 = vperm.slane %v10014_v63, %v11278_v5  ;;  %v10115_v49 = vpop.xlane.xlu2 %3783 }
 0x747   : > { %v10096_v16 = vpop.f32.mrf.mxu0  ;;  %v5519_v53 = vsel %vm825_vm1, %v5518_v50, %v5477_v27  ;;  %v10107_v8 = vpop.f32.mrf.mxu1  ;;  %v5293_v32 = vperm.slane %v5285_v20, %v11278_v5  ;;  %v5393_v14 = vperm.slane %v5385_v61, %v11278_v5  ;;  %v5544_v36 = vrot.slane %v5501_v52, 4 }
 0x748   : > { %11297 = vst [vmem:[#allocation17_spill] sm:$0xff] %v10107_v8  ;;  %v5525_v10 = vperm.slane %v5519_v53, %v11278_v5  ;;  %v5550_v58 = vrot.slane %v10099_v15, 4  ;;  %v5330_v46 = vrot.slane %v5317_v55, 4  ;;  %v5409_v6 = vsel %vm825_vm1, %v9868_v28, %v5408_v39  ;;  %v10123_v20 = vpop.xlane.xlu1 %3786 }
 0x749   : > { %v5332_v0 = vrot.slane %v5293_v32, 4  ;;  %v4133_v50 = vsel %vm2918_vm4, %v4132_v17, %v4131_v11  ;;  %v4162_v63 = vsel %vm2973_vm9, %v9762_v60, %v9748_v42  ;;  %v5417_v17 = vperm.slane %v5409_v6, %v11278_v5 }
 0x74a   : > { %v5542_v61 = vrot.slane %v5525_v10, 4  ;;  %v10126_v33 = vsel %vm825_vm1, %v5550_v58, %v5513_v54  ;;  %v10129_v31 = vsel %vm825_vm1, %v5330_v46, %v5293_v32  ;;  %v10132_v8 = vsel %vm825_vm1, %v5525_v10, %v5544_v36 }
 0x74b   : > { %v3766_v53 = vpop.xlane.xlu0 %3765  ;;  %v10135_v28 = vsel %vm825_vm1, %v5317_v55, %v5332_v0  ;;  %v5440_v42 = vrot.slane %v9972_v12, 4  ;;  %v5520_v60 = vrot.slane %v5477_v27, 4  ;;  %v5436_v39 = vrot.slane %v5393_v14, 4 }
 0x74c   : > { %v10140_v11 = vsel %vm825_vm1, %v5542_v61, %v5501_v52  ;;  %v4163_v58 = vsel %vm2975_vm10, %v9601_v41, %v4162_v63  ;;  %v5420_v32 = vrot.slane %v9831_v18, 4  ;;  %v5434_v10 = vrot.slane %v5417_v17, 4 }
 0x74d   : > { %v5405_v36 = vperm.slane %v5397_v19, %v11278_v5  ;;  %v5496_v55 = vrot.slane %v9986_v45, 4  ;;  %v10153_v27 = vsel %vm825_vm1, %v5417_v17, %v5436_v39  ;;  %v10157_v52 = vsel %vm825_vm1, %v9968_v9, %v5440_v42 }
 0x74e   : > { %v4824_v46 = vpop.f32.mrf.mxu3  ;;  %v10162_v18 = vsel %vm825_vm1, %v5434_v10, %v5393_v14  ;;  %v10168_v19 = vsel %vm2977_vm11, %v4133_v50, %v4163_v58  ;;  %v5421_v9 = vsel %vm825_vm1, %v9811_v34, %v5420_v32  ;;  %v3793_v42 = vpop.xlane.xlu2 %3792  ;;  %v3889_v34 = vperm.slane %v3766_v53, %v8417_v13 }
 0x74f   : > { %v10148_v0 = vadd.f32 %v9956_v26, %v4824_v46  ;;  %v10150_v12 = vpop.f32.mrf.mxu0  ;;  %v10159_v41 = vpop.f32.mrf.mxu1  ;;  %v5497_v45 = vsel %vm825_vm1, %v9975_v29, %v5496_v55  ;;  %v5521_v26 = vsel %vm825_vm1, %v5489_v22, %v5520_v60  ;;  %v5429_v17 = vperm.slane %v5421_v9, %v11278_v5 }
 0x750   : > { %v5505_v6 = vperm.slane %v5497_v45, %v11278_v5  ;;  %v5529_v63 = vperm.slane %v5521_v26, %v11278_v5  ;;  %v5444_v14 = vrot.slane %v5405_v36, 4  ;;  %v3796_v29 = vpop.xlane.xlu1 %3795  ;;  %v5552_v32 = vrot.slane %v5513_v54, 4 }
 0x751   : > { %v5442_v10 = vrot.slane %v5429_v17, 4  ;;  %v3890_v26 = vperm.slane %v9996_v62, %v8764_v51  ;;  %v3886_v53 = vperm.slane %v9931_v37, %v8417_v13 }
 0x752   : > { %v5546_v39 = vrot.slane %v5529_v63, 4  ;;  %v5548_v46 = vrot.slane %v5505_v6, 4  ;;  %v10176_v22 = vsel %vm825_vm1, %v5429_v17, %v5444_v14  ;;  %v3892_v17 = vperm.slane %v9999_v1, %v8417_v13 }
 0x753   : > { %v3781_v61 = vpop.xlane.xlu0 %3780  ;;  %v10188_v55 = vsel %vm825_vm1, %v5442_v10, %v5405_v36  ;;  %v3891_v54 = vsel %vm2918_vm4, %v3890_v26, %v3889_v34  ;;  %v5508_v14 = vrot.slane %v9989_v3, 4 }
 0x754   : > { %v10179_v50 = vsel %vm825_vm1, %v5546_v39, %v5505_v6  ;;  %v10182_v60 = vsel %vm825_vm1, %v5529_v63, %v5548_v46  ;;  %v3887_v6 = vperm.slane %v9935_v38, %v8764_v51  ;;  %v10198_v63 = vsel %vm825_vm1, %v10099_v15, %v5552_v32 }
 0x755   : > { %v3896_v36 = vperm.slane %v3781_v61, %v8764_v51  ;;  %v3895_v38 = vperm.slane %v10058_v24, %v8417_v13  ;;  %v3893_v15 = vperm.slane %v10053_v7, %v8764_v51  ;;  %v5509_v1 = vsel %vm825_vm1, %v9961_v56, %v5508_v14 }
 0x756   : > { %v3888_v62 = vsel %vm2918_vm4, %v3887_v6, %v3886_v53  ;;  %v3802_v39 = vpop.xlane.xlu2 %3801  ;;  %v5541_v24 = vperm.slane %v10083_v48, %v11278_v5  ;;  %v3899_v7 = vperm.slane %v10123_v20, %v8764_v51  ;;  %v5517_v26 = vperm.slane %v5509_v1, %v11278_v5 }
 0x757   : > { %v10185_v58 = vpop.f32.mrf.mxu0  ;;  %v10190_v45 = vpop.f32.mrf.mxu1  ;;  %v3934_v37 = vsel %vm2965_vm5, %v3891_v54, %v3888_v62  ;;  %v3897_v61 = vsel %vm2918_vm4, %v3896_v36, %v3895_v38  ;;  %v3894_v3 = vsel %vm2918_vm4, %v3893_v15, %v3892_v17  ;;  %v3902_v6 = vperm.slane %v3793_v42, %v8764_v51 }
 0x758   : > { %v3805_v46 = vpop.xlane.xlu1 %3804  ;;  %v3935_v53 = vsel %vm2967_vm6, %v3894_v3, %v3934_v37  ;;  %v5554_v54 = vrot.slane %v5541_v24, 4  ;;  %v3898_v56 = vperm.slane %v10115_v49, %v8417_v13  ;;  %v5556_v48 = vrot.slane %v5517_v26, 4 }
 0x759   : > { %v3936_v36 = vsel %vm2969_vm7, %v3897_v61, %v3935_v53  ;;  %v3904_v42 = vperm.slane %v3796_v29, %v8417_v13  ;;  %v3907_v49 = vperm.slane %v3802_v39, %v8417_v13 }
 0x75a   : > { %v10235_v62 = vsel %vm825_vm1, %v5554_v54, %v5517_v26  ;;  %v3900_v38 = vsel %vm2918_vm4, %v3899_v7, %v3898_v56  ;;  %v10241_v15 = vsel %vm825_vm1, %v5541_v24, %v5556_v48  ;;  %v4169_v48 = vsel %vm2973_vm9, %v10004_v44, %v9948_v2 }
 0x75b   : > { %v3790_v9 = vpop.xlane.xlu0 %3789  ;;  %v3937_v37 = vsel %vm2971_vm8, %v3900_v38, %v3936_v36  ;;  %v4170_v38 = vsel %vm2975_vm10, %v10042_v57, %v4169_v48 }
 0x75c   : > { %v3901_v10 = vperm.slane %v3790_v9, %v8417_v13  ;;  %v3908_v9 = vperm.slane %v3805_v46, %v8764_v51 }
 0x75e   : > { %v3903_v17 = vsel %vm2918_vm4, %v3902_v6, %v3901_v10  ;;  %v3909_v10 = vsel %vm2918_vm4, %v3908_v9, %v3907_v49  ;;  %v3811_v7 = vpop.xlane.xlu2 %3810  ;;  %v4156_v49 = vperm.slane %v9901_v40, %v8764_v51 }
 0x75f   : > { %v10215_v34 = vpop.f32.mrf.mxu0  ;;  %v10224_v32 = vpop.f32.mrf.mxu1  ;;  %v3938_v46 = vsel %vm2973_vm9, %v3903_v17, %v3937_v37 }
 0x760   : > { %v3814_v39 = vpop.xlane.xlu1 %3813 }
 0x763   : > { %v3799_v20 = vpop.xlane.xlu0 %3798 }
 0x764   : > { %v3905_v14 = vperm.slane %v3799_v20, %v8764_v51 }
 0x766   : > { %v3906_v61 = vsel %vm2918_vm4, %v3905_v14, %v3904_v42  ;;  %v3820_v54 = vpop.xlane.xlu2 %3819  ;;  %v4155_v14 = vperm.slane %v10073_v21, %v8417_v13 }
 0x767   : > { %v3939_v1 = vsel %vm2975_vm10, %v3906_v61, %v3938_v46  ;;  %v4964_v3 = vpop.f32.mrf.mxu0  ;;  %v10252_v26 = vpop.f32.mrf.mxu1 }
 0x768   : > { %v10250_v29 = vadd.f32 %v10162_v18, %v4964_v3  ;;  %v3940_v24 = vsel %vm2977_vm11, %v3909_v10, %v3939_v1  ;;  %v3823_v56 = vpop.xlane.xlu1 %3822  ;;  %v4157_v46 = vsel %vm2918_vm4, %v4156_v49, %v4155_v14  ;;  %v3913_v10 = vperm.slane %v3814_v39, %v8417_v13 }
 0x769   : > { %3950 = vxpose.xlu2.b32.start [1/2] (short) (narrow) %v3940_v24, 16  ;;  %v4171_v44 = vsel %vm2977_vm11, %v4157_v46, %v4170_v38  ;;  %v3911_v1 = vperm.slane %v3811_v7, %v8764_v51  ;;  %v3917_v40 = vperm.slane %v3823_v56, %v8764_v51  ;;  %v3916_v38 = vperm.slane %v3820_v54, %v8417_v13 }
 0x76b   : > { %v3808_v6 = vpop.xlane.xlu0 %3807 }
 0x76c   : > { %v3910_v57 = vperm.slane %v3808_v6, %v8417_v13 }
 0x76e   : > { %v3829_v17 = vpop.xlane.xlu2 %3828 }
 0x76f   : > { %v10255_v53 = vpop.f32.mrf.mxu1 }
 0x770   : > { %v3832_v42 = vpop.xlane.xlu1 %3831 }
 0x771   : > { %v3922_v39 = vperm.slane %v3832_v42, %v8417_v13 }
 0x773   : > { %v3817_v36 = vpop.xlane.xlu0 %3816 }
 0x776   : > { %v3838_v2 = vpop.xlane.xlu2 %3837 }
 0x777   : > { %v5104_v9 = vpop.f32.mrf.mxu1 }
 0x778   : > { %v10261_v18 = vadd.f32 %v10176_v22, %v5104_v9  ;;  %v3914_v22 = vperm.slane %v3817_v36, %v8764_v51  ;;  %v3841_v61 = vpop.xlane.xlu1 %3840  ;;  %v3920_v9 = vperm.slane %v3829_v17, %v8764_v51  ;;  %v3912_v36 = vsel %vm2918_vm4, %v3911_v1, %v3910_v57 }
 0x77a   : > { %v3915_v21 = vsel %vm2918_vm4, %v3914_v22, %v3913_v10  ;;  %v3925_v22 = vperm.slane %v3838_v2, %v8417_v13 }
 0x77b   : > { %v3826_v20 = vpop.xlane.xlu0 %3825  ;;  %v3941_v6 = vsel %vm2965_vm5, %v3915_v21, %v3912_v36 }
 0x77c   : > { %v3919_v3 = vperm.slane %v3826_v20, %v8417_v13  ;;  %v3918_v20 = vsel %vm2918_vm4, %v3917_v40, %v3916_v38  ;;  %v4178_v38 = vstv %s10302_s11 }
 0x77d   : > { %v3942_v17 = vsel %vm2967_vm6, %v3918_v20, %v3941_v6  ;;  %v11299_v20 = vld [vmem:[#allocation47_spill] sm:$0xff] }
 0x77e   : > { %v3847_v7 = vpop.xlane.xlu2 %3846  ;;  %v3921_v14 = vsel %vm2918_vm4, %v3920_v9, %v3919_v3 }
 0x77f   : > { %v3929_v46 = vperm.slane %v3847_v7, %v8764_v51  ;;  %v3943_v42 = vsel %vm2969_vm7, %v3921_v14, %v3942_v17  ;;  %v11298_v14 = vld [vmem:[#allocation31_spill] sm:$0xff] }
 0x780   : > { %v3850_v54 = vpop.xlane.xlu1 %3849 }
 0x781   : > { %v3931_v3 = vperm.slane %v3850_v54, %v8417_v13 }
 0x783   : > { %v3835_v37 = vpop.xlane.xlu0 %3834 }
 0x784   : > { %v3923_v24 = vperm.slane %v3835_v37, %v8764_v51  ;;  %v3926_v37 = vperm.slane %v3841_v61, %v8764_v51 }
 0x786   : > { %v3924_v56 = vsel %vm2918_vm4, %v3923_v24, %v3922_v39  ;;  %v3927_v21 = vsel %vm2918_vm4, %v3926_v37, %v3925_v22 }
 0x787   : > { %v3944_v10 = vsel %vm2971_vm8, %v3924_v56, %v3943_v42 }
 0x788   : > { %v3945_v40 = vsel %vm2973_vm9, %v3927_v21, %v3944_v10  ;;  %v10335_v21 = vpop.f32.mrf.mxu2 }
 0x78b   : > { %v3844_v48 = vpop.xlane.xlu0 %3843 }
 0x78c   : > { %v3928_v49 = vperm.slane %v3844_v48, %v8417_v13 }
 0x78e   : > { %v3930_v57 = vsel %vm2918_vm4, %v3929_v46, %v3928_v49 }
 0x78f   : > { %v3946_v24 = vsel %vm2975_vm10, %v3930_v57, %v3945_v40  ;;  %v5222_v40 = vrot.slane %v9861_v47, 4 }
 0x793   : > { %v3853_v1 = vpop.xlane.xlu0 %3852 }
 0x794   : > { %v3932_v61 = vperm.slane %v3853_v1, %v8764_v51  ;;  %v5234_v1 = vrot.slane %v9922_v25, 4  ;;  %v11301_v25 = vld [vmem:[#allocation68_spill] sm:$0xff] }
 0x796   : > { %v3933_v48 = vsel %vm2918_vm4, %v3932_v61, %v3931_v3  ;;  %v5258_v3 = vrot.slane %v10008_v23, 4  ;;  %v5235_v61 = vsel %vm825_vm1, %v5234_v1, %v9883_v4  ;;  %v11302_v23 = vld [vmem:[#allocation49_spill] sm:$0xff] }
 0x797   : > { %v3947_v9 = vsel %vm2977_vm11, %v3933_v48, %v3946_v24  ;;  %v11300_v24 = vld [vmem:[#allocation92_spill] sm:$0xff]  ;;  %v5223_v4 = vsel %vm825_vm1, %v5222_v40, %v11302_v23 }
 0x798   : > { %3951 = vxpose.xlu2.b32.end [2/2] (short) (narrow) %v3947_v9, 16  ;;  %v5259_v48 = vsel %vm825_vm1, %v5258_v3, %v11300_v24  ;;  %v10344_v9 = vperm.slane %v5235_v61, %v11275_v59  ;;  %v5282_v3 = vrot.slane %v10070_v35, 4 }
 0x79a   : > { %v5270_v47 = vrot.slane %v10344_v9, 4  ;;  %v5283_v23 = vsel %vm825_vm1, %v5282_v3, %v10061_v30 }
 0x829   : > { %v3966_v2 = vpop.trf.xlu2 }
 0x82a   : > { %v4174_v36 = vadd.f32 %v10168_v19, %v3966_v2  ;;  %v5246_v2 = vrot.slane %v11301_v25, 4 }
 0x82c   : > { %6307 = vrcp.f32 %v4174_v36  ;;  %v10349_v36 = vperm.slane %v5259_v48, %v11275_v59 }
 0x831   : > { %v3967_v49 = vpop.trf.xlu2 }
 0x832   : > { %v6308_v13 = vpop.eup %6307  ;;  %v4175_v37 = vadd.f32 %v4171_v44, %v3967_v49 }
 0x833   : > { %v10306_v39 = vmul.f32 %v6308_v13, %v4178_v38  ;;  %v11303_v13 = vld [vmem:[#allocation93_spill] sm:$0xff] }
 0x834   : > { %6309 = vrcp.f32 %v4175_v37 }
 0x835   : > { %v5603_v51 = vperm.slane %v10306_v39, 1  ;;  %v5590_v6 = vperm.slane %v10306_v39, 0  ;;  %v5642_v7 = vperm.slane %v10306_v39, 4  ;;  %v5655_v19 = vperm.slane %v10306_v39, 5 }
 0x836   : > { %v5616_v56 = vperm.slane %v10306_v39, 2  ;;  %v5681_v17 = vperm.slane %v10306_v39, 7  ;;  %v5629_v46 = vperm.slane %v10306_v39, 3  ;;  %v5668_v44 = vperm.slane %v10306_v39, 6 }
 0x837   : > { %5614 = vperm.xlu2 %6155, %v5603_v51   ;;  %5601 = vperm.xlu1 %6157, %v5590_v6   ;;  %v5247_v39 = vsel %vm825_vm1, %v5246_v2, %v11303_v13  ;;  %v5289_v13 = vperm.slane %v5283_v23, %v11278_v5 }
 0x838   : > { %5595 = vperm.xlu0 %6154, %v5590_v6   ;;  %v5294_v6 = vrot.slane %v10349_v36, 4 }
 0x839   : > { %v5328_v3 = vrot.slane %v5289_v13, 4 }
 0x83a   : > { %v6310_v54 = vpop.eup %6309 }
 0x83b   : > { %v10319_v42 = vmul.f32 %v6310_v54, %v4178_v38  ;;  %v10355_v38 = vpop.f32.mrf.mxu2 }
 0x83d   : > { %v5694_v22 = vperm.slane %v10319_v42, 0  ;;  %v5707_v10 = vperm.slane %v10319_v42, 1  ;;  %v5720_v57 = vperm.slane %v10319_v42, 2  ;;  %v5759_v48 = vperm.slane %v10319_v42, 5 }
 0x83e   : > { %v5772_v30 = vperm.slane %v10319_v42, 6 }
 0x83f   : > { %5653 = vperm.xlu2 %6155, %v5642_v7   ;;  %6158 = vset.pattern.permute.xlu1 %v11298_v14 }
 0x840   : > { %6159 = vset.pattern.permute.xlu0 %v11299_v20 }
 0x843   : > { %v10383_v61 = vpop.f32.mrf.mxu2 }
 0x847   : > { %5666 = vperm.xlu2 %6155, %v5655_v19   ;;  %5608 = vperm.xlu1 %6158, %v5603_v51   ;;  %v10360_v51 = vperm.slane %v5223_v4, %v11275_v59 }
 0x848   : > { %5627 = vperm.xlu0 %6159, %v5616_v56  }
 0x849   : > { %v5271_v37 = vsel %vm825_vm1, %v5270_v47, %v10360_v51 }
 0x84f   : > { %6164 = vset.pattern.permute.xlu2 %v11298_v14  ;;  %5621 = vperm.xlu1 %6158, %v5616_v56   ;;  %v11304_v56 = vld [vmem:[#allocation57_spill] sm:$0xff] }
 0x850   : > { %6161 = vset.pattern.permute.xlu0 %v11298_v14  ;;  %v5306_v49 = vrot.slane %v11304_v56, 4 }
 0x857   : > { %5686 = vperm.xlu2 %6164, %v5681_v17   ;;  %5634 = vperm.xlu1 %6158, %v5629_v46  }
 0x858   : > { %5647 = vperm.xlu0 %6161, %v5642_v7   ;;  %v5746_v7 = vperm.slane %v10319_v42, 4 }
 0x85f   : > { %6160 = vset.pattern.permute.xlu1 %v11299_v20  ;;  %5699 = vperm.xlu2 %6164, %v5694_v22  }
 0x860   : > { %6163 = vset.pattern.permute.xlu0 %v11299_v20 }
 0x867   : > { %5640 = vperm.xlu1 %6160, %v5629_v46   ;;  %6167 = vset.pattern.permute.xlu2 %v11299_v20  ;;  %v5733_v46 = vperm.slane %v10319_v42, 3 }
 0x868   : > { %5679 = vperm.xlu0 %6163, %v5668_v44  }
 0x86f   : > { %6162 = vset.pattern.permute.xlu1 %v11298_v14  ;;  %5718 = vperm.xlu2 %6167, %v5707_v10  }
 0x870   : > { %6166 = vset.pattern.permute.xlu0 %v11298_v14 }
 0x877   : > { %5660 = vperm.xlu1 %6162, %v5655_v19   ;;  %5731 = vperm.xlu2 %6167, %v5720_v57   ;;  %v10365_v19 = vperm.slane %v5247_v39, %v11275_v59  ;;  %v5277_v59 = vperm.slane %v5271_v37, %v11278_v5  ;;  %v6315_v39 = vld [vmem:[%s6592_s21 + $0x18] sm:$0xff] }
 0x878   : > { %5712 = vperm.xlu0 %6166, %v5707_v10  }
 0x879   : > { %v5295_v54 = vsel %vm825_vm1, %v5294_v6, %v10365_v19  ;;  %v5320_v40 = vrot.slane %v5277_v59, 4 }
 0x87a   : > { %v5301_v1 = vperm.slane %v5295_v54, %v11278_v5  ;;  %v6316_v54 = vld [vmem:[%s6592_s21 + $0x48] sm:$0xff] }
 0x87c   : > { %v5321_v25 = vsel %vm825_vm1, %v5301_v1, %v5320_v40 }
 0x87d   : > { %v5561_v2 = vadd.f32 %v5321_v25, %v10086_v43  ;;  %v4798_v43 = vpop.f32.mrf.mxu2 }
 0x87f   : > { %5673 = vperm.xlu1 %6162, %v5668_v44   ;;  %6170 = vset.pattern.permute.xlu2 %v11298_v14  ;;  %v11305_v44 = vld [vmem:[#allocation59_spill] sm:$0xff] }
 0x880   : > { %6169 = vset.pattern.permute.xlu0 %v11299_v20  ;;  %v5307_v10 = vsel %vm825_vm1, %v5306_v49, %v11305_v44 }
 0x881   : > { %v5313_v24 = vperm.slane %v5307_v10, %v11278_v5  ;;  %v4826_v10 = vpop.f32.mrf.mxu3 }
 0x883   : > { %v5326_v4 = vrot.slane %v5313_v24, 4  ;;  %v5329_v40 = vsel %vm825_vm1, %v5313_v24, %v5328_v3  ;;  %v11306_v24 = vld [vmem:[#allocation111_spill] sm:$0xff] }
 0x884   : > { %v5569_v25 = vadd.f32 %v5329_v40, %v4826_v10 }
 0x887   : > { %6165 = vset.pattern.permute.xlu1 %v11299_v20  ;;  %5751 = vperm.xlu2 %6170, %v5746_v7  }
 0x888   : > { %5744 = vperm.xlu0 %6169, %v5733_v46  }
 0x88f   : > { %5692 = vperm.xlu1 %6165, %v5681_v17   ;;  %5764 = vperm.xlu2 %6170, %v5759_v48   ;;  %v5327_v17 = vsel %vm825_vm1, %v5326_v4, %v5289_v13 }
 0x890   : > { %6172 = vset.pattern.permute.xlu0 %v11298_v14  ;;  %v5567_v56 = vadd.f32 %v5327_v17, %v4798_v43 }
 0x891   : > { %v5615_v35 = vpop.permute.xlu2 %5614 }
 0x892   : > { %v5801_v47 = vmul.f32 %v5615_v35, %v5561_v2  ;;  %v5318_v2 = vrot.slane %v5301_v1, 4  ;;  %v6317_v35 = vld [vmem:[%s6592_s21 + $0x58] sm:$0xff] }
 0x894   : > { %v5833_v6 = vadd.f32 %v6315_v39, %v5801_v47  ;;  %v5785_v47 = vperm.slane %v10319_v42, 7  ;;  %v5319_v13 = vsel %vm825_vm1, %v5318_v2, %v5277_v59  ;;  %v5558_v39 = vadd.f32 %v11306_v24, %v10335_v21  ;;  %v4908_v2 = vpop.f32.mrf.mxu2  ;;  %v11315_v42 = vld [vmem:[#allocation96_spill] sm:$0xff] }
 0x895   : > { %v5559_v1 = vadd.f32 %v5319_v13, %v10355_v38  ;;  %v11307_v38 = vld [vmem:[#allocation72_spill] sm:$0xff] }
 0x896   : > { %5865 = vst [vmem:[%s10399_s13 + $0x18] sm:$0xff] %v5833_v6  ;;  %v5296_v6 = vrot.slane %v10365_v19, 4  ;;  %v5572_v19 = vadd.f32 %v11307_v38, %v10190_v45  ;;  %v11308_v45 = vld [vmem:[#allocation37_spill] sm:$0xff] }
 0x897   : > { %5705 = vperm.xlu1 %6165, %v5694_v22   ;;  %6173 = vset.pattern.permute.xlu2 %v11299_v20 }
 0x898   : > { %5777 = vperm.xlu0 %6172, %v5772_v30  }
 0x899   : > { %v5654_v49 = vpop.permute.xlu2 %5653 }
 0x89a   : > { %v5807_v37 = vmul.f32 %v5654_v49, %v5567_v56  ;;  %v6318_v56 = vld [vmem:[%s6592_s21 + $0x8] sm:$0xff] }
 0x89c   : > { %v5839_v44 = vadd.f32 %v6316_v54, %v5807_v37  ;;  %v6319_v37 = vld [vmem:[%s6592_s21] sm:$0xff] }
 0x89e   : > { %5871 = vst [vmem:[%s10399_s13 + $0x48] sm:$0xff] %v5839_v44  ;;  %v5272_v44 = vrot.slane %v10360_v51, 4 }
 0x89f   : > { %6168 = vset.pattern.permute.xlu1 %v11298_v14  ;;  %5783 = vperm.xlu2 %6173, %v5772_v30  }
 0x8a0   : > { %6175 = vset.pattern.permute.xlu0 %v11299_v20 }
 0x8a1   : > { %v5667_v22 = vpop.permute.xlu2 %5666 }
 0x8a2   : > { %v5809_v23 = vmul.f32 %v5667_v22, %v5569_v25  ;;  %v6320_v25 = vld [vmem:[%s6592_s21 + $0x70] sm:$0xff] }
 0x8a4   : > { %v5841_v4 = vadd.f32 %v6317_v35, %v5809_v23  ;;  %v11309_v23 = vld [vmem:[#allocation104_spill] sm:$0xff]  ;;  %v11310_v35 = vld [vmem:[#allocation45_spill] sm:$0xff] }
 0x8a5   : > { %v5560_v51 = vadd.f32 %v11309_v23, %v11308_v45 }
 0x8a6   : > { %5873 = vst [vmem:[%s10399_s13 + $0x58] sm:$0xff] %v5841_v4  ;;  %v5574_v4 = vadd.f32 %v11310_v35, %v4908_v2 }
 0x8a7   : > { %5725 = vperm.xlu1 %6168, %v5720_v57   ;;  %5796 = vperm.xlu2 %6173, %v5785_v47   ;;  %v5297_v57 = vsel %vm825_vm1, %v10349_v36, %v5296_v6  ;;  %v5273_v36 = vsel %vm825_vm1, %v10344_v9, %v5272_v44 }
 0x8a8   : > { %v10432_v21 = vperm.slane %v5297_v57, %v11278_v5 }
 0x8a9   : > { %v5602_v17 = vpop.permute.xlu1 %5601 }
 0x8aa   : > { %v5799_v30 = vmul.f32 %v5602_v17, %v5559_v1  ;;  %v5596_v43 = vpop.permute.xlu0 %5595  ;;  %v5322_v40 = vrot.slane %v10432_v21, 4 }
 0x8ab   : > { %v5798_v59 = vmul.f32 %v5596_v43, %v5558_v39 }
 0x8ac   : > { %v5831_v49 = vadd.f32 %v6318_v56, %v5799_v30  ;;  %v6321_v30 = vld [vmem:[%s6592_s21 + $0x10] sm:$0xff] }
 0x8ad   : > { %v5830_v54 = vadd.f32 %v6319_v37, %v5798_v59  ;;  %v6322_v59 = vld [vmem:[%s6592_s21 + $0x80] sm:$0xff] }
 0x8ae   : > { %5863 = vst [vmem:[%s10399_s13 + $0x8] sm:$0xff] %v5831_v49  ;;  %v6323_v49 = vld [vmem:[%s6592_s21 + $0x28] sm:$0xff] }
 0x8af   : > { %5862 = vst [vmem:[%s10399_s13] sm:$0xff] %v5830_v54  ;;  %5738 = vperm.xlu1 %6168, %v5733_v46   ;;  %v5281_v46 = vperm.slane %v5273_v36, %v11278_v5  ;;  %v11313_v36 = vld [vmem:[#allocation95_spill] sm:$0xff] }
 0x8b1   : > { %v5687_v10 = vpop.permute.xlu2 %5686  ;;  %v5323_v9 = vsel %vm825_vm1, %v5322_v40, %v5281_v46 }
 0x8b2   : > { %v5812_v3 = vmul.f32 %v5687_v10, %v5572_v19  ;;  %v5563_v13 = vadd.f32 %v5323_v9, %v10150_v12  ;;  %v11311_v12 = vld [vmem:[#allocation94_spill] sm:$0xff]  ;;  %v6326_v9 = vld [vmem:[%s6592_s21 + $0x98] sm:$0xff] }
 0x8b3   : > { %v5562_v37 = vadd.f32 %v11311_v12, %v10096_v16  ;;  %v6324_v19 = vld [vmem:[%s6592_s21 + $0x20] sm:$0xff]  ;;  %v11314_v16 = vld [vmem:[#allocation112_spill] sm:$0xff] }
 0x8b4   : > { %v5844_v22 = vadd.f32 %v6320_v25, %v5812_v3  ;;  %v11312_v3 = vld [vmem:[#allocation17_spill] sm:$0xff]  ;;  %v5566_v25 = vadd.f32 %v11314_v16, %v10383_v61 }
 0x8b5   : > { %v5564_v40 = vadd.f32 %v11313_v36, %v11312_v3  ;;  %v11316_v3 = vld [vmem:[#allocation98_spill] sm:$0xff] }
 0x8b6   : > { %5876 = vst [vmem:[%s10399_s13 + $0x70] sm:$0xff] %v5844_v22 }
 0x8b7   : > { %6171 = vset.pattern.permute.xlu1 %v11299_v20  ;;  %v10449_v20 = vpop.f32.mrf.mxu3 }
 0x8b8   : > { %v5576_v36 = vadd.f32 %v11316_v3, %v10449_v20  ;;  %v11317_v20 = vld [vmem:[#allocation97_spill] sm:$0xff] }
 0x8b9   : > { %v5609_v1 = vpop.permute.xlu1 %5608  ;;  %v5700_v24 = vpop.permute.xlu2 %5699 }
 0x8ba   : > { %v5800_v5 = vmul.f32 %v5609_v1, %v5560_v51  ;;  %v5628_v39 = vpop.permute.xlu0 %5627  ;;  %v5814_v6 = vmul.f32 %v5700_v24, %v5574_v4  ;;  %v6325_v4 = vld [vmem:[%s6592_s21 + $0x30] sm:$0xff]  ;;  %v4966_v1 = vpop.f32.mrf.mxu0  ;;  %v6327_v24 = vld [vmem:[%s6592_s21 + $0x40] sm:$0xff] }
 0x8bb   : > { %v5803_v17 = vmul.f32 %v5628_v39, %v5563_v13  ;;  %v5579_v61 = vadd.f32 %v10179_v50, %v4966_v1  ;;  %v6335_v1 = vld [vmem:[%s6592_s21 + $0x60] sm:$0xff] }
 0x8bc   : > { %v5832_v43 = vadd.f32 %v6321_v30, %v5800_v5  ;;  %v5846_v56 = vadd.f32 %v6322_v59, %v5814_v6  ;;  %v10478_v6 = vpop.f32.mrf.mxu2 }
 0x8bd   : > { %v5835_v57 = vadd.f32 %v6323_v49, %v5803_v17  ;;  %v6328_v17 = vld [vmem:[%s6592_s21 + $0xa8] sm:$0xff] }
 0x8be   : > { %5864 = vst [vmem:[%s10399_s13 + $0x10] sm:$0xff] %v5832_v43  ;;  %v5324_v43 = vrot.slane %v5281_v46, 4  ;;  %v6329_v46 = vld [vmem:[%s6592_s21 + $0x38] sm:$0xff] }
 0x8bf   : > { %5867 = vst [vmem:[%s10399_s13 + $0x28] sm:$0xff] %v5835_v57  ;;  %5757 = vperm.xlu1 %6171, %v5746_v7   ;;  %v4938_v10 = vpop.f32.mrf.mxu3 }
 0x8c0   : > { %5878 = vst [vmem:[%s10399_s13 + $0x80] sm:$0xff] %v5846_v56  ;;  %v5577_v7 = vadd.f32 %v10132_v8, %v4938_v10  ;;  %v5325_v59 = vsel %vm825_vm1, %v10432_v21, %v5324_v43  ;;  %v6336_v43 = vld [vmem:[%s6592_s21 + $0xe8] sm:$0xff] }
 0x8c1   : > { %v5622_v54 = vpop.permute.xlu1 %5621  ;;  %v5565_v50 = vadd.f32 %v5325_v59, %v10159_v41 }
 0x8c2   : > { %v5802_v38 = vmul.f32 %v5622_v54, %v5562_v37 }
 0x8c4   : > { %v5834_v44 = vadd.f32 %v6324_v19, %v5802_v38  ;;  %v5020_v54 = vpop.f32.mrf.mxu2  ;;  %v6330_v38 = vld [vmem:[%s6592_s21 + $0x68] sm:$0xff] }
 0x8c6   : > { %5866 = vst [vmem:[%s10399_s13 + $0x20] sm:$0xff] %v5834_v44  ;;  %v6331_v44 = vld [vmem:[%s6592_s21 + $0xc0] sm:$0xff] }
 0x8c7   : > { %5770 = vperm.xlu1 %6171, %v5759_v48  }
 0x8c9   : > { %v5635_v22 = vpop.permute.xlu1 %5634  ;;  %v5719_v2 = vpop.permute.xlu2 %5718 }
 0x8ca   : > { %v5804_v45 = vmul.f32 %v5635_v22, %v5564_v40  ;;  %v5648_v23 = vpop.permute.xlu0 %5647  ;;  %v5817_v51 = vmul.f32 %v5719_v2, %v5577_v7  ;;  %v5076_v2 = vpop.f32.mrf.mxu0 }
 0x8cb   : > { %v5806_v35 = vmul.f32 %v5648_v23, %v5566_v25  ;;  %v6332_v23 = vld [vmem:[%s6592_s21 + $0x50] sm:$0xff] }
 0x8cc   : > { %v5836_v48 = vadd.f32 %v6325_v4, %v5804_v45  ;;  %v5849_v13 = vadd.f32 %v6326_v9, %v5817_v51  ;;  %v5570_v9 = vadd.f32 %v11317_v20, %v10185_v58 }
 0x8cd   : > { %v5838_v8 = vadd.f32 %v6327_v24, %v5806_v35  ;;  %v6333_v35 = vld [vmem:[%s6592_s21 + $0xd0] sm:$0xff] }
 0x8ce   : > { %5868 = vst [vmem:[%s10399_s13 + $0x30] sm:$0xff] %v5836_v48 }
 0x8cf   : > { %5870 = vst [vmem:[%s10399_s13 + $0x40] sm:$0xff] %v5838_v8  ;;  %6174 = vset.pattern.permute.xlu1 %v11298_v14  ;;  %v5571_v14 = vadd.f32 %v10129_v31, %v10215_v34  ;;  %v5048_v34 = vpop.f32.mrf.mxu3 }
 0x8d0   : > { %5881 = vst [vmem:[%s10399_s13 + $0x98] sm:$0xff] %v5849_v13  ;;  %v5584_v10 = vadd.f32 %v10157_v52, %v5048_v34  ;;  %v6334_v52 = vld [vmem:[%s6592_s21 + $0x90] sm:$0xff] }
 0x8d1   : > { %v5732_v5 = vpop.permute.xlu2 %5731 }
 0x8d2   : > { %v5819_v39 = vmul.f32 %v5732_v5, %v5579_v61  ;;  %v5078_v8 = vpop.f32.mrf.mxu0  ;;  %v5581_v5 = vadd.f32 %v10182_v60, %v10255_v53 }
 0x8d3   : > { %v5587_v61 = vadd.f32 %v10235_v62, %v5078_v8  ;;  %v5573_v62 = vadd.f32 %v10135_v28, %v10224_v32  ;;  %v5575_v28 = vadd.f32 %v10140_v11, %v10478_v6  ;;  %v5586_v32 = vadd.f32 %v10188_v55, %v5076_v2  ;;  %v6342_v11 = vld [vmem:[%s6592_s21 + $0xa0] sm:$0xff]  ;;  %v6344_v2 = vld [vmem:[%s6592_s21 + $0xc8] sm:$0xff] }
 0x8d4   : > { %v5851_v30 = vadd.f32 %v6328_v17, %v5819_v39  ;;  %v5580_v55 = vadd.f32 %v10153_v27, %v10252_v26 }
 0x8d6   : > { %5883 = vst [vmem:[%s10399_s13 + $0xa8] sm:$0xff] %v5851_v30 }
 0x8d7   : > { %5790 = vperm.xlu1 %6174, %v5785_v47   ;;  %v5582_v47 = vadd.f32 %v11315_v42, %v5020_v54  ;;  %v6339_v54 = vld [vmem:[%s6592_s21 + $0xf8] sm:$0xff] }
 0x8d9   : > { %v5641_v56 = vpop.permute.xlu1 %5640 }
 0x8da   : > { %v5805_v49 = vmul.f32 %v5641_v56, %v5565_v50  ;;  %v5680_v57 = vpop.permute.xlu0 %5679  ;;  %v5106_v50 = vpop.f32.mrf.mxu1 }
 0x8db   : > { %v5811_v12 = vmul.f32 %v5680_v57, %v5571_v14  ;;  %v6337_v14 = vld [vmem:[%s6592_s21 + $0xb8] sm:$0xff]  ;;  %v5589_v60 = vadd.f32 %v10241_v15, %v5106_v50 }
 0x8dc   : > { %v5837_v37 = vadd.f32 %v6329_v46, %v5805_v49  ;;  %v6338_v46 = vld [vmem:[%s6592_s21 + $0x78] sm:$0xff] }
 0x8dd   : > { %v5843_v19 = vadd.f32 %v6330_v38, %v5811_v12 }
 0x8de   : > { %5869 = vst [vmem:[%s10399_s13 + $0x38] sm:$0xff] %v5837_v37 }
 0x8df   : > { %5875 = vst [vmem:[%s10399_s13 + $0x68] sm:$0xff] %v5843_v19 }
 0x8e1   : > { %v5752_v41 = vpop.permute.xlu2 %5751 }
 0x8e2   : > { %v5822_v21 = vmul.f32 %v5752_v41, %v5582_v47  ;;  %v6340_v41 = vld [vmem:[%s6592_s21 + $0x88] sm:$0xff] }
 0x8e4   : > { %v5854_v31 = vadd.f32 %v6331_v44, %v5822_v21  ;;  %v6341_v44 = vld [vmem:[%s6592_s21 + $0xe0] sm:$0xff] }
 0x8e6   : > { %5886 = vst [vmem:[%s10399_s13 + $0xc0] sm:$0xff] %v5854_v31 }
 0x8e9   : > { %v5661_v40 = vpop.permute.xlu1 %5660  ;;  %v5765_v7 = vpop.permute.xlu2 %5764 }
 0x8ea   : > { %v5808_v16 = vmul.f32 %v5661_v40, %v10148_v0  ;;  %v5713_v25 = vpop.permute.xlu0 %5712  ;;  %v5824_v22 = vmul.f32 %v5765_v7, %v5584_v10  ;;  %v6343_v40 = vld [vmem:[%s6592_s21 + $0xb0] sm:$0xff] }
 0x8eb   : > { %v5816_v45 = vmul.f32 %v5713_v25, %v5576_v36 }
 0x8ec   : > { %v5840_v51 = vadd.f32 %v6332_v23, %v5808_v16  ;;  %v5856_v4 = vadd.f32 %v6333_v35, %v5824_v22  ;;  %v5022_v16 = vpop.f32.mrf.mxu2  ;;  %v5050_v23 = vpop.f32.mrf.mxu3  ;;  %v6345_v35 = vld [vmem:[%s6592_s21 + $0xd8] sm:$0xff] }
 0x8ed   : > { %v5848_v48 = vadd.f32 %v6334_v52, %v5816_v45  ;;  %v5583_v25 = vadd.f32 %v10126_v33, %v5022_v16  ;;  %v5585_v27 = vadd.f32 %v10198_v63, %v5050_v23  ;;  %v6346_v63 = vld [vmem:[%s6592_s21 + $0xf0] sm:$0xff] }
 0x8ee   : > { %5872 = vst [vmem:[%s10399_s13 + $0x50] sm:$0xff] %v5840_v51 }
 0x8ef   : > { %5880 = vst [vmem:[%s10399_s13 + $0x90] sm:$0xff] %v5848_v48 }
 0x8f0   : > { %5888 = vst [vmem:[%s10399_s13 + $0xd0] sm:$0xff] %v5856_v4 }
 0x8f1   : > { %v5674_v0 = vpop.permute.xlu1 %5673 }
 0x8f2   : > { %v5810_v13 = vmul.f32 %v5674_v0, %v5570_v9 }
 0x8f4   : > { %v5842_v24 = vadd.f32 %v6335_v1, %v5810_v13 }
 0x8f6   : > { %5874 = vst [vmem:[%s10399_s13 + $0x60] sm:$0xff] %v5842_v24 }
 0x8f9   : > { %v5784_v39 = vpop.permute.xlu2 %5783 }
 0x8fa   : > { %v5745_v17 = vpop.permute.xlu0 %5744  ;;  %v5827_v30 = vmul.f32 %v5784_v39, %v5587_v61 }
 0x8fb   : > { %v5821_v58 = vmul.f32 %v5745_v17, %v5581_v5 }
 0x8fc   : > { %v5859_v59 = vadd.f32 %v6336_v43, %v5827_v30 }
 0x8fd   : > { %v5853_v56 = vadd.f32 %v6337_v14, %v5821_v58 }
 0x8fe   : > { %5891 = vst [vmem:[%s10399_s13 + $0xe8] sm:$0xff] %v5859_v59 }
 0x8ff   : > { %5885 = vst [vmem:[%s10399_s13 + $0xb8] sm:$0xff] %v5853_v56 }
 0x901   : > { %v5693_v53 = vpop.permute.xlu1 %5692  ;;  %v5797_v49 = vpop.permute.xlu2 %5796 }
 0x902   : > { %v5813_v57 = vmul.f32 %v5693_v53, %v5573_v62  ;;  %v5829_v12 = vmul.f32 %v5797_v49, %v5589_v60 }
 0x904   : > { %v5845_v37 = vadd.f32 %v6338_v46, %v5813_v57  ;;  %v5861_v38 = vadd.f32 %v6339_v54, %v5829_v12 }
 0x906   : > { %5877 = vst [vmem:[%s10399_s13 + $0x78] sm:$0xff] %v5845_v37 }
 0x907   : > { %5893 = vst [vmem:[%s10399_s13 + $0xf8] sm:$0xff] %v5861_v38 }
 0x909   : > { %v5706_v15 = vpop.permute.xlu1 %5705 }
 0x90a   : > { %v5778_v19 = vpop.permute.xlu0 %5777  ;;  %v5815_v42 = vmul.f32 %v5706_v15, %v5575_v28 }
 0x90b   : > { %v5826_v47 = vmul.f32 %v5778_v19, %v5586_v32 }
 0x90c   : > { %v5847_v21 = vadd.f32 %v6340_v41, %v5815_v42 }
 0x90d   : > { %v5858_v31 = vadd.f32 %v6341_v44, %v5826_v47 }
 0x90e   : > { %5879 = vst [vmem:[%s10399_s13 + $0x88] sm:$0xff] %v5847_v21 }
 0x90f   : > { %5890 = vst [vmem:[%s10399_s13 + $0xe0] sm:$0xff] %v5858_v31 }
 0x919   : > { %v5726_v34 = vpop.permute.xlu1 %5725 }
 0x91a   : > { %v5818_v10 = vmul.f32 %v5726_v34, %v10250_v29 }
 0x91c   : > { %v5850_v6 = vadd.f32 %v6342_v11, %v5818_v10 }
 0x91e   : > { %5882 = vst [vmem:[%s10399_s13 + $0xa0] sm:$0xff] %v5850_v6 }
 0x921   : > { %v5739_v3 = vpop.permute.xlu1 %5738 }
 0x922   : > { %v5820_v36 = vmul.f32 %v5739_v3, %v5580_v55 }
 0x924   : > { %v5852_v7 = vadd.f32 %v6343_v40, %v5820_v36 }
 0x926   : > { %5884 = vst [vmem:[%s10399_s13 + $0xb0] sm:$0xff] %v5852_v7 }
 0x931   : > { %v5758_v29 = vpop.permute.xlu1 %5757 }
 0x932   : > { %v5823_v22 = vmul.f32 %v5758_v29, %v5583_v25 }
 0x934   : > { %v5855_v45 = vadd.f32 %v6344_v2, %v5823_v22 }
 0x936   : > { %5887 = vst [vmem:[%s10399_s13 + $0xc8] sm:$0xff] %v5855_v45 }
 0x939   : > { %v5771_v26 = vpop.permute.xlu1 %5770 }
 0x93a   : > { %v5825_v51 = vmul.f32 %v5771_v26, %v5585_v27 }
 0x93c   : > { %v5857_v4 = vadd.f32 %v6345_v35, %v5825_v51 }
 0x93e   : > { %5889 = vst [vmem:[%s10399_s13 + $0xd8] sm:$0xff] %v5857_v4 }
 0x949   : > { %v5791_v33 = vpop.permute.xlu1 %5790 }
 0x94a   : > { %v5828_v52 = vmul.f32 %v5791_v33, %v10261_v18 }
 0x94c   : > { %v5860_v48 = vadd.f32 %v6346_v63, %v5828_v52 }
 0x94e   : > { %5892 = vst [vmem:[%s10399_s13 + $0xf0] sm:$0xff] %v5860_v48 }
 0x94f   : > { %6404 = shalt.err (!%p6401_p4)
}
 0x950   : > { %s6450_s27 = smov 128   ;;  %s6451_s21 = smov 8  }
 0x951   : > { %6065 = dma.vmem_to_hbm [thread:$0]  (%p6550_p11), %s5908_s24, 4096, %s5910_s20, %s5895_s17, %s6450_s27, %s6450_s27, %s6451_s21  }
 0x952 PF: > { %s5924_s13 = sand.u32 1, %s6431_s29   ;;  %p11318_p7 = scmp.ge.s32.totalorder %s6443_s10, 2 }
 0x953   : > { %s5925_s22 = scalar_lea.sflag [#allocation5], %s5924_s13 }
 0x954   : > { %p6072_p5 = pnand %p11318_p7, %p6554_p12 }
 0x956   : > { %p6073_p8 = pneg %p6072_p5 }
 0x958   : > { %6426 = dma.done.wait (%p6073_p8), %s5925_s22, 4096  }
 0x959   : > { %6428 = vsyncadd (%p6073_p8), %s5925_s22, 4294963200  ;;  %s11319_s16 = sld [smem:[#allocation9_spill]]  ;;  %p22_p10 = scmp.ge.s32.totalorder %s6525_s12, 4  }
 0x95a   : > { %s11320_s29 = smov %s6435_s30  ;;  %s11321_s30 = smov %s6439_s9 }
 0x95b   : > { %s11323_s10 = smov %s6525_s12  ;;  %24 = sbr.rel (!%p22_p10) target bundleno = 7 (0x7), region = 97 }
 0x95f   : > { %s11322_s9 = smov %s11319_s16 }
 0x960   :  { %5931 = vsyncpa [#allocation4], 1 }
 0x961   :  { %5933 = vsyncpa [#allocation4 + $0x1], 1 }
 0x962   :  { %5934 = vsyncpa [#allocation5], 1 }
 0x963   :  { %5936 = vsyncpa [#allocation5 + $0x1], 1 }

</bundles_post_ra>
